<compile_context>
chip_gen: v6e
topology: v6e:2x2x1
jax: 0.10.0
libtpu: 0.0.40
codegen_flags: <defaults>
</compile_context>

<pallas_src>
import jax
import jax.numpy as jnp
from jax.experimental import pallas as pl
from jax.experimental.pallas import tpu as pltpu

CONTEXT_PAD = 0

B, S, D, H, FF, V, LAYERS = 2, 8, 128, 4, 512, 64, 2
DH = D // H
BS = B * S
LN_EPS = 1e-5

# Matmul input dtype. f32 matches the PyTorch reference; set to jnp.bfloat16 on
# v6e/v7x when scaling to real roberta-large shapes (MXU peak is bf16; keep f32
# accumulation via preferred_element_type and keep LN/softmax/GELU math in f32).
MM_DTYPE = jnp.float32


def _mm(a, b):
    return jnp.dot(a.astype(MM_DTYPE), b.astype(MM_DTYPE),
                   preferred_element_type=jnp.float32)


def _qkt(q, k):
    # q @ k.T without materializing a transpose (contract dim 1 of both).
    return jax.lax.dot_general(
        q.astype(MM_DTYPE), k.astype(MM_DTYPE),
        dimension_numbers=(((1,), (1,)), ((), ())),
        preferred_element_type=jnp.float32)


# ---------------------------------------------------------------------------
# Single fused Pallas kernel: embedding LN -> LAYERS encoder layers -> head
# ---------------------------------------------------------------------------
def _bert_fused_kernel(x_ref, bias_ref, eg_ref, eb_ref,
                       wqkv_ref, bqkv_ref, wo_ref, bo_ref, g1_ref, b1_ref,
                       wf1_ref, bf1_ref, wf2_ref, bf2_ref, g2_ref, b2_ref,
                       wp_ref, bp_ref, y_ref,
                       probs_ref, loss_ref):
    def layernorm(x, g, b):
        mu = jnp.mean(x, axis=-1, keepdims=True)
        xc = x - mu
        var = jnp.mean(xc * xc, axis=-1, keepdims=True)
        return xc * jax.lax.rsqrt(var + LN_EPS) * g + b

    def gelu(y):
        # TODO(synk): HF RoBERTa uses exact erf GELU; tanh approximation here.
        c = jnp.float32(0.7978845608028654)  # sqrt(2/pi)
        return 0.5 * y * (1.0 + jnp.tanh(c * (y + 0.044715 * y * y * y)))

    scale = jnp.float32(1.0 / (DH ** 0.5))
    bias = bias_ref[...]                                   # (BS, BS) additive mask

    # Embedding LayerNorm (no residual, no zeros DMA).
    h = layernorm(x_ref[...], eg_ref[...], eb_ref[...])    # (BS, D)

    for l in range(LAYERS):                                # static unroll; h stays in VMEM
        # --- self-attention with fused QKV projection ---
        qkv = _mm(h, wqkv_ref[l]) + bqkv_ref[l]            # (BS, 3D)
        heads = []
        for hd in range(H):                                # static lane slices per head
            q = qkv[:, hd * DH:(hd + 1) * DH]              # (BS, DH)
            k = qkv[:, D + hd * DH:D + (hd + 1) * DH]
            v = qkv[:, 2 * D + hd * DH:2 * D + (hd + 1) * DH]
            s = _qkt(q, k) * scale + bias                  # (BS, BS) block-diag over batch
            s = s - jnp.max(s, axis=-1, keepdims=True)     # stable softmax
            p = jnp.exp(s)
            p = p * pl.reciprocal(jnp.sum(p, axis=-1, keepdims=True), approx=True)
            heads.append(_mm(p, v))                        # (BS, DH)
        ctx = jnp.concatenate(heads, axis=-1)              # (BS, D) lane-dense
        attn = _mm(ctx, wo_ref[l]) + bo_ref[l]
        h = layernorm(attn + h, g1_ref[l], b1_ref[l])      # post-LN residual epilogue

        # --- feed-forward with GELU epilogue ---
        ff = gelu(_mm(h, wf1_ref[l]) + bf1_ref[l])         # (BS, FF)
        ff = _mm(ff, wf2_ref[l]) + bf2_ref[l]
        h = layernorm(ff + h, g2_ref[l], b2_ref[l])

    # --- head: bert_output[:, -1, :] -> Linear(D,1) -> Sigmoid -> BCE ---
    h_last = jnp.concatenate(
        [h[(b + 1) * S - 1:(b + 1) * S, :] for b in range(B)], axis=0)  # (B, D)
    z = _mm(h_last, wp_ref[...]) + bp_ref[...]             # (B, 1)
    probs = 1.0 / (1.0 + jnp.exp(-z))
    probs_ref[...] = probs

    eps = jnp.float32(1e-7)
    pc = jnp.clip(probs, eps, 1.0 - eps)
    y = y_ref[...]
    bce = -(y * jnp.log(pc) + (1.0 - y) * jnp.log(1.0 - pc))            # (B, 1)
    loss_ref[...] = jnp.sum(bce, axis=0, keepdims=True) / jnp.float32(B)


def _fused_forward(*args):
    vmem = pl.BlockSpec(memory_space=pltpu.MemorySpace.VMEM)
    return pl.pallas_call(
        _bert_fused_kernel,
        out_shape=(jax.ShapeDtypeStruct((B, 1), jnp.float32),   # sigmoid(logits)
                   jax.ShapeDtypeStruct((1, 1), jnp.float32)),  # mean BCE loss
        in_specs=[vmem] * len(args),
        out_specs=(vmem, vmem),
        # No grid: entire model (~1 MB) fits in VMEM.  At real roberta-large
        # shapes, add a row / K grid with dimension_semantics=("parallel", ...)
        # for v7x megacore and bf16 weight tiles (<= 2048 on N) for 64 MiB VMEM.
    )(*args)


# ---------------------------------------------------------------------------
# Model glue (embedding gathers + mask construction) in plain JAX
# ---------------------------------------------------------------------------
def init_params(key):
    def nrm(k, shape):
        return jax.random.normal(k, shape, jnp.float32) * 0.02

    keys = jax.random.split(key, 4 + LAYERS)
    params = {
        "word_emb": nrm(keys[0], (V, D)),
        "pos_emb": nrm(keys[1], (S, D)),
        "type_emb": nrm(keys[2], (1, D)),
        "emb_ln_g": jnp.ones((1, D), jnp.float32),
        "emb_ln_b": jnp.zeros((1, D), jnp.float32),
        "wp": nrm(keys[3], (D, 1)),
        "bp": jnp.zeros((1, 1), jnp.float32),
    }
    per_layer = []
    for l in range(LAYERS):
        lk = jax.random.split(keys[4 + l], 6)
        per_layer.append({
            # Q|K|V fused into one (D, 3D) weight -> single MXU weight push per layer.
            "wqkv": jnp.concatenate(
                [nrm(lk[0], (D, D)), nrm(lk[1], (D, D)), nrm(lk[2], (D, D))], axis=1),
            "bqkv": jnp.zeros((1, 3 * D), jnp.float32),
            "wo": nrm(lk[3], (D, D)), "bo": jnp.zeros((1, D), jnp.float32),
            "ln1_g": jnp.ones((1, D), jnp.float32), "ln1_b": jnp.zeros((1, D), jnp.float32),
            "wf1": nrm(lk[4], (D, FF)), "bf1": jnp.zeros((1, FF), jnp.float32),
            "wf2": nrm(lk[5], (FF, D)), "bf2": jnp.zeros((1, D), jnp.float32),
            "ln2_g": jnp.ones((1, D), jnp.float32), "ln2_b": jnp.zeros((1, D), jnp.float32),
        })
    # Stack per-layer weights on a leading axis; the kernel indexes them statically.
    for name in per_layer[0]:
        params[name] = jnp.stack([lyr[name] for lyr in per_layer])
    return params


def bert_model_forward(params, tokens, labels=None, is_train=True):
    # mask = tokens != CONTEXT_PAD  (attention mask, as in the PyTorch forward)
    mask = (tokens != CONTEXT_PAD).astype(jnp.float32)                     # (B, S)

    # Embedding gathers are glue; everything downstream is one fused Pallas kernel.
    # TODO(synk): RoBERTa padding-aware position ids simplified to absolute 0..S-1.
    x = (params["word_emb"][tokens]
         + params["pos_emb"][None, :, :]
         + params["type_emb"][0][None, None, :])                           # (B, S, D)
    x = x.reshape(BS, D)

    # Additive attention bias (BS, BS): block-diagonal over batch, -1e9 on pad keys.
    same_batch = jnp.kron(jnp.eye(B, dtype=jnp.float32),
                          jnp.ones((S, S), jnp.float32))                   # (BS, BS)
    key_ok = jnp.broadcast_to(mask.reshape(1, BS), (BS, BS))
    attn_bias = (1.0 - same_batch * key_ok) * jnp.float32(-1e9)

    if labels is None:
        labels = jnp.zeros((B, 1), jnp.float32)

    probs, loss = _fused_forward(
        x, attn_bias, params["emb_ln_g"], params["emb_ln_b"],
        params["wqkv"], params["bqkv"], params["wo"], params["bo"],
        params["ln1_g"], params["ln1_b"],
        params["wf1"], params["bf1"], params["wf2"], params["bf2"],
        params["ln2_g"], params["ln2_b"],
        params["wp"], params["bp"], labels)

    if is_train:
        return loss[0, 0]
    return probs


if __name__ == "__main__":
    key = jax.random.PRNGKey(0)
    pkey, tkey, lkey = jax.random.split(key, 3)
    params = init_params(pkey)

    tokens = jax.random.randint(tkey, (B, S), 1, V)
    tokens = tokens.at[0, 2].set(CONTEXT_PAD)   # exercise the attention-mask path
    labels = jax.random.bernoulli(lkey, 0.5, (B, 1)).astype(jnp.float32)

    fwd = jax.jit(bert_model_forward, static_argnames=("is_train",))
    loss = fwd(params, tokens, labels, is_train=True)
    logits = fwd(params, tokens, labels, is_train=False)
    jax.block_until_ready((loss, logits))
    print("KERNEL_OK")
</pallas_src>

<mosaic_0001>
module attributes {stable_mosaic.version = 11 : i64} {
  func.func @_bert_fused_kernel(%arg0: memref<16x128xf32, #tpu.memory_space<vmem>>, %arg1: memref<16x16xf32, #tpu.memory_space<vmem>>, %arg2: memref<1x128xf32, #tpu.memory_space<vmem>>, %arg3: memref<1x128xf32, #tpu.memory_space<vmem>>, %arg4: memref<2x128x384xf32, #tpu.memory_space<vmem>>, %arg5: memref<2x1x384xf32, #tpu.memory_space<vmem>>, %arg6: memref<2x128x128xf32, #tpu.memory_space<vmem>>, %arg7: memref<2x1x128xf32, #tpu.memory_space<vmem>>, %arg8: memref<2x1x128xf32, #tpu.memory_space<vmem>>, %arg9: memref<2x1x128xf32, #tpu.memory_space<vmem>>, %arg10: memref<2x128x512xf32, #tpu.memory_space<vmem>>, %arg11: memref<2x1x512xf32, #tpu.memory_space<vmem>>, %arg12: memref<2x512x128xf32, #tpu.memory_space<vmem>>, %arg13: memref<2x1x128xf32, #tpu.memory_space<vmem>>, %arg14: memref<2x1x128xf32, #tpu.memory_space<vmem>>, %arg15: memref<2x1x128xf32, #tpu.memory_space<vmem>>, %arg16: memref<128x1xf32, #tpu.memory_space<vmem>>, %arg17: memref<1x1xf32, #tpu.memory_space<vmem>>, %arg18: memref<2x1xf32, #tpu.memory_space<vmem>>, %arg19: memref<2x1xf32, #tpu.memory_space<vmem>>, %arg20: memref<1x1xf32, #tpu.memory_space<vmem>>) attributes {dimension_semantics = [], scalar_prefetch = 0 : i64, scratch_operands = 0 : i64, tpu.core_type = #tpu.core_type<tc>} {
    %c0 = arith.constant 0 : index
    %c0_0 = arith.constant 0 : index
    %0 = vector.load %arg1[%c0, %c0_0] : memref<16x16xf32, #tpu.memory_space<vmem>>, vector<16x16xf32>
    %c0_1 = arith.constant 0 : index
    %c0_2 = arith.constant 0 : index
    %1 = vector.load %arg0[%c0_1, %c0_2] : memref<16x128xf32, #tpu.memory_space<vmem>>, vector<16x128xf32>
    %c0_3 = arith.constant 0 : index
    %c0_4 = arith.constant 0 : index
    %2 = vector.load %arg2[%c0_3, %c0_4] : memref<1x128xf32, #tpu.memory_space<vmem>>, vector<1x128xf32>
    %c0_5 = arith.constant 0 : index
    %c0_6 = arith.constant 0 : index
    %3 = vector.load %arg3[%c0_5, %c0_6] : memref<1x128xf32, #tpu.memory_space<vmem>>, vector<1x128xf32>
    %cst = arith.constant dense<0.000000e+00> : vector<16xf32>
    %4 = vector.multi_reduction <add>, %1, %cst [1] : vector<16x128xf32> to vector<16xf32>
    %5 = vector.shape_cast %4 : vector<16xf32> to vector<16x1xf32>
    %cst_7 = arith.constant 1.280000e+02 : f32
    %6 = vector.broadcast %cst_7 : f32 to vector<16x1xf32>
    %7 = arith.divf %5, %6 : vector<16x1xf32>
    %8 = vector.broadcast %7 : vector<16x1xf32> to vector<16x128xf32>
    %9 = arith.subf %1, %8 : vector<16x128xf32>
    %10 = arith.mulf %9, %9 : vector<16x128xf32>
    %cst_8 = arith.constant dense<0.000000e+00> : vector<16xf32>
    %11 = vector.multi_reduction <add>, %10, %cst_8 [1] : vector<16x128xf32> to vector<16xf32>
    %12 = vector.shape_cast %11 : vector<16xf32> to vector<16x1xf32>
    %cst_9 = arith.constant 1.280000e+02 : f32
    %13 = vector.broadcast %cst_9 : f32 to vector<16x1xf32>
    %14 = arith.divf %12, %13 : vector<16x1xf32>
    %cst_10 = arith.constant 9.99999974E-6 : f32
    %15 = vector.broadcast %cst_10 : f32 to vector<16x1xf32>
    %16 = arith.addf %14, %15 : vector<16x1xf32>
    %17 = math.rsqrt %16 : vector<16x1xf32>
    %18 = vector.broadcast %17 : vector<16x1xf32> to vector<16x128xf32>
    %19 = arith.mulf %9, %18 : vector<16x128xf32>
    %20 = vector.broadcast %2 : vector<1x128xf32> to vector<16x128xf32>
    %21 = arith.mulf %19, %20 : vector<16x128xf32>
    %22 = vector.broadcast %3 : vector<1x128xf32> to vector<16x128xf32>
    %23 = arith.addf %21, %22 : vector<16x128xf32>
    %c0_11 = arith.constant 0 : index
    %c0_12 = arith.constant 0 : index
    %c0_13 = arith.constant 0 : index
    %24 = vector.load %arg4[%c0_11, %c0_12, %c0_13] : memref<2x128x384xf32, #tpu.memory_space<vmem>>, vector<1x128x384xf32>
    %25 = vector.shape_cast %24 : vector<1x128x384xf32> to vector<128x384xf32>
    %cst_14 = arith.constant dense<0.000000e+00> : vector<16x384xf32>
    %26 = tpu.matmul %23, %25, %cst_14 {dimension_numbers = #tpu.dot_dimension_numbers<[1], [0], [0], [1], [0, 0, 1, 1], [], []>} : vector<16x128xf32>, vector<128x384xf32>, vector<16x384xf32> -> vector<16x384xf32>
    %c0_15 = arith.constant 0 : index
    %c0_16 = arith.constant 0 : index
    %c0_17 = arith.constant 0 : index
    %27 = vector.load %arg5[%c0_15, %c0_16, %c0_17] : memref<2x1x384xf32, #tpu.memory_space<vmem>>, vector<1x1x384xf32>
    %28 = vector.shape_cast %27 : vector<1x1x384xf32> to vector<1x384xf32>
    %29 = vector.broadcast %28 : vector<1x384xf32> to vector<16x384xf32>
    %30 = arith.addf %26, %29 : vector<16x384xf32>
    %31 = vector.extract_strided_slice %30 {offsets = [0, 0], sizes = [16, 32], strides = [1, 1]} : vector<16x384xf32> to vector<16x32xf32>
    %32 = vector.extract_strided_slice %30 {offsets = [0, 128], sizes = [16, 32], strides = [1, 1]} : vector<16x384xf32> to vector<16x32xf32>
    %33 = vector.extract_strided_slice %30 {offsets = [0, 256], sizes = [16, 32], strides = [1, 1]} : vector<16x384xf32> to vector<16x32xf32>
    %cst_18 = arith.constant dense<0.000000e+00> : vector<16x16xf32>
    %34 = tpu.matmul %31, %32, %cst_18 {dimension_numbers = #tpu.dot_dimension_numbers<[1], [1], [0], [0], [0, 0, 1, 0], [], []>} : vector<16x32xf32>, vector<16x32xf32>, vector<16x16xf32> -> vector<16x16xf32>
    %cst_19 = arith.constant 0.176776692 : f32
    %35 = vector.broadcast %cst_19 : f32 to vector<16x16xf32>
    %36 = arith.mulf %34, %35 : vector<16x16xf32>
    %37 = arith.addf %36, %0 : vector<16x16xf32>
    %cst_20 = arith.constant dense<0xFF800000> : vector<16xf32>
    %38 = vector.multi_reduction <maximumf>, %37, %cst_20 [1] : vector<16x16xf32> to vector<16xf32>
    %39 = vector.shape_cast %38 : vector<16xf32> to vector<16x1xf32>
    %40 = vector.broadcast %39 : vector<16x1xf32> to vector<16x16xf32>
    %41 = arith.subf %37, %40 : vector<16x16xf32>
    %42 = math.exp %41 : vector<16x16xf32>
    %cst_21 = arith.constant dense<0.000000e+00> : vector<16xf32>
    %43 = vector.multi_reduction <add>, %42, %cst_21 [1] : vector<16x16xf32> to vector<16xf32>
    %44 = vector.shape_cast %43 : vector<16xf32> to vector<16x1xf32>
    %45 = tpu.reciprocal %44 {approx = true} : vector<16x1xf32> -> vector<16x1xf32>
    %46 = vector.broadcast %45 : vector<16x1xf32> to vector<16x16xf32>
    %47 = arith.mulf %42, %46 : vector<16x16xf32>
    %cst_22 = arith.constant dense<0.000000e+00> : vector<16x32xf32>
    %48 = tpu.matmul %47, %33, %cst_22 {dimension_numbers = #tpu.dot_dimension_numbers<[1], [0], [0], [1], [0, 0, 1, 1], [], []>} : vector<16x16xf32>, vector<16x32xf32>, vector<16x32xf32> -> vector<16x32xf32>
    %49 = vector.extract_strided_slice %30 {offsets = [0, 32], sizes = [16, 32], strides = [1, 1]} : vector<16x384xf32> to vector<16x32xf32>
    %50 = vector.extract_strided_slice %30 {offsets = [0, 160], sizes = [16, 32], strides = [1, 1]} : vector<16x384xf32> to vector<16x32xf32>
    %51 = vector.extract_strided_slice %30 {offsets = [0, 288], sizes = [16, 32], strides = [1, 1]} : vector<16x384xf32> to vector<16x32xf32>
    %cst_23 = arith.constant dense<0.000000e+00> : vector<16x16xf32>
    %52 = tpu.matmul %49, %50, %cst_23 {dimension_numbers = #tpu.dot_dimension_numbers<[1], [1], [0], [0], [0, 0, 1, 0], [], []>} : vector<16x32xf32>, vector<16x32xf32>, vector<16x16xf32> -> vector<16x16xf32>
    %cst_24 = arith.constant 0.176776692 : f32
    %53 = vector.broadcast %cst_24 : f32 to vector<16x16xf32>
    %54 = arith.mulf %52, %53 : vector<16x16xf32>
    %55 = arith.addf %54, %0 : vector<16x16xf32>
    %cst_25 = arith.constant dense<0xFF800000> : vector<16xf32>
    %56 = vector.multi_reduction <maximumf>, %55, %cst_25 [1] : vector<16x16xf32> to vector<16xf32>
    %57 = vector.shape_cast %56 : vector<16xf32> to vector<16x1xf32>
    %58 = vector.broadcast %57 : vector<16x1xf32> to vector<16x16xf32>
    %59 = arith.subf %55, %58 : vector<16x16xf32>
    %60 = math.exp %59 : vector<16x16xf32>
    %cst_26 = arith.constant dense<0.000000e+00> : vector<16xf32>
    %61 = vector.multi_reduction <add>, %60, %cst_26 [1] : vector<16x16xf32> to vector<16xf32>
    %62 = vector.shape_cast %61 : vector<16xf32> to vector<16x1xf32>
    %63 = tpu.reciprocal %62 {approx = true} : vector<16x1xf32> -> vector<16x1xf32>
    %64 = vector.broadcast %63 : vector<16x1xf32> to vector<16x16xf32>
    %65 = arith.mulf %60, %64 : vector<16x16xf32>
    %cst_27 = arith.constant dense<0.000000e+00> : vector<16x32xf32>
    %66 = tpu.matmul %65, %51, %cst_27 {dimension_numbers = #tpu.dot_dimension_numbers<[1], [0], [0], [1], [0, 0, 1, 1], [], []>} : vector<16x16xf32>, vector<16x32xf32>, vector<16x32xf32> -> vector<16x32xf32>
    %67 = vector.extract_strided_slice %30 {offsets = [0, 64], sizes = [16, 32], strides = [1, 1]} : vector<16x384xf32> to vector<16x32xf32>
    %68 = vector.extract_strided_slice %30 {offsets = [0, 192], sizes = [16, 32], strides = [1, 1]} : vector<16x384xf32> to vector<16x32xf32>
    %69 = vector.extract_strided_slice %30 {offsets = [0, 320], sizes = [16, 32], strides = [1, 1]} : vector<16x384xf32> to vector<16x32xf32>
    %cst_28 = arith.constant dense<0.000000e+00> : vector<16x16xf32>
    %70 = tpu.matmul %67, %68, %cst_28 {dimension_numbers = #tpu.dot_dimension_numbers<[1], [1], [0], [0], [0, 0, 1, 0], [], []>} : vector<16x32xf32>, vector<16x32xf32>, vector<16x16xf32> -> vector<16x16xf32>
    %cst_29 = arith.constant 0.176776692 : f32
    %71 = vector.broadcast %cst_29 : f32 to vector<16x16xf32>
    %72 = arith.mulf %70, %71 : vector<16x16xf32>
    %73 = arith.addf %72, %0 : vector<16x16xf32>
    %cst_30 = arith.constant dense<0xFF800000> : vector<16xf32>
    %74 = vector.multi_reduction <maximumf>, %73, %cst_30 [1] : vector<16x16xf32> to vector<16xf32>
    %75 = vector.shape_cast %74 : vector<16xf32> to vector<16x1xf32>
    %76 = vector.broadcast %75 : vector<16x1xf32> to vector<16x16xf32>
    %77 = arith.subf %73, %76 : vector<16x16xf32>
    %78 = math.exp %77 : vector<16x16xf32>
    %cst_31 = arith.constant dense<0.000000e+00> : vector<16xf32>
    %79 = vector.multi_reduction <add>, %78, %cst_31 [1] : vector<16x16xf32> to vector<16xf32>
    %80 = vector.shape_cast %79 : vector<16xf32> to vector<16x1xf32>
    %81 = tpu.reciprocal %80 {approx = true} : vector<16x1xf32> -> vector<16x1xf32>
    %82 = vector.broadcast %81 : vector<16x1xf32> to vector<16x16xf32>
    %83 = arith.mulf %78, %82 : vector<16x16xf32>
    %cst_32 = arith.constant dense<0.000000e+00> : vector<16x32xf32>
    %84 = tpu.matmul %83, %69, %cst_32 {dimension_numbers = #tpu.dot_dimension_numbers<[1], [0], [0], [1], [0, 0, 1, 1], [], []>} : vector<16x16xf32>, vector<16x32xf32>, vector<16x32xf32> -> vector<16x32xf32>
    %85 = vector.extract_strided_slice %30 {offsets = [0, 96], sizes = [16, 32], strides = [1, 1]} : vector<16x384xf32> to vector<16x32xf32>
    %86 = vector.extract_strided_slice %30 {offsets = [0, 224], sizes = [16, 32], strides = [1, 1]} : vector<16x384xf32> to vector<16x32xf32>
    %87 = vector.extract_strided_slice %30 {offsets = [0, 352], sizes = [16, 32], strides = [1, 1]} : vector<16x384xf32> to vector<16x32xf32>
    %cst_33 = arith.constant dense<0.000000e+00> : vector<16x16xf32>
    %88 = tpu.matmul %85, %86, %cst_33 {dimension_numbers = #tpu.dot_dimension_numbers<[1], [1], [0], [0], [0, 0, 1, 0], [], []>} : vector<16x32xf32>, vector<16x32xf32>, vector<16x16xf32> -> vector<16x16xf32>
    %cst_34 = arith.constant 0.176776692 : f32
    %89 = vector.broadcast %cst_34 : f32 to vector<16x16xf32>
    %90 = arith.mulf %88, %89 : vector<16x16xf32>
    %91 = arith.addf %90, %0 : vector<16x16xf32>
    %cst_35 = arith.constant dense<0xFF800000> : vector<16xf32>
    %92 = vector.multi_reduction <maximumf>, %91, %cst_35 [1] : vector<16x16xf32> to vector<16xf32>
    %93 = vector.shape_cast %92 : vector<16xf32> to vector<16x1xf32>
    %94 = vector.broadcast %93 : vector<16x1xf32> to vector<16x16xf32>
    %95 = arith.subf %91, %94 : vector<16x16xf32>
    %96 = math.exp %95 : vector<16x16xf32>
    %cst_36 = arith.constant dense<0.000000e+00> : vector<16xf32>
    %97 = vector.multi_reduction <add>, %96, %cst_36 [1] : vector<16x16xf32> to vector<16xf32>
    %98 = vector.shape_cast %97 : vector<16xf32> to vector<16x1xf32>
    %99 = tpu.reciprocal %98 {approx = true} : vector<16x1xf32> -> vector<16x1xf32>
    %100 = vector.broadcast %99 : vector<16x1xf32> to vector<16x16xf32>
    %101 = arith.mulf %96, %100 : vector<16x16xf32>
    %cst_37 = arith.constant dense<0.000000e+00> : vector<16x32xf32>
    %102 = tpu.matmul %101, %87, %cst_37 {dimension_numbers = #tpu.dot_dimension_numbers<[1], [0], [0], [1], [0, 0, 1, 1], [], []>} : vector<16x16xf32>, vector<16x32xf32>, vector<16x32xf32> -> vector<16x32xf32>
    %103 = tpu.concatenate %48, %66, %84, %102 in 1 : vector<16x32xf32>, vector<16x32xf32>, vector<16x32xf32>, vector<16x32xf32> -> vector<16x128xf32>
    %c0_38 = arith.constant 0 : index
    %c0_39 = arith.constant 0 : index
    %c0_40 = arith.constant 0 : index
    %104 = vector.load %arg6[%c0_38, %c0_39, %c0_40] : memref<2x128x128xf32, #tpu.memory_space<vmem>>, vector<1x128x128xf32>
    %105 = vector.shape_cast %104 : vector<1x128x128xf32> to vector<128x128xf32>
    %cst_41 = arith.constant dense<0.000000e+00> : vector<16x128xf32>
    %106 = tpu.matmul %103, %105, %cst_41 {dimension_numbers = #tpu.dot_dimension_numbers<[1], [0], [0], [1], [0, 0, 1, 1], [], []>} : vector<16x128xf32>, vector<128x128xf32>, vector<16x128xf32> -> vector<16x128xf32>
    %c0_42 = arith.constant 0 : index
    %c0_43 = arith.constant 0 : index
    %c0_44 = arith.constant 0 : index
    %107 = vector.load %arg7[%c0_42, %c0_43, %c0_44] : memref<2x1x128xf32, #tpu.memory_space<vmem>>, vector<1x1x128xf32>
    %108 = vector.shape_cast %107 : vector<1x1x128xf32> to vector<1x128xf32>
    %109 = vector.broadcast %108 : vector<1x128xf32> to vector<16x128xf32>
    %110 = arith.addf %106, %109 : vector<16x128xf32>
    %111 = arith.addf %110, %23 : vector<16x128xf32>
    %c0_45 = arith.constant 0 : index
    %c0_46 = arith.constant 0 : index
    %c0_47 = arith.constant 0 : index
    %112 = vector.load %arg8[%c0_45, %c0_46, %c0_47] : memref<2x1x128xf32, #tpu.memory_space<vmem>>, vector<1x1x128xf32>
    %113 = vector.shape_cast %112 : vector<1x1x128xf32> to vector<1x128xf32>
    %c0_48 = arith.constant 0 : index
    %c0_49 = arith.constant 0 : index
    %c0_50 = arith.constant 0 : index
    %114 = vector.load %arg9[%c0_48, %c0_49, %c0_50] : memref<2x1x128xf32, #tpu.memory_space<vmem>>, vector<1x1x128xf32>
    %115 = vector.shape_cast %114 : vector<1x1x128xf32> to vector<1x128xf32>
    %cst_51 = arith.constant dense<0.000000e+00> : vector<16xf32>
    %116 = vector.multi_reduction <add>, %111, %cst_51 [1] : vector<16x128xf32> to vector<16xf32>
    %117 = vector.shape_cast %116 : vector<16xf32> to vector<16x1xf32>
    %cst_52 = arith.constant 1.280000e+02 : f32
    %118 = vector.broadcast %cst_52 : f32 to vector<16x1xf32>
    %119 = arith.divf %117, %118 : vector<16x1xf32>
    %120 = vector.broadcast %119 : vector<16x1xf32> to vector<16x128xf32>
    %121 = arith.subf %111, %120 : vector<16x128xf32>
    %122 = arith.mulf %121, %121 : vector<16x128xf32>
    %cst_53 = arith.constant dense<0.000000e+00> : vector<16xf32>
    %123 = vector.multi_reduction <add>, %122, %cst_53 [1] : vector<16x128xf32> to vector<16xf32>
    %124 = vector.shape_cast %123 : vector<16xf32> to vector<16x1xf32>
    %cst_54 = arith.constant 1.280000e+02 : f32
    %125 = vector.broadcast %cst_54 : f32 to vector<16x1xf32>
    %126 = arith.divf %124, %125 : vector<16x1xf32>
    %cst_55 = arith.constant 9.99999974E-6 : f32
    %127 = vector.broadcast %cst_55 : f32 to vector<16x1xf32>
    %128 = arith.addf %126, %127 : vector<16x1xf32>
    %129 = math.rsqrt %128 : vector<16x1xf32>
    %130 = vector.broadcast %129 : vector<16x1xf32> to vector<16x128xf32>
    %131 = arith.mulf %121, %130 : vector<16x128xf32>
    %132 = vector.broadcast %113 : vector<1x128xf32> to vector<16x128xf32>
    %133 = arith.mulf %131, %132 : vector<16x128xf32>
    %134 = vector.broadcast %115 : vector<1x128xf32> to vector<16x128xf32>
    %135 = arith.addf %133, %134 : vector<16x128xf32>
    %c0_56 = arith.constant 0 : index
    %c0_57 = arith.constant 0 : index
    %c0_58 = arith.constant 0 : index
    %136 = vector.load %arg10[%c0_56, %c0_57, %c0_58] : memref<2x128x512xf32, #tpu.memory_space<vmem>>, vector<1x128x512xf32>
    %137 = vector.shape_cast %136 : vector<1x128x512xf32> to vector<128x512xf32>
    %cst_59 = arith.constant dense<0.000000e+00> : vector<16x512xf32>
    %138 = tpu.matmul %135, %137, %cst_59 {dimension_numbers = #tpu.dot_dimension_numbers<[1], [0], [0], [1], [0, 0, 1, 1], [], []>} : vector<16x128xf32>, vector<128x512xf32>, vector<16x512xf32> -> vector<16x512xf32>
    %c0_60 = arith.constant 0 : index
    %c0_61 = arith.constant 0 : index
    %c0_62 = arith.constant 0 : index
    %139 = vector.load %arg11[%c0_60, %c0_61, %c0_62] : memref<2x1x512xf32, #tpu.memory_space<vmem>>, vector<1x1x512xf32>
    %140 = vector.shape_cast %139 : vector<1x1x512xf32> to vector<1x512xf32>
    %141 = vector.broadcast %140 : vector<1x512xf32> to vector<16x512xf32>
    %142 = arith.addf %138, %141 : vector<16x512xf32>
    %cst_63 = arith.constant 5.000000e-01 : f32
    %143 = vector.broadcast %cst_63 : f32 to vector<16x512xf32>
    %144 = arith.mulf %143, %142 : vector<16x512xf32>
    %cst_64 = arith.constant 4.471500e-02 : f32
    %145 = vector.broadcast %cst_64 : f32 to vector<16x512xf32>
    %146 = arith.mulf %145, %142 : vector<16x512xf32>
    %147 = arith.mulf %146, %142 : vector<16x512xf32>
    %148 = arith.mulf %147, %142 : vector<16x512xf32>
    %149 = arith.addf %142, %148 : vector<16x512xf32>
    %cst_65 = arith.constant 0.797884583 : f32
    %150 = vector.broadcast %cst_65 : f32 to vector<16x512xf32>
    %151 = arith.mulf %150, %149 : vector<16x512xf32>
    %152 = math.tanh %151 : vector<16x512xf32>
    %cst_66 = arith.constant 1.000000e+00 : f32
    %153 = vector.broadcast %cst_66 : f32 to vector<16x512xf32>
    %154 = arith.addf %153, %152 : vector<16x512xf32>
    %155 = arith.mulf %144, %154 : vector<16x512xf32>
    %c0_67 = arith.constant 0 : index
    %c0_68 = arith.constant 0 : index
    %c0_69 = arith.constant 0 : index
    %156 = vector.load %arg12[%c0_67, %c0_68, %c0_69] : memref<2x512x128xf32, #tpu.memory_space<vmem>>, vector<1x512x128xf32>
    %157 = vector.shape_cast %156 : vector<1x512x128xf32> to vector<512x128xf32>
    %cst_70 = arith.constant dense<0.000000e+00> : vector<16x128xf32>
    %158 = tpu.matmul %155, %157, %cst_70 {dimension_numbers = #tpu.dot_dimension_numbers<[1], [0], [0], [1], [0, 0, 1, 1], [], []>} : vector<16x512xf32>, vector<512x128xf32>, vector<16x128xf32> -> vector<16x128xf32>
    %c0_71 = arith.constant 0 : index
    %c0_72 = arith.constant 0 : index
    %c0_73 = arith.constant 0 : index
    %159 = vector.load %arg13[%c0_71, %c0_72, %c0_73] : memref<2x1x128xf32, #tpu.memory_space<vmem>>, vector<1x1x128xf32>
    %160 = vector.shape_cast %159 : vector<1x1x128xf32> to vector<1x128xf32>
    %161 = vector.broadcast %160 : vector<1x128xf32> to vector<16x128xf32>
    %162 = arith.addf %158, %161 : vector<16x128xf32>
    %163 = arith.addf %162, %135 : vector<16x128xf32>
    %c0_74 = arith.constant 0 : index
    %c0_75 = arith.constant 0 : index
    %c0_76 = arith.constant 0 : index
    %164 = vector.load %arg14[%c0_74, %c0_75, %c0_76] : memref<2x1x128xf32, #tpu.memory_space<vmem>>, vector<1x1x128xf32>
    %165 = vector.shape_cast %164 : vector<1x1x128xf32> to vector<1x128xf32>
    %c0_77 = arith.constant 0 : index
    %c0_78 = arith.constant 0 : index
    %c0_79 = arith.constant 0 : index
    %166 = vector.load %arg15[%c0_77, %c0_78, %c0_79] : memref<2x1x128xf32, #tpu.memory_space<vmem>>, vector<1x1x128xf32>
    %167 = vector.shape_cast %166 : vector<1x1x128xf32> to vector<1x128xf32>
    %cst_80 = arith.constant dense<0.000000e+00> : vector<16xf32>
    %168 = vector.multi_reduction <add>, %163, %cst_80 [1] : vector<16x128xf32> to vector<16xf32>
    %169 = vector.shape_cast %168 : vector<16xf32> to vector<16x1xf32>
    %cst_81 = arith.constant 1.280000e+02 : f32
    %170 = vector.broadcast %cst_81 : f32 to vector<16x1xf32>
    %171 = arith.divf %169, %170 : vector<16x1xf32>
    %172 = vector.broadcast %171 : vector<16x1xf32> to vector<16x128xf32>
    %173 = arith.subf %163, %172 : vector<16x128xf32>
    %174 = arith.mulf %173, %173 : vector<16x128xf32>
    %cst_82 = arith.constant dense<0.000000e+00> : vector<16xf32>
    %175 = vector.multi_reduction <add>, %174, %cst_82 [1] : vector<16x128xf32> to vector<16xf32>
    %176 = vector.shape_cast %175 : vector<16xf32> to vector<16x1xf32>
    %cst_83 = arith.constant 1.280000e+02 : f32
    %177 = vector.broadcast %cst_83 : f32 to vector<16x1xf32>
    %178 = arith.divf %176, %177 : vector<16x1xf32>
    %cst_84 = arith.constant 9.99999974E-6 : f32
    %179 = vector.broadcast %cst_84 : f32 to vector<16x1xf32>
    %180 = arith.addf %178, %179 : vector<16x1xf32>
    %181 = math.rsqrt %180 : vector<16x1xf32>
    %182 = vector.broadcast %181 : vector<16x1xf32> to vector<16x128xf32>
    %183 = arith.mulf %173, %182 : vector<16x128xf32>
    %184 = vector.broadcast %165 : vector<1x128xf32> to vector<16x128xf32>
    %185 = arith.mulf %183, %184 : vector<16x128xf32>
    %186 = vector.broadcast %167 : vector<1x128xf32> to vector<16x128xf32>
    %187 = arith.addf %185, %186 : vector<16x128xf32>
    %c1 = arith.constant 1 : index
    %c0_85 = arith.constant 0 : index
    %c0_86 = arith.constant 0 : index
    %188 = vector.load %arg4[%c1, %c0_85, %c0_86] : memref<2x128x384xf32, #tpu.memory_space<vmem>>, vector<1x128x384xf32>
    %189 = vector.shape_cast %188 : vector<1x128x384xf32> to vector<128x384xf32>
    %cst_87 = arith.constant dense<0.000000e+00> : vector<16x384xf32>
    %190 = tpu.matmul %187, %189, %cst_87 {dimension_numbers = #tpu.dot_dimension_numbers<[1], [0], [0], [1], [0, 0, 1, 1], [], []>} : vector<16x128xf32>, vector<128x384xf32>, vector<16x384xf32> -> vector<16x384xf32>
    %c1_88 = arith.constant 1 : index
    %c0_89 = arith.constant 0 : index
    %c0_90 = arith.constant 0 : index
    %191 = vector.load %arg5[%c1_88, %c0_89, %c0_90] : memref<2x1x384xf32, #tpu.memory_space<vmem>>, vector<1x1x384xf32>
    %192 = vector.shape_cast %191 : vector<1x1x384xf32> to vector<1x384xf32>
    %193 = vector.broadcast %192 : vector<1x384xf32> to vector<16x384xf32>
    %194 = arith.addf %190, %193 : vector<16x384xf32>
    %195 = vector.extract_strided_slice %194 {offsets = [0, 0], sizes = [16, 32], strides = [1, 1]} : vector<16x384xf32> to vector<16x32xf32>
    %196 = vector.extract_strided_slice %194 {offsets = [0, 128], sizes = [16, 32], strides = [1, 1]} : vector<16x384xf32> to vector<16x32xf32>
    %197 = vector.extract_strided_slice %194 {offsets = [0, 256], sizes = [16, 32], strides = [1, 1]} : vector<16x384xf32> to vector<16x32xf32>
    %cst_91 = arith.constant dense<0.000000e+00> : vector<16x16xf32>
    %198 = tpu.matmul %195, %196, %cst_91 {dimension_numbers = #tpu.dot_dimension_numbers<[1], [1], [0], [0], [0, 0, 1, 0], [], []>} : vector<16x32xf32>, vector<16x32xf32>, vector<16x16xf32> -> vector<16x16xf32>
    %cst_92 = arith.constant 0.176776692 : f32
    %199 = vector.broadcast %cst_92 : f32 to vector<16x16xf32>
    %200 = arith.mulf %198, %199 : vector<16x16xf32>
    %201 = arith.addf %200, %0 : vector<16x16xf32>
    %cst_93 = arith.constant dense<0xFF800000> : vector<16xf32>
    %202 = vector.multi_reduction <maximumf>, %201, %cst_93 [1] : vector<16x16xf32> to vector<16xf32>
    %203 = vector.shape_cast %202 : vector<16xf32> to vector<16x1xf32>
    %204 = vector.broadcast %203 : vector<16x1xf32> to vector<16x16xf32>
    %205 = arith.subf %201, %204 : vector<16x16xf32>
    %206 = math.exp %205 : vector<16x16xf32>
    %cst_94 = arith.constant dense<0.000000e+00> : vector<16xf32>
    %207 = vector.multi_reduction <add>, %206, %cst_94 [1] : vector<16x16xf32> to vector<16xf32>
    %208 = vector.shape_cast %207 : vector<16xf32> to vector<16x1xf32>
    %209 = tpu.reciprocal %208 {approx = true} : vector<16x1xf32> -> vector<16x1xf32>
    %210 = vector.broadcast %209 : vector<16x1xf32> to vector<16x16xf32>
    %211 = arith.mulf %206, %210 : vector<16x16xf32>
    %cst_95 = arith.constant dense<0.000000e+00> : vector<16x32xf32>
    %212 = tpu.matmul %211, %197, %cst_95 {dimension_numbers = #tpu.dot_dimension_numbers<[1], [0], [0], [1], [0, 0, 1, 1], [], []>} : vector<16x16xf32>, vector<16x32xf32>, vector<16x32xf32> -> vector<16x32xf32>
    %213 = vector.extract_strided_slice %194 {offsets = [0, 32], sizes = [16, 32], strides = [1, 1]} : vector<16x384xf32> to vector<16x32xf32>
    %214 = vector.extract_strided_slice %194 {offsets = [0, 160], sizes = [16, 32], strides = [1, 1]} : vector<16x384xf32> to vector<16x32xf32>
    %215 = vector.extract_strided_slice %194 {offsets = [0, 288], sizes = [16, 32], strides = [1, 1]} : vector<16x384xf32> to vector<16x32xf32>
    %cst_96 = arith.constant dense<0.000000e+00> : vector<16x16xf32>
    %216 = tpu.matmul %213, %214, %cst_96 {dimension_numbers = #tpu.dot_dimension_numbers<[1], [1], [0], [0], [0, 0, 1, 0], [], []>} : vector<16x32xf32>, vector<16x32xf32>, vector<16x16xf32> -> vector<16x16xf32>
    %cst_97 = arith.constant 0.176776692 : f32
    %217 = vector.broadcast %cst_97 : f32 to vector<16x16xf32>
    %218 = arith.mulf %216, %217 : vector<16x16xf32>
    %219 = arith.addf %218, %0 : vector<16x16xf32>
    %cst_98 = arith.constant dense<0xFF800000> : vector<16xf32>
    %220 = vector.multi_reduction <maximumf>, %219, %cst_98 [1] : vector<16x16xf32> to vector<16xf32>
    %221 = vector.shape_cast %220 : vector<16xf32> to vector<16x1xf32>
    %222 = vector.broadcast %221 : vector<16x1xf32> to vector<16x16xf32>
    %223 = arith.subf %219, %222 : vector<16x16xf32>
    %224 = math.exp %223 : vector<16x16xf32>
    %cst_99 = arith.constant dense<0.000000e+00> : vector<16xf32>
    %225 = vector.multi_reduction <add>, %224, %cst_99 [1] : vector<16x16xf32> to vector<16xf32>
    %226 = vector.shape_cast %225 : vector<16xf32> to vector<16x1xf32>
    %227 = tpu.reciprocal %226 {approx = true} : vector<16x1xf32> -> vector<16x1xf32>
    %228 = vector.broadcast %227 : vector<16x1xf32> to vector<16x16xf32>
    %229 = arith.mulf %224, %228 : vector<16x16xf32>
    %cst_100 = arith.constant dense<0.000000e+00> : vector<16x32xf32>
    %230 = tpu.matmul %229, %215, %cst_100 {dimension_numbers = #tpu.dot_dimension_numbers<[1], [0], [0], [1], [0, 0, 1, 1], [], []>} : vector<16x16xf32>, vector<16x32xf32>, vector<16x32xf32> -> vector<16x32xf32>
    %231 = vector.extract_strided_slice %194 {offsets = [0, 64], sizes = [16, 32], strides = [1, 1]} : vector<16x384xf32> to vector<16x32xf32>
    %232 = vector.extract_strided_slice %194 {offsets = [0, 192], sizes = [16, 32], strides = [1, 1]} : vector<16x384xf32> to vector<16x32xf32>
    %233 = vector.extract_strided_slice %194 {offsets = [0, 320], sizes = [16, 32], strides = [1, 1]} : vector<16x384xf32> to vector<16x32xf32>
    %cst_101 = arith.constant dense<0.000000e+00> : vector<16x16xf32>
    %234 = tpu.matmul %231, %232, %cst_101 {dimension_numbers = #tpu.dot_dimension_numbers<[1], [1], [0], [0], [0, 0, 1, 0], [], []>} : vector<16x32xf32>, vector<16x32xf32>, vector<16x16xf32> -> vector<16x16xf32>
    %cst_102 = arith.constant 0.176776692 : f32
    %235 = vector.broadcast %cst_102 : f32 to vector<16x16xf32>
    %236 = arith.mulf %234, %235 : vector<16x16xf32>
    %237 = arith.addf %236, %0 : vector<16x16xf32>
    %cst_103 = arith.constant dense<0xFF800000> : vector<16xf32>
    %238 = vector.multi_reduction <maximumf>, %237, %cst_103 [1] : vector<16x16xf32> to vector<16xf32>
    %239 = vector.shape_cast %238 : vector<16xf32> to vector<16x1xf32>
    %240 = vector.broadcast %239 : vector<16x1xf32> to vector<16x16xf32>
    %241 = arith.subf %237, %240 : vector<16x16xf32>
    %242 = math.exp %241 : vector<16x16xf32>
    %cst_104 = arith.constant dense<0.000000e+00> : vector<16xf32>
    %243 = vector.multi_reduction <add>, %242, %cst_104 [1] : vector<16x16xf32> to vector<16xf32>
    %244 = vector.shape_cast %243 : vector<16xf32> to vector<16x1xf32>
    %245 = tpu.reciprocal %244 {approx = true} : vector<16x1xf32> -> vector<16x1xf32>
    %246 = vector.broadcast %245 : vector<16x1xf32> to vector<16x16xf32>
    %247 = arith.mulf %242, %246 : vector<16x16xf32>
    %cst_105 = arith.constant dense<0.000000e+00> : vector<16x32xf32>
    %248 = tpu.matmul %247, %233, %cst_105 {dimension_numbers = #tpu.dot_dimension_numbers<[1], [0], [0], [1], [0, 0, 1, 1], [], []>} : vector<16x16xf32>, vector<16x32xf32>, vector<16x32xf32> -> vector<16x32xf32>
    %249 = vector.extract_strided_slice %194 {offsets = [0, 96], sizes = [16, 32], strides = [1, 1]} : vector<16x384xf32> to vector<16x32xf32>
    %250 = vector.extract_strided_slice %194 {offsets = [0, 224], sizes = [16, 32], strides = [1, 1]} : vector<16x384xf32> to vector<16x32xf32>
    %251 = vector.extract_strided_slice %194 {offsets = [0, 352], sizes = [16, 32], strides = [1, 1]} : vector<16x384xf32> to vector<16x32xf32>
    %cst_106 = arith.constant dense<0.000000e+00> : vector<16x16xf32>
    %252 = tpu.matmul %249, %250, %cst_106 {dimension_numbers = #tpu.dot_dimension_numbers<[1], [1], [0], [0], [0, 0, 1, 0], [], []>} : vector<16x32xf32>, vector<16x32xf32>, vector<16x16xf32> -> vector<16x16xf32>
    %cst_107 = arith.constant 0.176776692 : f32
    %253 = vector.broadcast %cst_107 : f32 to vector<16x16xf32>
    %254 = arith.mulf %252, %253 : vector<16x16xf32>
    %255 = arith.addf %254, %0 : vector<16x16xf32>
    %cst_108 = arith.constant dense<0xFF800000> : vector<16xf32>
    %256 = vector.multi_reduction <maximumf>, %255, %cst_108 [1] : vector<16x16xf32> to vector<16xf32>
    %257 = vector.shape_cast %256 : vector<16xf32> to vector<16x1xf32>
    %258 = vector.broadcast %257 : vector<16x1xf32> to vector<16x16xf32>
    %259 = arith.subf %255, %258 : vector<16x16xf32>
    %260 = math.exp %259 : vector<16x16xf32>
    %cst_109 = arith.constant dense<0.000000e+00> : vector<16xf32>
    %261 = vector.multi_reduction <add>, %260, %cst_109 [1] : vector<16x16xf32> to vector<16xf32>
    %262 = vector.shape_cast %261 : vector<16xf32> to vector<16x1xf32>
    %263 = tpu.reciprocal %262 {approx = true} : vector<16x1xf32> -> vector<16x1xf32>
    %264 = vector.broadcast %263 : vector<16x1xf32> to vector<16x16xf32>
    %265 = arith.mulf %260, %264 : vector<16x16xf32>
    %cst_110 = arith.constant dense<0.000000e+00> : vector<16x32xf32>
    %266 = tpu.matmul %265, %251, %cst_110 {dimension_numbers = #tpu.dot_dimension_numbers<[1], [0], [0], [1], [0, 0, 1, 1], [], []>} : vector<16x16xf32>, vector<16x32xf32>, vector<16x32xf32> -> vector<16x32xf32>
    %267 = tpu.concatenate %212, %230, %248, %266 in 1 : vector<16x32xf32>, vector<16x32xf32>, vector<16x32xf32>, vector<16x32xf32> -> vector<16x128xf32>
    %c1_111 = arith.constant 1 : index
    %c0_112 = arith.constant 0 : index
    %c0_113 = arith.constant 0 : index
    %268 = vector.load %arg6[%c1_111, %c0_112, %c0_113] : memref<2x128x128xf32, #tpu.memory_space<vmem>>, vector<1x128x128xf32>
    %269 = vector.shape_cast %268 : vector<1x128x128xf32> to vector<128x128xf32>
    %cst_114 = arith.constant dense<0.000000e+00> : vector<16x128xf32>
    %270 = tpu.matmul %267, %269, %cst_114 {dimension_numbers = #tpu.dot_dimension_numbers<[1], [0], [0], [1], [0, 0, 1, 1], [], []>} : vector<16x128xf32>, vector<128x128xf32>, vector<16x128xf32> -> vector<16x128xf32>
    %c1_115 = arith.constant 1 : index
    %c0_116 = arith.constant 0 : index
    %c0_117 = arith.constant 0 : index
    %271 = vector.load %arg7[%c1_115, %c0_116, %c0_117] : memref<2x1x128xf32, #tpu.memory_space<vmem>>, vector<1x1x128xf32>
    %272 = vector.shape_cast %271 : vector<1x1x128xf32> to vector<1x128xf32>
    %273 = vector.broadcast %272 : vector<1x128xf32> to vector<16x128xf32>
    %274 = arith.addf %270, %273 : vector<16x128xf32>
    %275 = arith.addf %274, %187 : vector<16x128xf32>
    %c1_118 = arith.constant 1 : index
    %c0_119 = arith.constant 0 : index
    %c0_120 = arith.constant 0 : index
    %276 = vector.load %arg8[%c1_118, %c0_119, %c0_120] : memref<2x1x128xf32, #tpu.memory_space<vmem>>, vector<1x1x128xf32>
    %277 = vector.shape_cast %276 : vector<1x1x128xf32> to vector<1x128xf32>
    %c1_121 = arith.constant 1 : index
    %c0_122 = arith.constant 0 : index
    %c0_123 = arith.constant 0 : index
    %278 = vector.load %arg9[%c1_121, %c0_122, %c0_123] : memref<2x1x128xf32, #tpu.memory_space<vmem>>, vector<1x1x128xf32>
    %279 = vector.shape_cast %278 : vector<1x1x128xf32> to vector<1x128xf32>
    %cst_124 = arith.constant dense<0.000000e+00> : vector<16xf32>
    %280 = vector.multi_reduction <add>, %275, %cst_124 [1] : vector<16x128xf32> to vector<16xf32>
    %281 = vector.shape_cast %280 : vector<16xf32> to vector<16x1xf32>
    %cst_125 = arith.constant 1.280000e+02 : f32
    %282 = vector.broadcast %cst_125 : f32 to vector<16x1xf32>
    %283 = arith.divf %281, %282 : vector<16x1xf32>
    %284 = vector.broadcast %283 : vector<16x1xf32> to vector<16x128xf32>
    %285 = arith.subf %275, %284 : vector<16x128xf32>
    %286 = arith.mulf %285, %285 : vector<16x128xf32>
    %cst_126 = arith.constant dense<0.000000e+00> : vector<16xf32>
    %287 = vector.multi_reduction <add>, %286, %cst_126 [1] : vector<16x128xf32> to vector<16xf32>
    %288 = vector.shape_cast %287 : vector<16xf32> to vector<16x1xf32>
    %cst_127 = arith.constant 1.280000e+02 : f32
    %289 = vector.broadcast %cst_127 : f32 to vector<16x1xf32>
    %290 = arith.divf %288, %289 : vector<16x1xf32>
    %cst_128 = arith.constant 9.99999974E-6 : f32
    %291 = vector.broadcast %cst_128 : f32 to vector<16x1xf32>
    %292 = arith.addf %290, %291 : vector<16x1xf32>
    %293 = math.rsqrt %292 : vector<16x1xf32>
    %294 = vector.broadcast %293 : vector<16x1xf32> to vector<16x128xf32>
    %295 = arith.mulf %285, %294 : vector<16x128xf32>
    %296 = vector.broadcast %277 : vector<1x128xf32> to vector<16x128xf32>
    %297 = arith.mulf %295, %296 : vector<16x128xf32>
    %298 = vector.broadcast %279 : vector<1x128xf32> to vector<16x128xf32>
    %299 = arith.addf %297, %298 : vector<16x128xf32>
    %c1_129 = arith.constant 1 : index
    %c0_130 = arith.constant 0 : index
    %c0_131 = arith.constant 0 : index
    %300 = vector.load %arg10[%c1_129, %c0_130, %c0_131] : memref<2x128x512xf32, #tpu.memory_space<vmem>>, vector<1x128x512xf32>
    %301 = vector.shape_cast %300 : vector<1x128x512xf32> to vector<128x512xf32>
    %cst_132 = arith.constant dense<0.000000e+00> : vector<16x512xf32>
    %302 = tpu.matmul %299, %301, %cst_132 {dimension_numbers = #tpu.dot_dimension_numbers<[1], [0], [0], [1], [0, 0, 1, 1], [], []>} : vector<16x128xf32>, vector<128x512xf32>, vector<16x512xf32> -> vector<16x512xf32>
    %c1_133 = arith.constant 1 : index
    %c0_134 = arith.constant 0 : index
    %c0_135 = arith.constant 0 : index
    %303 = vector.load %arg11[%c1_133, %c0_134, %c0_135] : memref<2x1x512xf32, #tpu.memory_space<vmem>>, vector<1x1x512xf32>
    %304 = vector.shape_cast %303 : vector<1x1x512xf32> to vector<1x512xf32>
    %305 = vector.broadcast %304 : vector<1x512xf32> to vector<16x512xf32>
    %306 = arith.addf %302, %305 : vector<16x512xf32>
    %cst_136 = arith.constant 5.000000e-01 : f32
    %307 = vector.broadcast %cst_136 : f32 to vector<16x512xf32>
    %308 = arith.mulf %307, %306 : vector<16x512xf32>
    %cst_137 = arith.constant 4.471500e-02 : f32
    %309 = vector.broadcast %cst_137 : f32 to vector<16x512xf32>
    %310 = arith.mulf %309, %306 : vector<16x512xf32>
    %311 = arith.mulf %310, %306 : vector<16x512xf32>
    %312 = arith.mulf %311, %306 : vector<16x512xf32>
    %313 = arith.addf %306, %312 : vector<16x512xf32>
    %cst_138 = arith.constant 0.797884583 : f32
    %314 = vector.broadcast %cst_138 : f32 to vector<16x512xf32>
    %315 = arith.mulf %314, %313 : vector<16x512xf32>
    %316 = math.tanh %315 : vector<16x512xf32>
    %cst_139 = arith.constant 1.000000e+00 : f32
    %317 = vector.broadcast %cst_139 : f32 to vector<16x512xf32>
    %318 = arith.addf %317, %316 : vector<16x512xf32>
    %319 = arith.mulf %308, %318 : vector<16x512xf32>
    %c1_140 = arith.constant 1 : index
    %c0_141 = arith.constant 0 : index
    %c0_142 = arith.constant 0 : index
    %320 = vector.load %arg12[%c1_140, %c0_141, %c0_142] : memref<2x512x128xf32, #tpu.memory_space<vmem>>, vector<1x512x128xf32>
    %321 = vector.shape_cast %320 : vector<1x512x128xf32> to vector<512x128xf32>
    %cst_143 = arith.constant dense<0.000000e+00> : vector<16x128xf32>
    %322 = tpu.matmul %319, %321, %cst_143 {dimension_numbers = #tpu.dot_dimension_numbers<[1], [0], [0], [1], [0, 0, 1, 1], [], []>} : vector<16x512xf32>, vector<512x128xf32>, vector<16x128xf32> -> vector<16x128xf32>
    %c1_144 = arith.constant 1 : index
    %c0_145 = arith.constant 0 : index
    %c0_146 = arith.constant 0 : index
    %323 = vector.load %arg13[%c1_144, %c0_145, %c0_146] : memref<2x1x128xf32, #tpu.memory_space<vmem>>, vector<1x1x128xf32>
    %324 = vector.shape_cast %323 : vector<1x1x128xf32> to vector<1x128xf32>
    %325 = vector.broadcast %324 : vector<1x128xf32> to vector<16x128xf32>
    %326 = arith.addf %322, %325 : vector<16x128xf32>
    %327 = arith.addf %326, %299 : vector<16x128xf32>
    %c1_147 = arith.constant 1 : index
    %c0_148 = arith.constant 0 : index
    %c0_149 = arith.constant 0 : index
    %328 = vector.load %arg14[%c1_147, %c0_148, %c0_149] : memref<2x1x128xf32, #tpu.memory_space<vmem>>, vector<1x1x128xf32>
    %329 = vector.shape_cast %328 : vector<1x1x128xf32> to vector<1x128xf32>
    %c1_150 = arith.constant 1 : index
    %c0_151 = arith.constant 0 : index
    %c0_152 = arith.constant 0 : index
    %330 = vector.load %arg15[%c1_150, %c0_151, %c0_152] : memref<2x1x128xf32, #tpu.memory_space<vmem>>, vector<1x1x128xf32>
    %331 = vector.shape_cast %330 : vector<1x1x128xf32> to vector<1x128xf32>
    %cst_153 = arith.constant dense<0.000000e+00> : vector<16xf32>
    %332 = vector.multi_reduction <add>, %327, %cst_153 [1] : vector<16x128xf32> to vector<16xf32>
    %333 = vector.shape_cast %332 : vector<16xf32> to vector<16x1xf32>
    %cst_154 = arith.constant 1.280000e+02 : f32
    %334 = vector.broadcast %cst_154 : f32 to vector<16x1xf32>
    %335 = arith.divf %333, %334 : vector<16x1xf32>
    %336 = vector.broadcast %335 : vector<16x1xf32> to vector<16x128xf32>
    %337 = arith.subf %327, %336 : vector<16x128xf32>
    %338 = arith.mulf %337, %337 : vector<16x128xf32>
    %cst_155 = arith.constant dense<0.000000e+00> : vector<16xf32>
    %339 = vector.multi_reduction <add>, %338, %cst_155 [1] : vector<16x128xf32> to vector<16xf32>
    %340 = vector.shape_cast %339 : vector<16xf32> to vector<16x1xf32>
    %cst_156 = arith.constant 1.280000e+02 : f32
    %341 = vector.broadcast %cst_156 : f32 to vector<16x1xf32>
    %342 = arith.divf %340, %341 : vector<16x1xf32>
    %cst_157 = arith.constant 9.99999974E-6 : f32
    %343 = vector.broadcast %cst_157 : f32 to vector<16x1xf32>
    %344 = arith.addf %342, %343 : vector<16x1xf32>
    %345 = math.rsqrt %344 : vector<16x1xf32>
    %346 = vector.broadcast %345 : vector<16x1xf32> to vector<16x128xf32>
    %347 = arith.mulf %337, %346 : vector<16x128xf32>
    %348 = vector.broadcast %329 : vector<1x128xf32> to vector<16x128xf32>
    %349 = arith.mulf %347, %348 : vector<16x128xf32>
    %350 = vector.broadcast %331 : vector<1x128xf32> to vector<16x128xf32>
    %351 = arith.addf %349, %350 : vector<16x128xf32>
    %352 = vector.extract_strided_slice %351 {offsets = [7, 0], sizes = [1, 128], strides = [1, 1]} : vector<16x128xf32> to vector<1x128xf32>
    %353 = vector.extract_strided_slice %351 {offsets = [15, 0], sizes = [1, 128], strides = [1, 1]} : vector<16x128xf32> to vector<1x128xf32>
    %354 = tpu.concatenate %352, %353 in 0 : vector<1x128xf32>, vector<1x128xf32> -> vector<2x128xf32>
    %c0_158 = arith.constant 0 : index
    %c0_159 = arith.constant 0 : index
    %355 = vector.load %arg16[%c0_158, %c0_159] : memref<128x1xf32, #tpu.memory_space<vmem>>, vector<128x1xf32>
    %cst_160 = arith.constant dense<0.000000e+00> : vector<2x1xf32>
    %356 = tpu.matmul %354, %355, %cst_160 {dimension_numbers = #tpu.dot_dimension_numbers<[1], [0], [0], [1], [0, 0, 1, 1], [], []>} : vector<2x128xf32>, vector<128x1xf32>, vector<2x1xf32> -> vector<2x1xf32>
    %c0_161 = arith.constant 0 : index
    %c0_162 = arith.constant 0 : index
    %357 = vector.load %arg17[%c0_161, %c0_162] : memref<1x1xf32, #tpu.memory_space<vmem>>, vector<1x1xf32>
    %358 = vector.broadcast %357 : vector<1x1xf32> to vector<2x1xf32>
    %359 = arith.addf %356, %358 : vector<2x1xf32>
    %cst_163 = arith.constant 0.000000e+00 : f32
    %360 = vector.broadcast %cst_163 : f32 to vector<2x1xf32>
    %361 = arith.subf %360, %359 : vector<2x1xf32>
    %362 = math.exp %361 : vector<2x1xf32>
    %cst_164 = arith.constant 1.000000e+00 : f32
    %363 = vector.broadcast %cst_164 : f32 to vector<2x1xf32>
    %364 = arith.addf %363, %362 : vector<2x1xf32>
    %cst_165 = arith.constant 1.000000e+00 : f32
    %365 = vector.broadcast %cst_165 : f32 to vector<2x1xf32>
    %366 = arith.divf %365, %364 : vector<2x1xf32>
    %c0_166 = arith.constant 0 : index
    %c0_167 = arith.constant 0 : index
    %367 = vector.load %arg19[%c0_166, %c0_167] : memref<2x1xf32, #tpu.memory_space<vmem>>, vector<2x1xf32>
    tpu.vector_store %arg19[%c0_166, %c0_167], %366 {strides = array<i32>} : memref<2x1xf32, #tpu.memory_space<vmem>>, vector<2x1xf32>,
    %cst_168 = arith.constant 1.000000e+00 : f32
    %cst_169 = arith.constant 1.000000e-07 : f32
    %368 = arith.subf %cst_168, %cst_169 : f32
    %cst_170 = arith.constant 1.000000e-07 : f32
    %369 = vector.broadcast %cst_170 : f32 to vector<2x1xf32>
    %370 = arith.maximumf %369, %366 : vector<2x1xf32>
    %371 = vector.broadcast %368 : f32 to vector<2x1xf32>
    %372 = arith.minimumf %371, %370 : vector<2x1xf32>
    %c0_171 = arith.constant 0 : index
    %c0_172 = arith.constant 0 : index
    %373 = vector.load %arg18[%c0_171, %c0_172] : memref<2x1xf32, #tpu.memory_space<vmem>>, vector<2x1xf32>
    %374 = math.log %372 : vector<2x1xf32>
    %375 = arith.mulf %373, %374 : vector<2x1xf32>
    %cst_173 = arith.constant 1.000000e+00 : f32
    %376 = vector.broadcast %cst_173 : f32 to vector<2x1xf32>
    %377 = arith.subf %376, %373 : vector<2x1xf32>
    %cst_174 = arith.constant 1.000000e+00 : f32
    %378 = vector.broadcast %cst_174 : f32 to vector<2x1xf32>
    %379 = arith.subf %378, %372 : vector<2x1xf32>
    %380 = math.log %379 : vector<2x1xf32>
    %381 = arith.mulf %377, %380 : vector<2x1xf32>
    %382 = arith.addf %375, %381 : vector<2x1xf32>
    %cst_175 = arith.constant 0.000000e+00 : f32
    %383 = vector.broadcast %cst_175 : f32 to vector<2x1xf32>
    %384 = arith.subf %383, %382 : vector<2x1xf32>
    %cst_176 = arith.constant dense<0.000000e+00> : vector<1xf32>
    %385 = vector.multi_reduction <add>, %384, %cst_176 [0] : vector<2x1xf32> to vector<1xf32>
    %386 = vector.shape_cast %385 : vector<1xf32> to vector<1x1xf32>
    %cst_177 = arith.constant 2.000000e+00 : f32
    %387 = vector.broadcast %cst_177 : f32 to vector<1x1xf32>
    %388 = arith.divf %386, %387 : vector<1x1xf32>
    %c0_178 = arith.constant 0 : index
    %c0_179 = arith.constant 0 : index
    %389 = vector.load %arg20[%c0_178, %c0_179] : memref<1x1xf32, #tpu.memory_space<vmem>>, vector<1x1xf32>
    tpu.vector_store %arg20[%c0_178, %c0_179], %388 {strides = array<i32>} : memref<1x1xf32, #tpu.memory_space<vmem>>, vector<1x1xf32>,
    return
  }
}

</mosaic_0001>

<bundles_post_ra>
// kernel: bert_model_forward.1
= control target key start
LH: loop header
LB: loop body
LE: loop exit
PB: predicated region body
PF: predicated region fallthrough
CT: control target
= control target key end

     0   :  { %s5683_s0 = inlined_call_operand.vmem [shape: f32[16,128], index: 0, kind: input, shape index: {}]   ;;  %s5684_s1 = inlined_call_operand.vmem [shape: f32[16,16], index: 1, kind: input, shape index: {}]   ;;  %s5685_s2 = inlined_call_operand.vmem [shape: f32[1,128], index: 2, kind: input, shape index: {}]   ;;  %s5686_s3 = inlined_call_operand.vmem [shape: f32[1,128], index: 3, kind: input, shape index: {}]   ;;  %s5687_s4 = inlined_call_operand.hbm [shape: f32[2,128,384], index: 4, kind: input, shape index: {}]   ;;  %s5688_s5 = inlined_call_operand.vmem [shape: f32[2,1,384], index: 5, kind: input, shape index: {}]   ;;  %s5689_s6 = inlined_call_operand.vmem [shape: f32[2,128,128], index: 6, kind: input, shape index: {}]   ;;  %s5690_s7 = inlined_call_operand.vmem [shape: f32[2,1,128], index: 7, kind: input, shape index: {}]   ;;  %s5691_s8 = inlined_call_operand.vmem [shape: f32[2,1,128], index: 8, kind: input, shape index: {}]   ;;  %s5692_s9 = inlined_call_operand.vmem [shape: f32[2,1,128], index: 9, kind: input, shape index: {}]   ;;  %s5693_s10 = inlined_call_operand.hbm [shape: f32[2,128,512], index: 10, kind: input, shape index: {}]   ;;  %s5694_s11 = inlined_call_operand.vmem [shape: f32[2,1,512], index: 11, kind: input, shape index: {}]   ;;  %s5695_s12 = inlined_call_operand.hbm [shape: f32[2,512,128], index: 12, kind: input, shape index: {}]   ;;  %s5696_s13 = inlined_call_operand.vmem [shape: f32[2,1,128], index: 13, kind: input, shape index: {}]   ;;  %s5697_s14 = inlined_call_operand.vmem [shape: f32[2,1,128], index: 14, kind: input, shape index: {}]   ;;  %s5698_s15 = inlined_call_operand.vmem [shape: f32[2,1,128], index: 15, kind: input, shape index: {}]   ;;  %s5699_s16 = inlined_call_operand.vmem [shape: f32[128,1], index: 16, kind: input, shape index: {}]   ;;  %s5700_s17 = inlined_call_operand.<no memory space> [shape: f32[1,1], index: 17, kind: input, shape index: {}]   ;;  %s5701_s18 = inlined_call_operand.vmem [shape: f32[2,1], index: 18, kind: input, shape index: {}]   ;;  %s5702_s19 = inlined_call_operand.hbm [shape: f32[2,1], index: 19, kind: output, shape index: {0}]   ;;  %s5703_s20 = inlined_call_operand.hbm [shape: f32[1,1], index: 20, kind: output, shape index: {1}]  }
   0x1   :  { %5706 = sst [smem:[#allocation16_spill]] %s5683_s0  ;;  %v26_v0 = vstv %s5700_s17 }
   0x2   :  { %5707 = sst [smem:[#allocation17_spill]] %s5684_s1  ;;  %27 = vst [vmem:[#allocation2] sm:$0x1] %v26_v0 }
   0x3   :  { %5708 = sst [smem:[#allocation18_spill]] %s5685_s2 }
   0x4   :  { %5709 = sst [smem:[#allocation19_spill]] %s5686_s3 }
   0x5   :  { %5710 = sst [smem:[#allocation20_spill]] %s5687_s4 }
   0x6   :  { %28 = vsyncpa [#allocation4], 0 }
   0x7   :  { %29 = vsyncpa [#allocation7], 0 }
   0x8   :  { %30 = vsyncpa [#allocation5], 0 }
   0x9   :  { %31 = vsyncpa [#allocation11], 0  ;;  %s4831_s23 = smov [#allocation6]  }
   0xa   :  { %s67_s24 = sshll.u32 %s4831_s23, 4  ;;  %s68_s24 = int_to_ptr.vmem [resolvable:$true] %s67_s24 }
   0xb   :  { %s4731_s2 = scalar_lea.vmem %s68_s24, 16384  ;;  %p4736_p1 = scmp.lt.s32.totalorder %s68_s24, %s68_s24 }
   0xc   :  { %p4732_p0 = scmp.ne.s32.totalorder %s68_s24, %s4731_s2  ;;  %p4737_p2 = scmp.lt.s32.totalorder %s4731_s2, %s4731_s2 }
   0xe   :  { %p4738_p3 = por %p4737_p2, %p4736_p1 }
  0x10   :  { %p4739_p4 = pnand %p4738_p3, %p4732_p0 }
  0x12   :  { %4742 = shalt.err (!%p4739_p4)
}
  0x13   :  { %s4832_s25 = smov 512   ;;  %s4833_s3 = smov 32  }
  0x14   :  { %73 = dma.hbm_to_vmem [thread:$0]  %s5693_s10, 16384, %s68_s24, [#allocation7], %s4832_s25, %s4832_s25, %s4833_s3  }
  0x15   :  { %s4834_s27 = smov [#allocation3]  }
  0x16   :  { %s45_s28 = sshll.u32 %s4834_s27, 4  ;;  %s46_s28 = int_to_ptr.vmem [resolvable:$true] %s45_s28 }
  0x17   :  { %s4751_s4 = scalar_lea.vmem %s46_s28, 12288  ;;  %p4756_p6 = scmp.lt.s32.totalorder %s46_s28, %s46_s28 }
  0x18   :  { %p4752_p5 = scmp.ne.s32.totalorder %s46_s28, %s4751_s4  ;;  %p4757_p7 = scmp.lt.s32.totalorder %s4751_s4, %s4751_s4 }
  0x1a   :  { %p4758_p8 = por %p4757_p7, %p4756_p6 }
  0x1c   :  { %p4759_p9 = pnand %p4758_p8, %p4752_p5 }
  0x1e   :  { %4762 = shalt.err (!%p4759_p9)
}
  0x1f   :  { %s4835_s29 = smov 384   ;;  %s4836_s30 = smov 24  }
  0x20   :  { %s5711_s1 = sld [smem:[#allocation20_spill]]  ;;  %s4837_s22 = smov [#allocation8]  }
  0x21   :  { %s81_s23 = sshll.u32 %s4837_s22, 4  ;;  %s82_s23 = int_to_ptr.vmem [resolvable:$true] %s81_s23 }
  0x22   :  { %s4771_s10 = scalar_lea.vmem %s82_s23, 16384  ;;  %p4776_p11 = scmp.lt.s32.totalorder %s82_s23, %s82_s23 }
  0x23   :  { %p4772_p10 = scmp.ne.s32.totalorder %s82_s23, %s4771_s10  ;;  %p4777_p12 = scmp.lt.s32.totalorder %s4771_s10, %s4771_s10 }
  0x25   :  { %p4778_p13 = por %p4777_p12, %p4776_p11 }
  0x26   :  { %51 = dma.hbm_to_vmem [thread:$0]  %s5711_s1, 12288, %s46_s28, [#allocation4], %s4835_s29, %s4835_s29, %s4836_s30  }
  0x27   :  { %p4779_p0 = pnand %p4778_p13, %p4772_p10 }
  0x29   :  { %4782 = shalt.err (!%p4779_p0)
}
  0x2a   :  { %s4838_s24 = smov 128   ;;  %s4839_s2 = smov 8  }
  0x2b   :  { %87 = dma.hbm_to_vmem [thread:$0]  %s5695_s12, 16384, %s82_s23, [#allocation7], %s4838_s24, %s4838_s24, %s4839_s2  }
  0x2c   :  { %4823 = dma.done.wait [#allocation4], 12288  }
  0x2d   :  { %4824 = vsyncadd [#allocation4], 4294955008 }
  0x2e   :  { %4825 = dma.done.wait [#allocation7], 32768  }
  0x2f   :  { %4826 = vsyncadd [#allocation7], 4294934528  ;;  %s5712_s28 = sld [smem:[#allocation16_spill]]  ;;  %v200_v3 = vld [vmem:[#allocation3 + $0x170] sm:$0xff]  ;;  %v199_v4 = vld [vmem:[#allocation3 + $0x168] sm:$0xff]  ;;  %v4840_v57 = vmov 0.0  }
  0x30   :  { %v197_v5 = vld [vmem:[#allocation3 + $0x158] sm:$0xff]  ;;  %219 = vmatprep.subr.mxu0 %v200_v3  ;;  %v196_v6 = vld [vmem:[#allocation3 + $0x150] sm:$0xff]  ;;  %v194_v8 = vld [vmem:[#allocation3 + $0x140] sm:$0xff]  ;;  %283 = vmatprep.mubr.f32.mxu0 %v4840_v57  ;;  %s5713_s0 = sld [smem:[#allocation18_spill]]  ;;  %vm371_vm0 = vcmask 261120   ;;  %vm463_vm1 = vcmask 130048  }
  0x31   :  { %v201_v7 = vld [vmem:[#allocation3 + $0x178] sm:$0xff]  ;;  %220 = vmatpush1.msra.mxu0 %v199_v4  ;;  %v198_v9 = vld [vmem:[#allocation3 + $0x160] sm:$0xff]  ;;  %v191_v11 = vld [vmem:[#allocation3 + $0x128] sm:$0xff]  ;;  %s5714_s22 = sld [smem:[#allocation19_spill]]  ;;  %s4841_s27 = smov 96   ;;  %vm1207_vm2 = vcmask 523264  }
  0x32   :  { %4265 = vmatprep.subr.mxu1 %v201_v7  ;;  %221 = vmatprep.subr.mxu0 %v197_v5  ;;  %v193_v10 = vld [vmem:[#allocation3 + $0x138] sm:$0xff]  ;;  %v190_v12 = vld [vmem:[#allocation3 + $0x120] sm:$0xff]  ;;  %v188_v21 = vld [vmem:[#allocation3 + $0x110] sm:$0xff]  ;;  %s5715_s25 = sld [smem:[#allocation17_spill]]  ;;  %vm1210_vm3 = vcmask 785408   ;;  %vm4843_vm4 = vmmov 0  }
  0x33   :  { %4266 = vmatpush3.msra.mxu1 %v201_v7  ;;  %222 = vmatpush1.msra.mxu0 %v196_v6  ;;  %v195_v22 = vld [vmem:[#allocation3 + $0x148] sm:$0xff]  ;;  %v185_v24 = vld [vmem:[#allocation3 + $0xf8] sm:$0xff]  ;;  %v192_v25 = vld [vmem:[#allocation3 + $0x130] sm:$0xff]  ;;  %vm3716_vm5 = vcmask 1040384   ;;  %vm3817_vm6 = vcmask 1024  }
  0x34   :  { %4267 = vmatprep.subr.mxu1 %v198_v9  ;;  %223 = vmatprep.subr.mxu0 %v194_v8  ;;  %v187_v23 = vld [vmem:[#allocation3 + $0x108] sm:$0xff]  ;;  %v184_v26 = vld [vmem:[#allocation3 + $0xf0] sm:$0xff]  ;;  %v182_v27 = vld [vmem:[#allocation3 + $0xe0] sm:$0xff] }
  0x35   :  { %v111_v1 = vld [vmem:[%s5712_s28] sm:$0xff]  ;;  %v112_v2 = vld [vmem:[%s5712_s28 + $0x8] sm:$0xff]  ;;  %4268 = vmatpush3.msra.mxu1 %v198_v9  ;;  %224 = vmatpush1.msra.mxu0 %v193_v10  ;;  %v176_v33 = vld [vmem:[#allocation3 + $0xb0] sm:$0xff]  ;;  %s4842_s28 = smov 64  }
  0x36   :  { %115 = vadd.xlane.f32.xlu0 %v111_v1  ;;  %225 = vmatprep.subr.mxu0 %v191_v11  ;;  %v189_v28 = vld [vmem:[#allocation3 + $0x118] sm:$0xff]  ;;  %v179_v30 = vld [vmem:[#allocation3 + $0xc8] sm:$0xff]  ;;  %v186_v31 = vld [vmem:[#allocation3 + $0x100] sm:$0xff] }
  0x37   :  { %226 = vmatpush1.msra.mxu0 %v190_v12  ;;  %4269 = vmatprep.subr.mxu1 %v195_v22  ;;  %v181_v29 = vld [vmem:[#allocation3 + $0xd8] sm:$0xff]  ;;  %v178_v32 = vld [vmem:[#allocation3 + $0xc0] sm:$0xff]  ;;  %v183_v34 = vld [vmem:[#allocation3 + $0xe8] sm:$0xff]  ;;  %v204_v12 = vlaneseq }
  0x38   :  { %227 = vmatprep.subr.mxu0 %v188_v21  ;;  %4270 = vmatpush3.msra.mxu1 %v195_v22  ;;  %v175_v35 = vld [vmem:[#allocation3 + $0xa8] sm:$0xff]  ;;  %v173_v36 = vld [vmem:[#allocation3 + $0x98] sm:$0xff]  ;;  %v180_v37 = vld [vmem:[#allocation3 + $0xd0] sm:$0xff] }
  0x39   :  { %228 = vmatpush1.msra.mxu0 %v187_v23  ;;  %4271 = vmatprep.subr.mxu1 %v192_v25  ;;  %v172_v38 = vld [vmem:[#allocation3 + $0x90] sm:$0xff]  ;;  %v170_v39 = vld [vmem:[#allocation3 + $0x80] sm:$0xff]  ;;  %v177_v40 = vld [vmem:[#allocation3 + $0xb8] sm:$0xff] }
  0x3a   :  { %117 = vadd.xlane.f32.xlu0 %v112_v2  ;;  %229 = vmatprep.subr.mxu0 %v185_v24  ;;  %v169_v41 = vld [vmem:[#allocation3 + $0x78] sm:$0xff]  ;;  %v167_v42 = vld [vmem:[#allocation3 + $0x68] sm:$0xff]  ;;  %v174_v43 = vld [vmem:[#allocation3 + $0xa0] sm:$0xff] }
  0x3b   :  { %230 = vmatpush1.msra.mxu0 %v184_v26  ;;  %4272 = vmatpush3.msra.mxu1 %v192_v25  ;;  %v166_v44 = vld [vmem:[#allocation3 + $0x60] sm:$0xff]  ;;  %v164_v45 = vld [vmem:[#allocation3 + $0x50] sm:$0xff]  ;;  %v171_v46 = vld [vmem:[#allocation3 + $0x88] sm:$0xff] }
  0x3c   :  { %231 = vmatprep.subr.mxu0 %v182_v27  ;;  %4273 = vmatprep.subr.mxu1 %v189_v28  ;;  %v163_v47 = vld [vmem:[#allocation3 + $0x48] sm:$0xff]  ;;  %v161_v48 = vld [vmem:[#allocation3 + $0x38] sm:$0xff]  ;;  %v168_v49 = vld [vmem:[#allocation3 + $0x70] sm:$0xff] }
  0x3d   :  { %232 = vmatpush1.msra.mxu0 %v181_v29  ;;  %4274 = vmatpush3.msra.mxu1 %v189_v28  ;;  %v160_v50 = vld [vmem:[#allocation3 + $0x30] sm:$0xff]  ;;  %v158_v51 = vld [vmem:[#allocation3 + $0x20] sm:$0xff]  ;;  %v165_v52 = vld [vmem:[#allocation3 + $0x58] sm:$0xff] }
  0x3e   :  { %233 = vmatprep.subr.mxu0 %v179_v30  ;;  %4275 = vmatprep.subr.mxu1 %v186_v31  ;;  %v157_v53 = vld [vmem:[#allocation3 + $0x18] sm:$0xff]  ;;  %v155_v54 = vld [vmem:[#allocation3 + $0x8] sm:$0xff]  ;;  %v162_v55 = vld [vmem:[#allocation3 + $0x40] sm:$0xff] }
  0x3f   :  { %234 = vmatpush1.msra.mxu0 %v178_v32  ;;  %4276 = vmatpush3.msra.mxu1 %v186_v31  ;;  %v154_v56 = vld [vmem:[#allocation3] sm:$0xff]  ;;  %v159_v58 = vld [vmem:[#allocation3 + $0x28] sm:$0xff]  ;;  %v156_v59 = vld [vmem:[#allocation3 + $0x10] sm:$0xff] }
  0x40   :  { %235 = vmatprep.subr.mxu0 %v176_v33  ;;  %4277 = vmatprep.subr.mxu1 %v183_v34  ;;  %v3873_v3 = vld [vmem:[%s5713_s0] ss:$0 sm:$0xff] }
  0x41   :  { %236 = vmatpush1.msra.mxu0 %v175_v35  ;;  %4278 = vmatpush3.msra.mxu1 %v183_v34  ;;  %v3874_v5 = vld [vmem:[%s5714_s22] ss:$0 sm:$0xff]  ;;  %v5044_v34 = vld [vmem:[%s5715_s25 + $0x8] sm:$0xff] }
  0x42   :  { %237 = vmatprep.subr.mxu0 %v173_v36  ;;  %4279 = vmatprep.subr.mxu1 %v180_v37 }
  0x43   :  { %238 = vmatpush1.msra.mxu0 %v172_v38  ;;  %4280 = vmatpush3.msra.mxu1 %v180_v37  ;;  %v5049_v37 = vld [vmem:[%s5715_s25] sm:$0xff] }
  0x44   :  { %239 = vmatprep.subr.mxu0 %v170_v39  ;;  %4281 = vmatprep.subr.mxu1 %v177_v40 }
  0x45   :  { %240 = vmatpush1.msra.mxu0 %v169_v41  ;;  %4282 = vmatpush3.msra.mxu1 %v177_v40 }
  0x46   :  { %241 = vmatprep.subr.mxu0 %v167_v42  ;;  %4283 = vmatprep.subr.mxu1 %v174_v43 }
  0x47   :  { %242 = vmatpush1.msra.mxu0 %v166_v44  ;;  %4284 = vmatpush3.msra.mxu1 %v174_v43 }
  0x48   :  { %243 = vmatprep.subr.mxu0 %v164_v45  ;;  %4285 = vmatprep.subr.mxu1 %v171_v46 }
  0x49   :  { %244 = vmatpush1.msra.mxu0 %v163_v47  ;;  %4286 = vmatpush3.msra.mxu1 %v171_v46 }
  0x4a   :  { %245 = vmatprep.subr.mxu0 %v161_v48  ;;  %4287 = vmatprep.subr.mxu1 %v168_v49 }
  0x4b   :  { %246 = vmatpush1.msra.mxu0 %v160_v50  ;;  %4288 = vmatpush3.msra.mxu1 %v168_v49 }
  0x4c   :  { %247 = vmatprep.subr.mxu0 %v158_v51  ;;  %4289 = vmatprep.subr.mxu1 %v165_v52 }
  0x4d   :  { %248 = vmatpush1.msra.mxu0 %v157_v53  ;;  %4290 = vmatpush3.msra.mxu1 %v165_v52 }
  0x4e   :  { %249 = vmatprep.subr.mxu0 %v155_v54  ;;  %4291 = vmatprep.subr.mxu1 %v162_v55 }
  0x4f   :  { %250 = vmatpush1.msra.mxu0 %v154_v56  ;;  %4292 = vmatpush3.msra.mxu1 %v162_v55 }
  0x50   :  { %4293 = vmatprep.subr.mxu1 %v159_v58 }
  0x51   :  { %4294 = vmatpush3.msra.mxu1 %v159_v58 }
  0x52   :  { %4295 = vmatprep.subr.mxu1 %v156_v59 }
  0x53   :  { %4296 = vmatpush3.msra.mxu1 %v156_v59 }
  0xbf   :  { %v116_v13 = vpop.xlane.xlu0 %115 }
  0xc0   :  { %v120_v14 = vmul.f32 0.0078125, %v116_v13  ;;  %v4996_v13 = vshrl.u32 %v204_v12, 7 }
  0xc2   :  { %v4970_v15 = vsub.f32 %v111_v1, %v120_v14  ;;  %v4999_v14 = vsub.s32 0, %v4996_v13 }
  0xc3   :  { %v118_v16 = vpop.xlane.xlu0 %117 }
  0xc4   :  { %v121_v17 = vmul.f32 0.0078125, %v118_v16  ;;  %v124_v18 = vmul.f32 %v4970_v15, %v4970_v15 }
  0xc6   :  { %v4974_v19 = vsub.f32 %v112_v2, %v121_v17  ;;  %126 = vadd.xlane.f32.xlu1 %v124_v18  ;;  %v5006_v17 = vsub.s32 2, %v4996_v13 }
  0xc8   :  { %v125_v20 = vmul.f32 %v4974_v19, %v4974_v19 }
  0xca   :  { %128 = vadd.xlane.f32.xlu1 %v125_v20  ;;  %v5011_v20 = vsub.s32 1, %v4996_v13 }
 0x14f   :  { %v127_v60 = vpop.xlane.xlu1 %126 }
 0x150   :  { %v130_v61 = vmul.f32 0.0078125, %v127_v60 }
 0x152   :  { %v132_v62 = vadd.f32 1e-05, %v130_v61 }
 0x153   :  { %v129_v63 = vpop.xlane.xlu1 %128 }
 0x154   :  { %4597 = vrsqrt.f32 %v132_v62  ;;  %v131_v0 = vmul.f32 0.0078125, %v129_v63 }
 0x156   :  { %v133_v1 = vadd.f32 1e-05, %v131_v0 }
 0x158   :  { %4599 = vrsqrt.f32 %v133_v1 }
 0x161   :  { %v4598_v2 = vpop.eup %4597 }
 0x162   :  { %v136_v4 = vmul.f32 %v4598_v2, %v4970_v15  ;;  %v202_v15 = vld [vmem:[%s5688_s5] sm:$0x7] }
 0x163   :  { %v207_v16 = vrot.slane %v202_v15, %v4999_v14  ;;  %v215_v21 = vrot.slane %v202_v15, %v5006_v17  ;;  %v211_v25 = vrot.slane %v202_v15, %v5011_v20 }
 0x164   :  { %v144_v6 = vmul.f32 %v3873_v3, %v136_v4 }
 0x165   :  { %v4600_v7 = vpop.eup %4599 }
 0x166   :  { %v4986_v8 = vadd.f32 %v3874_v5, %v144_v6  ;;  %v137_v9 = vmul.f32 %v4600_v7, %v4974_v19 }
 0x168   :  { %284 = vmatmul.mubr.f32.vlgmr.msra.gmra.mxu0 %v4986_v8  ;;  %4297 = vmatprep.mubr.f32.mxu1 %v4986_v8  ;;  %v145_v10 = vmul.f32 %v3873_v3, %v137_v9 }
 0x169   :  { %289 = vmatprep.mubr.f32.mxu0 %v4840_v57 }
 0x16a   :  { %v4992_v11 = vadd.f32 %v3874_v5, %v145_v10 }
 0x16c   :  { %290 = vmatmul.mubr.f32.gmra.mxu0 %v4992_v11  ;;  %4298 = vmatmul.mubr.f32.vlgmr.msra.gmra.mxu1 %v4992_v11 }
 0x228   :  { %v285_v18 = vpop.f32.mrf.mxu0 }
 0x229   :  { %v5008_v19 = vadd.f32 %v285_v18, %v207_v16 }
 0x22a   :  { %v287_v22 = vpop.f32.mrf.mxu0 }
 0x22b   :  { %4304 = vmatprep.mubr.msk.f32.mxu0 %vm371_vm0, %v5008_v19  ;;  %v5025_v31 = vadd.f32 %v287_v22, %v211_v25 }
 0x22c   :  { %v291_v23 = vpop.f32.mrf.mxu0  ;;  %v4299_v24 = vpop.f32.mrf.mxu1 }
 0x22d   :  { %v5017_v26 = vadd.f32 %v4299_v24, %v215_v21  ;;  %v5037_v32 = vadd.f32 %v291_v23, %v207_v16 }
 0x22e   :  { %v293_v27 = vpop.f32.mrf.mxu0  ;;  %v362_v28 = vpop.f32.mrf.mxu1 }
 0x22f   :  { %v5019_v29 = vadd.f32 %v293_v27, %v211_v25  ;;  %v5021_v30 = vadd.f32 %v362_v28, %v215_v21  ;;  %4307 = vmatprep.subr.mxu1 %v5017_v26 }
 0x230   :  { %4308 = vmatpush3.msra.mxu1 %v5017_v26 }
 0x231   :  { %4300 = vmatprep.subr.msk.mxu0 %vm371_vm0, %v5019_v29  ;;  %4309 = vmatprep.subr.mxu1 %v5021_v30 }
 0x232   :  { %4301 = vmatpush3.xpose.msk.msra.mxu0 %vm371_vm0, %v5019_v29  ;;  %4310 = vmatpush3.msra.mxu1 %v5021_v30 }
 0x233   :  { %4302 = vmatprep.subr.msk.mxu0 %vm371_vm0, %v5025_v31 }
 0x236   :  { %4303 = vmatpush3.xpose.msk.msra.mxu0 %vm371_vm0, %v5025_v31 }
 0x239   :  { %4305 = vmatmul.mubr.msk.f32.vlgmr.msra.gmra.mxu0 %vm371_vm0, %v5037_v32 }
 0x2f9   :  { %v4306_v33 = vpop.f32.mrf.mxu0 }
 0x2fa   :  { %v460_v35 = vmul.f32 0.17677669, %v4306_v33 }
 0x2fb   :  { %v450_v36 = vpop.f32.mrf.mxu0 }
 0x2fc   :  { %v459_v38 = vmul.f32 0.17677669, %v450_v36  ;;  %v462_v39 = vadd.f32 %v460_v35, %v5044_v34 }
 0x2fe   :  { %v467_v40 = vsel %vm463_vm1, %v462_v39, -inf  ;;  %v461_v41 = vadd.f32 %v459_v38, %v5049_v37 }
 0x2ff   :  { %468 = vmax.xlane.f32.xlu1 %v467_v40 }
 0x300   :  { %v464_v42 = vsel %vm463_vm1, %v461_v41, -inf }
 0x301   :  { %465 = vmax.xlane.f32.xlu0 %v464_v42 }
 0x388   :  { %v469_v43 = vpop.xlane.xlu1 %468 }
 0x389   :  { %v471_v44 = vsub.f32 %v462_v39, %v469_v43 }
 0x38a   :  { %v466_v45 = vpop.xlane.xlu0 %465 }
 0x38b   :  { %v474_v46 = vmul.f32 1.442695, %v471_v44  ;;  %v470_v47 = vsub.f32 %v461_v41, %v466_v45 }
 0x38d   :  { %4601 = vpow2.f32 %v474_v46  ;;  %v472_v48 = vmul.f32 1.442695, %v470_v47 }
 0x38f   :  { %4603 = vpow2.f32 %v472_v48 }
 0x39a   :  { %v4602_v49 = vpop.eup %4601 }
 0x39b   :  { %v479_v50 = vsel %vm463_vm1, %v4602_v49, 0.0 }
 0x39c   :  { %v4604_v51 = vpop.eup %4603  ;;  %480 = vadd.xlane.f32.xlu1 %v479_v50 }
 0x39d   :  { %v476_v52 = vsel %vm463_vm1, %v4604_v51, 0.0 }
 0x39e   :  { %477 = vadd.xlane.f32.xlu0 %v476_v52 }
 0x3ad   :  { %571 = vrot.lane.b32.xlu1 %v5025_v31, %s4841_s27 }
 0x3b1   :  { %567 = vrot.lane.b32.xlu1 %v5008_v19, %s4841_s27 }
 0x3b4   :  { %573 = vrot.lane.b32.xlu0 %v5019_v29, %s4841_s27 }
 0x3b5   :  { %569 = vrot.lane.b32.xlu1 %v5037_v32, %s4841_s27 }
 0x425   :  { %v481_v53 = vpop.xlane.xlu1 %480 }
 0x426   :  { %4605 = vrcp.f32 %v481_v53 }
 0x427   :  { %v478_v54 = vpop.xlane.xlu0 %477 }
 0x428   :  { %4607 = vrcp.f32 %v478_v54 }
 0x429   :  { %v572_v56 = vpop.permute.xlu1 %571 }
 0x42b   :  { %v574_v55 = vpop.permute.xlu0 %573 }
 0x42c   :  { %4314 = vmatprep.subr.msk.mxu1 %vm371_vm0, %v574_v55 }
 0x42d   :  { %v568_v62 = vpop.permute.xlu1 %567 }
 0x431   :  { %v570_v63 = vpop.permute.xlu1 %569 }
 0x433   :  { %v4606_v58 = vpop.eup %4605 }
 0x434   :  { %v485_v61 = vmul.f32 %v4606_v58, %v4602_v49 }
 0x435   :  { %v4608_v59 = vpop.eup %4607 }
 0x436   :  { %v484_v60 = vmul.f32 %v4608_v59, %v4604_v51 }
 0x438   :  { %4311 = vmatprep.mubr.msk.f32.mxu1 %vm463_vm1, %v484_v60 }
 0x439   :  { %4312 = vmatmul.mubr.msk.f32.vlgmr.msra.gmra.mxu1 %vm463_vm1, %v485_v61 }
 0x43a   :  { %4315 = vmatpush3.xpose.msk.msra.mxu1 %vm371_vm0, %v574_v55  ;;  %4318 = vmatprep.mubr.msk.f32.mxu1 %vm371_vm0, %v568_v62 }
 0x43b   :  { %4316 = vmatprep.subr.msk.mxu1 %vm371_vm0, %v572_v56 }
 0x43e   :  { %4317 = vmatpush3.xpose.msk.msra.mxu1 %vm371_vm0, %v572_v56 }
 0x441   :  { %4319 = vmatmul.mubr.msk.f32.vlgmr.msra.gmra.mxu1 %vm371_vm0, %v570_v63 }
 0x4f9   :  { %v5073_v0 = vpop.f32.mrf.mxu1 }
 0x4fb   :  { %v5075_v1 = vpop.f32.mrf.mxu1 }
 0x501   :  { %v4320_v2 = vpop.f32.mrf.mxu1 }
 0x502   :  { %v659_v3 = vmul.f32 0.17677669, %v4320_v2 }
 0x503   :  { %v649_v4 = vpop.f32.mrf.mxu1 }
 0x504   :  { %v658_v5 = vmul.f32 0.17677669, %v649_v4  ;;  %v661_v6 = vadd.f32 %v659_v3, %v5044_v34 }
 0x506   :  { %v665_v7 = vsel %vm463_vm1, %v661_v6, -inf  ;;  %v660_v9 = vadd.f32 %v658_v5, %v5049_v37 }
 0x507   :  { %666 = vmax.xlane.f32.xlu1 %v665_v7 }
 0x508   :  { %v662_v10 = vsel %vm463_vm1, %v660_v9, -inf }
 0x509   :  { %663 = vmax.xlane.f32.xlu0 %v662_v10 }
 0x518   :  { %686 = vrot.lane.b32.xlu1 %v5021_v30, %s4841_s27 }
 0x51c   :  { %779 = vrot.lane.b32.xlu1 %v5019_v29, %s4842_s28 }
 0x520   :  { %777 = vrot.lane.b32.xlu1 %v5025_v31, %s4842_s28 }
 0x524   :  { %775 = vrot.lane.b32.xlu1 %v5037_v32, %s4842_s28 }
 0x590   :  { %v667_v12 = vpop.xlane.xlu1 %666 }
 0x591   :  { %v669_v15 = vsub.f32 %v661_v6, %v667_v12 }
 0x592   :  { %v664_v16 = vpop.xlane.xlu0 %663 }
 0x593   :  { %v672_v18 = vmul.f32 1.442695, %v669_v15  ;;  %v668_v21 = vsub.f32 %v660_v9, %v664_v16 }
 0x594   :  { %v687_v35 = vpop.permute.xlu1 %686 }
 0x595   :  { %4609 = vpow2.f32 %v672_v18  ;;  %v670_v22 = vmul.f32 1.442695, %v668_v21 }
 0x597   :  { %4611 = vpow2.f32 %v670_v22 }
 0x598   :  { %v780_v38 = vpop.permute.xlu1 %779 }
 0x59c   :  { %v778_v44 = vpop.permute.xlu1 %777 }
 0x5a0   :  { %v776_v45 = vpop.permute.xlu1 %775 }
 0x5a2   :  { %v4610_v23 = vpop.eup %4609 }
 0x5a3   :  { %v677_v24 = vsel %vm463_vm1, %v4610_v23, 0.0 }
 0x5a4   :  { %v4612_v25 = vpop.eup %4611  ;;  %678 = vadd.xlane.f32.xlu0 %v677_v24 }
 0x5a5   :  { %v674_v27 = vsel %vm463_vm1, %v4612_v25, 0.0 }
 0x5a8   :  { %675 = vadd.xlane.f32.xlu0 %v674_v27 }
 0x5be   :  { %688 = vrot.lane.b32.xlu0 %v5017_v26, %s4841_s27 }
 0x5c2   :  { %773 = vrot.lane.b32.xlu0 %v5008_v19, %s4842_s28 }
 0x62d   :  { %v679_v28 = vpop.xlane.xlu0 %678 }
 0x62e   :  { %4613 = vrcp.f32 %v679_v28 }
 0x631   :  { %v676_v33 = vpop.xlane.xlu0 %675 }
 0x632   :  { %4615 = vrcp.f32 %v676_v33 }
 0x635   :  { %v689_v36 = vpop.permute.xlu0 %688 }
 0x636   :  { %4321 = vmatprep.subr.mxu0 %v689_v36 }
 0x637   :  { %4322 = vmatpush3.msra.mxu0 %v689_v36 }
 0x638   :  { %4323 = vmatprep.subr.mxu0 %v687_v35 }
 0x639   :  { %4324 = vmatpush3.msra.mxu0 %v687_v35  ;;  %v774_v43 = vpop.permute.xlu0 %773 }
 0x63a   :  { %4328 = vmatprep.subr.msk.mxu0 %vm371_vm0, %v780_v38 }
 0x63b   :  { %v4614_v39 = vpop.eup %4613 }
 0x63c   :  { %v683_v42 = vmul.f32 %v4614_v39, %v4610_v23 }
 0x63f   :  { %v4616_v40 = vpop.eup %4615 }
 0x640   :  { %v682_v41 = vmul.f32 %v4616_v40, %v4612_v25 }
 0x642   :  { %4325 = vmatprep.mubr.msk.f32.mxu0 %vm463_vm1, %v682_v41 }
 0x643   :  { %4326 = vmatmul.mubr.msk.f32.vlgmr.msra.gmra.mxu0 %vm463_vm1, %v683_v42 }
 0x644   :  { %4329 = vmatpush3.xpose.msk.msra.mxu0 %vm371_vm0, %v780_v38  ;;  %4332 = vmatprep.mubr.msk.f32.mxu0 %vm371_vm0, %v774_v43 }
 0x645   :  { %4330 = vmatprep.subr.msk.mxu0 %vm371_vm0, %v778_v44 }
 0x648   :  { %4331 = vmatpush3.xpose.msk.msra.mxu0 %vm371_vm0, %v778_v44 }
 0x64b   :  { %4333 = vmatmul.mubr.msk.f32.vlgmr.msra.gmra.mxu0 %vm371_vm0, %v776_v45 }
 0x703   :  { %v5103_v46 = vpop.f32.mrf.mxu0 }
 0x705   :  { %v5105_v47 = vpop.f32.mrf.mxu0 }
 0x706   :  { %v4567_v48 = vpack.i.bf16 %v5103_v46, %v5105_v47 }
 0x70b   :  { %v4334_v49 = vpop.f32.mrf.mxu0 }
 0x70c   :  { %v865_v50 = vmul.f32 0.17677669, %v4334_v49 }
 0x70d   :  { %v855_v51 = vpop.f32.mrf.mxu0 }
 0x70e   :  { %v864_v52 = vmul.f32 0.17677669, %v855_v51  ;;  %v867_v53 = vadd.f32 %v865_v50, %v5044_v34 }
 0x710   :  { %v871_v54 = vsel %vm463_vm1, %v867_v53, -inf  ;;  %v866_v55 = vadd.f32 %v864_v52, %v5049_v37 }
 0x711   :  { %872 = vmax.xlane.f32.xlu1 %v871_v54  ;;  %v1227_v54 = vld [vmem:[%s5689_s6 + $0x70] sm:$0xff] }
 0x712   :  { %v868_v56 = vsel %vm463_vm1, %v866_v55, -inf }
 0x713   :  { %869 = vmax.xlane.f32.xlu0 %v868_v56  ;;  %v1225_v56 = vld [vmem:[%s5689_s6 + $0x60] sm:$0xff] }
 0x722   :  { %890 = vrot.lane.b32.xlu1 %v5021_v30, %s4842_s28 }
 0x726   :  { %983 = vrot.lane.b32.xlu1 %v5019_v29, %s4833_s3 }
 0x72a   :  { %981 = vrot.lane.b32.xlu1 %v5025_v31, %s4833_s3 }
 0x72e   :  { %979 = vrot.lane.b32.xlu1 %v5037_v32, %s4833_s3 }
 0x79a   :  { %v873_v58 = vpop.xlane.xlu1 %872 }
 0x79b   :  { %v875_v59 = vsub.f32 %v867_v53, %v873_v58  ;;  %v1224_v58 = vld [vmem:[%s5689_s6 + $0x58] sm:$0xff] }
 0x79c   :  { %v870_v60 = vpop.xlane.xlu0 %869 }
 0x79d   :  { %v878_v61 = vmul.f32 1.442695, %v875_v59  ;;  %v874_v62 = vsub.f32 %v866_v55, %v870_v60  ;;  %v1226_v55 = vld [vmem:[%s5689_s6 + $0x68] sm:$0xff]  ;;  %v1223_v59 = vld [vmem:[%s5689_s6 + $0x50] sm:$0xff] }
 0x79e   :  { %v891_v5 = vpop.permute.xlu1 %890  ;;  %v1222_v60 = vld [vmem:[%s5689_s6 + $0x48] sm:$0xff] }
 0x79f   :  { %4617 = vpow2.f32 %v878_v61  ;;  %v876_v63 = vmul.f32 1.442695, %v874_v62  ;;  %v1221_v61 = vld [vmem:[%s5689_s6 + $0x40] sm:$0xff]  ;;  %v1220_v62 = vld [vmem:[%s5689_s6 + $0x38] sm:$0xff] }
 0x7a1   :  { %4619 = vpow2.f32 %v876_v63  ;;  %v1219_v63 = vld [vmem:[%s5689_s6 + $0x30] sm:$0xff] }
 0x7a2   :  { %v984_v7 = vpop.permute.xlu1 %983 }
 0x7a6   :  { %v982_v16 = vpop.permute.xlu1 %981 }
 0x7aa   :  { %v980_v18 = vpop.permute.xlu1 %979 }
 0x7ac   :  { %v4618_v2 = vpop.eup %4617 }
 0x7ad   :  { %v883_v3 = vsel %vm463_vm1, %v4618_v2, 0.0 }
 0x7ae   :  { %v4620_v4 = vpop.eup %4619  ;;  %884 = vadd.xlane.f32.xlu0 %v883_v3  ;;  %v1217_v3 = vld [vmem:[%s5689_s6 + $0x20] sm:$0xff] }
 0x7af   :  { %v880_v29 = vsel %vm463_vm1, %v4620_v4, 0.0 }
 0x7b2   :  { %881 = vadd.xlane.f32.xlu0 %v880_v29  ;;  %v1215_v29 = vld [vmem:[%s5689_s6 + $0x10] sm:$0xff] }
 0x7c8   :  { %892 = vrot.lane.b32.xlu0 %v5017_v26, %s4842_s28 }
 0x7cc   :  { %977 = vrot.lane.b32.xlu0 %v5008_v19, %s4833_s3 }
 0x837   :  { %v885_v31 = vpop.xlane.xlu0 %884 }
 0x838   :  { %4621 = vrcp.f32 %v885_v31  ;;  %v1214_v31 = vld [vmem:[%s5689_s6 + $0x8] sm:$0xff] }
 0x83b   :  { %v882_v32 = vpop.xlane.xlu0 %881 }
 0x83c   :  { %4623 = vrcp.f32 %v882_v32  ;;  %v1213_v32 = vld [vmem:[%s5689_s6] sm:$0xff] }
 0x83f   :  { %v893_v6 = vpop.permute.xlu0 %892 }
 0x840   :  { %4335 = vmatprep.subr.mxu1 %v893_v6 }
 0x841   :  { %4336 = vmatpush3.msra.mxu1 %v893_v6 }
 0x842   :  { %4337 = vmatprep.subr.mxu1 %v891_v5 }
 0x843   :  { %4338 = vmatpush3.msra.mxu1 %v891_v5  ;;  %v978_v19 = vpop.permute.xlu0 %977 }
 0x844   :  { %4342 = vmatprep.subr.msk.mxu1 %vm371_vm0, %v984_v7 }
 0x845   :  { %v4622_v9 = vpop.eup %4621 }
 0x846   :  { %v889_v15 = vmul.f32 %v4622_v9, %v4618_v2  ;;  %v1218_v2 = vld [vmem:[%s5689_s6 + $0x28] sm:$0xff] }
 0x849   :  { %v4624_v10 = vpop.eup %4623 }
 0x84a   :  { %v888_v12 = vmul.f32 %v4624_v10, %v4620_v4  ;;  %v1216_v4 = vld [vmem:[%s5689_s6 + $0x18] sm:$0xff] }
 0x84c   :  { %4339 = vmatprep.mubr.msk.f32.mxu1 %vm463_vm1, %v888_v12 }
 0x84d   :  { %4340 = vmatmul.mubr.msk.f32.vlgmr.msra.gmra.mxu1 %vm463_vm1, %v889_v15 }
 0x84e   :  { %4343 = vmatpush3.xpose.msk.msra.mxu1 %vm371_vm0, %v984_v7  ;;  %4346 = vmatprep.mubr.msk.f32.mxu1 %vm371_vm0, %v978_v19 }
 0x84f   :  { %4344 = vmatprep.subr.msk.mxu1 %vm371_vm0, %v982_v16 }
 0x852   :  { %4345 = vmatpush3.xpose.msk.msra.mxu1 %vm371_vm0, %v982_v16 }
 0x855   :  { %4347 = vmatmul.mubr.msk.f32.vlgmr.msra.gmra.mxu1 %vm371_vm0, %v980_v18 }
 0x856   :  { %1503 = vmatprep.mubr.f32.mxu1 %v4840_v57 }
 0x90d   :  { %v4341_v21 = vpop.f32.mrf.mxu1 }
 0x90f   :  { %v968_v22 = vpop.f32.mrf.mxu1 }
 0x910   :  { %v4572_v38 = vpack.i.bf16 %v4341_v21, %v968_v22 }
 0x915   :  { %v4348_v23 = vpop.f32.mrf.mxu1 }
 0x916   :  { %v1069_v24 = vmul.f32 0.17677669, %v4348_v23 }
 0x917   :  { %v1059_v25 = vpop.f32.mrf.mxu1 }
 0x918   :  { %v1068_v27 = vmul.f32 0.17677669, %v1059_v25  ;;  %v1071_v28 = vadd.f32 %v1069_v24, %v5044_v34 }
 0x91a   :  { %v1075_v33 = vsel %vm463_vm1, %v1071_v28, -inf  ;;  %v1070_v35 = vadd.f32 %v1068_v27, %v5049_v37 }
 0x91b   :  { %1076 = vmax.xlane.f32.xlu1 %v1075_v33 }
 0x91c   :  { %v1072_v36 = vsel %vm463_vm1, %v1070_v35, -inf }
 0x91d   :  { %1073 = vmax.xlane.f32.xlu0 %v1072_v36 }
 0x92c   :  { %1094 = vrot.lane.b32.xlu1 %v5021_v30, %s4833_s3 }
 0x930   :  { %4568 = vrot.lane.b32.xlu1 %v4567_v48, %s4833_s3 }
 0x934   :  { %4573 = vrot.lane.b32.xlu1 %v4572_v38, %s4842_s28 }
 0x9a4   :  { %v1077_v34 = vpop.xlane.xlu1 %1076 }
 0x9a5   :  { %v1079_v39 = vsub.f32 %v1071_v28, %v1077_v34 }
 0x9a6   :  { %v1074_v40 = vpop.xlane.xlu0 %1073 }
 0x9a7   :  { %v1082_v41 = vmul.f32 1.442695, %v1079_v39  ;;  %v1078_v37 = vsub.f32 %v1070_v35, %v1074_v40  ;;  %v1414_v40 = vld [vmem:[#allocation6 + $0x1e8] sm:$0xff] }
 0x9a8   :  { %v1095_v49 = vpop.permute.xlu1 %1094  ;;  %1439 = vmatprep.subr.mxu1 %v1414_v40  ;;  %v1367_v40 = vld [vmem:[#allocation6 + $0x70] sm:$0xff] }
 0x9a9   :  { %4625 = vpow2.f32 %v1082_v41  ;;  %v1080_v42 = vmul.f32 1.442695, %v1078_v37  ;;  %v1416_v41 = vld [vmem:[#allocation6 + $0x1f8] sm:$0xff]  ;;  %v1413_v37 = vld [vmem:[#allocation6 + $0x1e0] sm:$0xff] }
 0x9aa   :  { %1440 = vmatpush1.msra.mxu1 %v1413_v37  ;;  %v1364_v37 = vld [vmem:[#allocation6 + $0x58] sm:$0xff] }
 0x9ab   :  { %4627 = vpow2.f32 %v1080_v42  ;;  %v1415_v42 = vld [vmem:[#allocation6 + $0x1f0] sm:$0xff] }
 0x9ac   :  { %v4569_v9 = vpop.permute.xlu1 %4568 }
 0x9ad   :  { %v4571_v12 = vunpack.i.h.bf16 %v4569_v9  ;;  %v4570_v15 = vunpack.i.l.bf16 %v4569_v9  ;;  %v1388_v9 = vld [vmem:[#allocation6 + $0x118] sm:$0xff] }
 0x9af   :  { %v1206_v21 = vsel %vm371_vm0, %v5073_v0, %v4571_v12  ;;  %v1205_v24 = vsel %vm371_vm0, %v5075_v1, %v4570_v15  ;;  %v3899_v0 = vld [vmem:[%s5690_s7] ss:$0 sm:$0xff]  ;;  %v1387_v12 = vld [vmem:[#allocation6 + $0x110] sm:$0xff]  ;;  %v1382_v15 = vld [vmem:[#allocation6 + $0xe8] sm:$0xff] }
 0x9b0   :  { %v4574_v10 = vpop.permute.xlu1 %4573 }
 0x9b1   :  { %v4576_v19 = vunpack.i.h.bf16 %v4574_v10  ;;  %v4575_v16 = vunpack.i.l.bf16 %v4574_v10  ;;  %v1385_v10 = vld [vmem:[#allocation6 + $0x100] sm:$0xff] }
 0x9b3   :  { %v1208_v25 = vsel %vm1207_vm2, %v1205_v24, %v4575_v16  ;;  %v1209_v27 = vsel %vm1207_vm2, %v1206_v21, %v4576_v19  ;;  %v1384_v19 = vld [vmem:[#allocation6 + $0xf8] sm:$0xff]  ;;  %v1381_v16 = vld [vmem:[#allocation6 + $0xe0] sm:$0xff]  ;;  %v1378_v21 = vld [vmem:[#allocation6 + $0xc8] sm:$0xff] }
 0x9b4   :  { %v1379_v24 = vld [vmem:[#allocation6 + $0xd0] sm:$0xff] }
 0x9b6   :  { %v4626_v43 = vpop.eup %4625 }
 0x9b7   :  { %v1087_v44 = vsel %vm463_vm1, %v4626_v43, 0.0 }
 0x9b8   :  { %v4628_v30 = vpop.eup %4627  ;;  %1088 = vadd.xlane.f32.xlu0 %v1087_v44  ;;  %v1412_v44 = vld [vmem:[#allocation6 + $0x1d8] sm:$0xff] }
 0x9b9   :  { %v1084_v45 = vsel %vm463_vm1, %v4628_v30, 0.0 }
 0x9bc   :  { %1085 = vadd.xlane.f32.xlu0 %v1084_v45  ;;  %v1411_v45 = vld [vmem:[#allocation6 + $0x1d0] sm:$0xff] }
 0x9d2   :  { %1096 = vrot.lane.b32.xlu0 %v5017_v26, %s4833_s3  ;;  %v1228_v26 = vld [vmem:[%s5689_s6 + $0x78] sm:$0xff] }
 0xa41   :  { %v1089_v46 = vpop.xlane.xlu0 %1088 }
 0xa42   :  { %4629 = vrcp.f32 %v1089_v46  ;;  %v1406_v46 = vld [vmem:[#allocation6 + $0x1a8] sm:$0xff] }
 0xa45   :  { %v1086_v47 = vpop.xlane.xlu0 %1085 }
 0xa46   :  { %4631 = vrcp.f32 %v1086_v47  ;;  %v1405_v47 = vld [vmem:[#allocation6 + $0x1a0] sm:$0xff] }
 0xa49   :  { %v1097_v48 = vpop.permute.xlu0 %1096 }
 0xa4a   :  { %4349 = vmatprep.subr.mxu0 %v1097_v48 }
 0xa4b   :  { %4350 = vmatpush3.msra.mxu0 %v1097_v48  ;;  %v1407_v48 = vld [vmem:[#allocation6 + $0x1b0] sm:$0xff] }
 0xa4c   :  { %4351 = vmatprep.subr.mxu0 %v1095_v49 }
 0xa4d   :  { %4352 = vmatpush3.msra.mxu0 %v1095_v49  ;;  %v1404_v49 = vld [vmem:[#allocation6 + $0x198] sm:$0xff] }
 0xa4e   :  { %4356 = vmatprep.subr.mxu0 %v1228_v26 }
 0xa4f   :  { %v4630_v50 = vpop.eup %4629 }
 0xa50   :  { %v1093_v53 = vmul.f32 %v4630_v50, %v4626_v43  ;;  %v1410_v43 = vld [vmem:[#allocation6 + $0x1c8] sm:$0xff]  ;;  %v1401_v50 = vld [vmem:[#allocation6 + $0x180] sm:$0xff] }
 0xa51   :  { %1441 = vmatprep.subr.mxu1 %v1410_v43  ;;  %v1363_v43 = vld [vmem:[#allocation6 + $0x50] sm:$0xff] }
 0xa53   :  { %v4632_v51 = vpop.eup %4631 }
 0xa54   :  { %v1092_v52 = vmul.f32 %v4632_v51, %v4628_v30  ;;  %v1409_v30 = vld [vmem:[#allocation6 + $0x1c0] sm:$0xff]  ;;  %v1403_v51 = vld [vmem:[#allocation6 + $0x190] sm:$0xff] }
 0xa55   :  { %1442 = vmatpush1.msra.mxu1 %v1409_v30  ;;  %v1360_v30 = vld [vmem:[#allocation6 + $0x38] sm:$0xff] }
 0xa56   :  { %4353 = vmatprep.mubr.msk.f32.mxu0 %vm463_vm1, %v1092_v52  ;;  %1443 = vmatprep.subr.mxu1 %v1406_v46  ;;  %v1359_v46 = vld [vmem:[#allocation6 + $0x30] sm:$0xff] }
 0xa57   :  { %4354 = vmatmul.mubr.msk.f32.vlgmr.msra.gmra.mxu0 %vm463_vm1, %v1093_v53  ;;  %1444 = vmatpush1.msra.mxu1 %v1405_v47  ;;  %v1356_v47 = vld [vmem:[#allocation6 + $0x18] sm:$0xff] }
 0xa58   :  { %4357 = vmatpush3.msra.mxu0 %v1228_v26 }
 0xa59   :  { %4358 = vmatprep.subr.mxu0 %v1227_v54 }
 0xa5a   :  { %4359 = vmatpush3.msra.mxu0 %v1227_v54 }
 0xa5b   :  { %4360 = vmatprep.subr.mxu0 %v1226_v55 }
 0xa5c   :  { %4361 = vmatpush3.msra.mxu0 %v1226_v55 }
 0xa5d   :  { %4362 = vmatprep.subr.mxu0 %v1225_v56 }
 0xa5e   :  { %4363 = vmatpush3.msra.mxu0 %v1225_v56 }
 0xa5f   :  { %4364 = vmatprep.subr.mxu0 %v1224_v58 }
 0xa60   :  { %4365 = vmatpush3.msra.mxu0 %v1224_v58 }
 0xa61   :  { %4366 = vmatprep.subr.mxu0 %v1223_v59 }
 0xa62   :  { %4367 = vmatpush3.msra.mxu0 %v1223_v59 }
 0xa63   :  { %4368 = vmatprep.subr.mxu0 %v1222_v60 }
 0xa64   :  { %4369 = vmatpush3.msra.mxu0 %v1222_v60  ;;  %v1398_v60 = vld [vmem:[#allocation6 + $0x168] sm:$0xff] }
 0xa65   :  { %4370 = vmatprep.subr.mxu0 %v1221_v61 }
 0xa66   :  { %4371 = vmatpush3.msra.mxu0 %v1221_v61  ;;  %v1400_v61 = vld [vmem:[#allocation6 + $0x178] sm:$0xff] }
 0xa67   :  { %4372 = vmatprep.subr.mxu0 %v1220_v62 }
 0xa68   :  { %4373 = vmatpush3.msra.mxu0 %v1220_v62  ;;  %v1397_v62 = vld [vmem:[#allocation6 + $0x160] sm:$0xff] }
 0xa69   :  { %4374 = vmatprep.subr.mxu0 %v1219_v63 }
 0xa6a   :  { %4375 = vmatpush3.msra.mxu0 %v1219_v63  ;;  %v1399_v63 = vld [vmem:[#allocation6 + $0x170] sm:$0xff] }
 0xa6b   :  { %4376 = vmatprep.subr.mxu0 %v1218_v2 }
 0xa6c   :  { %4377 = vmatpush3.msra.mxu0 %v1218_v2  ;;  %v1394_v2 = vld [vmem:[#allocation6 + $0x148] sm:$0xff] }
 0xa6d   :  { %4378 = vmatprep.subr.mxu0 %v1217_v3 }
 0xa6e   :  { %4379 = vmatpush3.msra.mxu0 %v1217_v3  ;;  %v1396_v3 = vld [vmem:[#allocation6 + $0x158] sm:$0xff] }
 0xa6f   :  { %4380 = vmatprep.subr.mxu0 %v1216_v4 }
 0xa70   :  { %4381 = vmatpush3.msra.mxu0 %v1216_v4  ;;  %v1393_v4 = vld [vmem:[#allocation6 + $0x140] sm:$0xff] }
 0xa71   :  { %4382 = vmatprep.subr.mxu0 %v1215_v29 }
 0xa72   :  { %4383 = vmatpush3.msra.mxu0 %v1215_v29  ;;  %v1395_v29 = vld [vmem:[#allocation6 + $0x150] sm:$0xff] }
 0xa73   :  { %4384 = vmatprep.subr.mxu0 %v1214_v31 }
 0xa74   :  { %4385 = vmatpush3.msra.mxu0 %v1214_v31  ;;  %v1390_v31 = vld [vmem:[#allocation6 + $0x128] sm:$0xff] }
 0xa75   :  { %4386 = vmatprep.subr.mxu0 %v1213_v32 }
 0xa76   :  { %4387 = vmatpush3.msra.mxu0 %v1213_v32  ;;  %v1392_v32 = vld [vmem:[#allocation6 + $0x138] sm:$0xff] }
 0xa77   :  { %1516 = vmatprep.subr.mxu0 %v1416_v41  ;;  %v1362_v41 = vld [vmem:[#allocation6 + $0x48] sm:$0xff] }
 0xb17   :  { %v4355_v5 = vpop.f32.mrf.mxu0 }
 0xb19   :  { %v1172_v6 = vpop.f32.mrf.mxu0 }
 0xb1a   :  { %v4577_v7 = vpack.i.bf16 %v4355_v5, %v1172_v6  ;;  %v1389_v5 = vld [vmem:[#allocation6 + $0x120] sm:$0xff]  ;;  %v1391_v6 = vld [vmem:[#allocation6 + $0x130] sm:$0xff] }
 0xb1c   :  { %4578 = vrot.lane.b32.xlu0 %v4577_v7, %s4841_s27  ;;  %v1386_v7 = vld [vmem:[#allocation6 + $0x108] sm:$0xff] }
 0xb8e   :  { %v4579_v18 = vpop.permute.xlu0 %4578 }
 0xb8f   :  { %v4581_v22 = vunpack.i.h.bf16 %v4579_v18  ;;  %v4580_v23 = vunpack.i.l.bf16 %v4579_v18  ;;  %v1383_v18 = vld [vmem:[#allocation6 + $0xf0] sm:$0xff] }
 0xb91   :  { %v1211_v28 = vsel %vm1210_vm3, %v1208_v25, %v4580_v23  ;;  %v1212_v33 = vsel %vm1210_vm3, %v1209_v27, %v4581_v22  ;;  %v1380_v22 = vld [vmem:[#allocation6 + $0xd8] sm:$0xff]  ;;  %v1377_v23 = vld [vmem:[#allocation6 + $0xc0] sm:$0xff]  ;;  %v1374_v25 = vld [vmem:[#allocation6 + $0xa8] sm:$0xff] }
 0xb92   :  { %4388 = vmatprep.mubr.f32.mxu0 %v1211_v28  ;;  %v1376_v27 = vld [vmem:[#allocation6 + $0xb8] sm:$0xff]  ;;  %v1373_v28 = vld [vmem:[#allocation6 + $0xa0] sm:$0xff] }
 0xb93   :  { %4389 = vmatmul.mubr.f32.vlgmr.msra.gmra.mxu0 %v1212_v33  ;;  %v1375_v33 = vld [vmem:[#allocation6 + $0xb0] sm:$0xff] }
 0xb94   :  { %1580 = vmatprep.mubr.f32.mxu0 %v4840_v57  ;;  %1517 = vmatpush1.msra.mxu0 %v1415_v42  ;;  %v1361_v42 = vld [vmem:[#allocation6 + $0x40] sm:$0xff] }
 0xb95   :  { %1518 = vmatprep.subr.mxu0 %v1412_v44  ;;  %v1358_v44 = vld [vmem:[#allocation6 + $0x28] sm:$0xff] }
 0xb96   :  { %1519 = vmatpush1.msra.mxu0 %v1411_v45  ;;  %v1357_v45 = vld [vmem:[#allocation6 + $0x20] sm:$0xff] }
 0xc53   :  { %v4390_v35 = vpop.f32.mrf.mxu0 }
 0xc54   :  { %v1308_v36 = vadd.f32 %v4390_v35, %v3899_v0  ;;  %v1372_v35 = vld [vmem:[#allocation6 + $0x98] sm:$0xff] }
 0xc55   :  { %v1302_v38 = vpop.f32.mrf.mxu0 }
 0xc56   :  { %v1303_v1 = vadd.f32 %v3899_v0, %v1302_v38  ;;  %v1312_v34 = vadd.f32 %v1308_v36, %v4992_v11  ;;  %v1408_v11 = vld [vmem:[#allocation6 + $0x1b8] sm:$0xff]  ;;  %v1370_v0 = vld [vmem:[#allocation6 + $0x88] sm:$0xff]  ;;  %v1369_v36 = vld [vmem:[#allocation6 + $0x80] sm:$0xff] }
 0xc57   :  { %1520 = vmatprep.subr.mxu0 %v1408_v11  ;;  %v1371_v38 = vld [vmem:[#allocation6 + $0x90] sm:$0xff]  ;;  %v1354_v11 = vld [vmem:[#allocation6 + $0x8] sm:$0xff] }
 0xc58   :  { %1317 = vadd.xlane.f32.xlu0 %v1312_v34  ;;  %v1311_v39 = vadd.f32 %v1303_v1, %v4986_v8  ;;  %v1402_v8 = vld [vmem:[#allocation6 + $0x188] sm:$0xff]  ;;  %1521 = vmatpush1.msra.mxu0 %v1407_v48  ;;  %v1353_v48 = vld [vmem:[#allocation6] sm:$0xff] }
 0xc59   :  { %1445 = vmatprep.subr.mxu1 %v1402_v8  ;;  %1522 = vmatprep.subr.mxu0 %v1404_v49  ;;  %v1366_v1 = vld [vmem:[#allocation6 + $0x68] sm:$0xff]  ;;  %v1355_v8 = vld [vmem:[#allocation6 + $0x10] sm:$0xff] }
 0xc5a   :  { %1315 = vadd.xlane.f32.xlu1 %v1311_v39  ;;  %1446 = vmatpush1.msra.mxu1 %v1401_v50 }
 0xc5b   :  { %1523 = vmatpush1.msra.mxu0 %v1403_v51  ;;  %1447 = vmatprep.subr.mxu1 %v1398_v60  ;;  %v3901_v60 = vld [vmem:[%s5692_s9] ss:$0 sm:$0xff] }
 0xc5c   :  { %1524 = vmatprep.subr.mxu0 %v1400_v61  ;;  %1448 = vmatpush1.msra.mxu1 %v1397_v62 }
 0xc5d   :  { %1525 = vmatpush1.msra.mxu0 %v1399_v63  ;;  %1449 = vmatprep.subr.mxu1 %v1394_v2 }
 0xc5e   :  { %1526 = vmatprep.subr.mxu0 %v1396_v3  ;;  %1450 = vmatpush1.msra.mxu1 %v1393_v4  ;;  %v1696_v4 = vld [vmem:[#allocation8 + $0xf8] sm:$0xff] }
 0xc5f   :  { %1527 = vmatpush1.msra.mxu0 %v1395_v29  ;;  %1451 = vmatprep.subr.mxu1 %v1390_v31  ;;  %v1728_v29 = vld [vmem:[#allocation8 + $0x1f8] sm:$0xff] }
 0xc60   :  { %1528 = vmatprep.subr.mxu0 %v1392_v32  ;;  %1452 = vmatpush1.msra.mxu1 %v1389_v5  ;;  %v1712_v31 = vld [vmem:[#allocation8 + $0x178] sm:$0xff]  ;;  %v1695_v32 = vld [vmem:[#allocation8 + $0xf0] sm:$0xff] }
 0xc61   :  { %1529 = vmatpush1.msra.mxu0 %v1391_v6  ;;  %1453 = vmatprep.subr.mxu1 %v1386_v7  ;;  %v1727_v5 = vld [vmem:[#allocation8 + $0x1f0] sm:$0xff] }
 0xc62   :  { %1530 = vmatprep.subr.mxu0 %v1388_v9  ;;  %1454 = vmatpush1.msra.mxu1 %v1385_v10  ;;  %v1679_v6 = vld [vmem:[#allocation8 + $0x70] sm:$0xff]  ;;  %v1694_v9 = vld [vmem:[#allocation8 + $0xe8] sm:$0xff] }
 0xc63   :  { %1531 = vmatpush1.msra.mxu0 %v1387_v12  ;;  %1455 = vmatprep.subr.mxu1 %v1382_v15  ;;  %v1711_v7 = vld [vmem:[#allocation8 + $0x170] sm:$0xff]  ;;  %v1726_v10 = vld [vmem:[#allocation8 + $0x1e8] sm:$0xff] }
 0xc64   :  { %1532 = vmatprep.subr.mxu0 %v1384_v19  ;;  %1456 = vmatpush1.msra.mxu1 %v1381_v16  ;;  %v1678_v12 = vld [vmem:[#allocation8 + $0x68] sm:$0xff]  ;;  %v1693_v19 = vld [vmem:[#allocation8 + $0xe0] sm:$0xff] }
 0xc65   :  { %1533 = vmatpush1.msra.mxu0 %v1383_v18  ;;  %1457 = vmatprep.subr.mxu1 %v1378_v21  ;;  %v1710_v15 = vld [vmem:[#allocation8 + $0x168] sm:$0xff]  ;;  %v1725_v16 = vld [vmem:[#allocation8 + $0x1e0] sm:$0xff] }
 0xc66   :  { %1534 = vmatprep.subr.mxu0 %v1380_v22  ;;  %1458 = vmatpush1.msra.mxu1 %v1377_v23  ;;  %v1677_v18 = vld [vmem:[#allocation8 + $0x60] sm:$0xff]  ;;  %v1692_v22 = vld [vmem:[#allocation8 + $0xd8] sm:$0xff] }
 0xc67   :  { %1535 = vmatpush1.msra.mxu0 %v1379_v24  ;;  %1459 = vmatprep.subr.mxu1 %v1374_v25  ;;  %v1709_v21 = vld [vmem:[#allocation8 + $0x160] sm:$0xff]  ;;  %v1724_v23 = vld [vmem:[#allocation8 + $0x1d8] sm:$0xff] }
 0xc68   :  { %1536 = vmatprep.subr.mxu0 %v1376_v27  ;;  %1460 = vmatpush1.msra.mxu1 %v1373_v28  ;;  %v1676_v24 = vld [vmem:[#allocation8 + $0x58] sm:$0xff]  ;;  %v1691_v27 = vld [vmem:[#allocation8 + $0xd0] sm:$0xff] }
 0xc69   :  { %1537 = vmatpush1.msra.mxu0 %v1375_v33  ;;  %1461 = vmatprep.subr.mxu1 %v1370_v0  ;;  %v1708_v25 = vld [vmem:[#allocation8 + $0x158] sm:$0xff]  ;;  %v1723_v28 = vld [vmem:[#allocation8 + $0x1d0] sm:$0xff] }
 0xc6a   :  { %1538 = vmatprep.subr.mxu0 %v1372_v35  ;;  %1462 = vmatpush1.msra.mxu1 %v1369_v36  ;;  %v1675_v33 = vld [vmem:[#allocation8 + $0x50] sm:$0xff]  ;;  %v1690_v35 = vld [vmem:[#allocation8 + $0xc8] sm:$0xff] }
 0xc6b   :  { %1539 = vmatpush1.msra.mxu0 %v1371_v38  ;;  %1463 = vmatprep.subr.mxu1 %v1366_v1  ;;  %v1707_v0 = vld [vmem:[#allocation8 + $0x150] sm:$0xff]  ;;  %v1722_v36 = vld [vmem:[#allocation8 + $0x1c8] sm:$0xff] }
 0xc6c   :  { %v1674_v38 = vld [vmem:[#allocation8 + $0x48] sm:$0xff] }
 0xc6d   :  { %v1706_v1 = vld [vmem:[#allocation8 + $0x148] sm:$0xff] }
 0xce1   :  { %v1318_v52 = vpop.xlane.xlu0 %1317 }
 0xce2   :  { %v1320_v26 = vmul.f32 0.0078125, %v1318_v52 }
 0xce3   :  { %v1316_v53 = vpop.xlane.xlu1 %1315 }
 0xce4   :  { %v1319_v54 = vmul.f32 0.0078125, %v1316_v53  ;;  %v5218_v56 = vsub.f32 %v1312_v34, %v1320_v26  ;;  %v1368_v34 = vld [vmem:[#allocation6 + $0x78] sm:$0xff] }
 0xce5   :  { %1540 = vmatprep.subr.mxu0 %v1368_v34  ;;  %v1689_v34 = vld [vmem:[#allocation8 + $0xc0] sm:$0xff] }
 0xce6   :  { %v5216_v55 = vsub.f32 %v1311_v39, %v1319_v54  ;;  %v1324_v59 = vmul.f32 %v5218_v56, %v5218_v56  ;;  %v1365_v39 = vld [vmem:[#allocation6 + $0x60] sm:$0xff]  ;;  %1541 = vmatpush1.msra.mxu0 %v1367_v40 }
 0xce7   :  { %1464 = vmatpush1.msra.mxu1 %v1365_v39  ;;  %1542 = vmatprep.subr.mxu0 %v1364_v37  ;;  %v1721_v39 = vld [vmem:[#allocation8 + $0x1c0] sm:$0xff]  ;;  %v1688_v37 = vld [vmem:[#allocation8 + $0xb8] sm:$0xff] }
 0xce8   :  { %v1323_v58 = vmul.f32 %v5216_v55, %v5216_v55  ;;  %1465 = vmatprep.subr.mxu1 %v1362_v41  ;;  %1543 = vmatpush1.msra.mxu0 %v1363_v43  ;;  %v1673_v40 = vld [vmem:[#allocation8 + $0x40] sm:$0xff]  ;;  %v1672_v43 = vld [vmem:[#allocation8 + $0x38] sm:$0xff] }
 0xce9   :  { %1466 = vmatpush1.msra.mxu1 %v1361_v42  ;;  %1544 = vmatprep.subr.mxu0 %v1360_v30  ;;  %v1705_v41 = vld [vmem:[#allocation8 + $0x140] sm:$0xff]  ;;  %v1720_v42 = vld [vmem:[#allocation8 + $0x1b8] sm:$0xff]  ;;  %v1687_v30 = vld [vmem:[#allocation8 + $0xb0] sm:$0xff] }
 0xcea   :  { %1325 = vadd.xlane.f32.xlu0 %v1323_v58  ;;  %1467 = vmatprep.subr.mxu1 %v1358_v44  ;;  %v3900_v58 = vld [vmem:[%s5691_s8] ss:$0 sm:$0xff] }
 0xceb   :  { %1468 = vmatpush1.msra.mxu1 %v1357_v45  ;;  %1545 = vmatpush1.msra.mxu0 %v1359_v46  ;;  %v1704_v44 = vld [vmem:[#allocation8 + $0x138] sm:$0xff]  ;;  %v1719_v45 = vld [vmem:[#allocation8 + $0x1b0] sm:$0xff] }
 0xcec   :  { %1469 = vmatprep.subr.mxu1 %v1354_v11  ;;  %1546 = vmatprep.subr.mxu0 %v1356_v47  ;;  %v1671_v46 = vld [vmem:[#allocation8 + $0x30] sm:$0xff]  ;;  %v1686_v47 = vld [vmem:[#allocation8 + $0xa8] sm:$0xff] }
 0xced   :  { %1470 = vmatpush1.msra.mxu1 %v1353_v48  ;;  %1547 = vmatpush1.msra.mxu0 %v1355_v8  ;;  %v1703_v11 = vld [vmem:[#allocation8 + $0x130] sm:$0xff]  ;;  %v1718_v48 = vld [vmem:[#allocation8 + $0x1a8] sm:$0xff] }
 0xcee   :  { %1327 = vadd.xlane.f32.xlu0 %v1324_v59  ;;  %4028 = vmatprep.subr.mxu1 %v1696_v4  ;;  %v1670_v8 = vld [vmem:[#allocation8 + $0x28] sm:$0xff] }
 0xcef   :  { %4066 = vmatprep.subr.mxu0 %v1728_v29  ;;  %v1714_v4 = vld [vmem:[#allocation8 + $0x188] sm:$0xff] }
 0xcf0   :  { %v1666_v29 = vld [vmem:[#allocation8 + $0x8] sm:$0xff] }
 0xd73   :  { %v1326_v49 = vpop.xlane.xlu0 %1325 }
 0xd74   :  { %v1329_v50 = vmul.f32 0.0078125, %v1326_v49  ;;  %v1702_v49 = vld [vmem:[#allocation8 + $0x128] sm:$0xff] }
 0xd76   :  { %v1331_v51 = vadd.f32 1e-05, %v1329_v50  ;;  %v1685_v50 = vld [vmem:[#allocation8 + $0xa0] sm:$0xff] }
 0xd77   :  { %v1328_v52 = vpop.xlane.xlu0 %1327 }
 0xd78   :  { %4633 = vrsqrt.f32 %v1331_v51  ;;  %v1330_v53 = vmul.f32 0.0078125, %v1328_v52  ;;  %v1717_v51 = vld [vmem:[#allocation8 + $0x1a0] sm:$0xff] }
 0xd79   :  { %v1669_v52 = vld [vmem:[#allocation8 + $0x20] sm:$0xff] }
 0xd7a   :  { %v1332_v26 = vadd.f32 1e-05, %v1330_v53  ;;  %v1701_v53 = vld [vmem:[#allocation8 + $0x120] sm:$0xff] }
 0xd7c   :  { %4635 = vrsqrt.f32 %v1332_v26  ;;  %v1684_v26 = vld [vmem:[#allocation8 + $0x98] sm:$0xff] }
 0xd85   :  { %v4634_v54 = vpop.eup %4633 }
 0xd86   :  { %v1335_v59 = vmul.f32 %v4634_v54, %v5216_v55  ;;  %v1716_v54 = vld [vmem:[#allocation8 + $0x198] sm:$0xff] }
 0xd88   :  { %v1343_v61 = vmul.f32 %v3900_v58, %v1335_v59  ;;  %v1700_v59 = vld [vmem:[#allocation8 + $0x118] sm:$0xff] }
 0xd89   :  { %v4636_v62 = vpop.eup %4635 }
 0xd8a   :  { %v5231_v63 = vadd.f32 %v3901_v60, %v1343_v61  ;;  %v1336_v2 = vmul.f32 %v4636_v62, %v5218_v56  ;;  %v1680_v56 = vld [vmem:[#allocation8 + $0x78] sm:$0xff]  ;;  %v1715_v61 = vld [vmem:[#allocation8 + $0x190] sm:$0xff] }
 0xd8b   :  { %v1667_v62 = vld [vmem:[#allocation8 + $0x10] sm:$0xff] }
 0xd8c   :  { %1504 = vmatmul.mubr.f32.vlgmr.msra.gmra.mxu1 %v5231_v63  ;;  %1581 = vmatmul.mubr.f32.vlgmr.msra.gmra.mxu0 %v5231_v63  ;;  %v1344_v3 = vmul.f32 %v3900_v58, %v1336_v2  ;;  %v1668_v58 = vld [vmem:[#allocation8 + $0x18] sm:$0xff]  ;;  %v1699_v2 = vld [vmem:[#allocation8 + $0x110] sm:$0xff] }
 0xd8d   :  { %1509 = vmatprep.mubr.f32.mxu1 %v4840_v57  ;;  %1586 = vmatprep.mubr.f32.mxu0 %v4840_v57 }
 0xd8e   :  { %v5238_v55 = vadd.f32 %v3901_v60, %v1344_v3  ;;  %4029 = vmatpush3.msra.mxu1 %v1680_v56  ;;  %4067 = vmatpush3.msra.mxu0 %v1712_v31  ;;  %v1683_v60 = vld [vmem:[#allocation8 + $0x90] sm:$0xff]  ;;  %v1682_v3 = vld [vmem:[#allocation8 + $0x88] sm:$0xff]  ;;  %v1681_v31 = vld [vmem:[#allocation8 + $0x80] sm:$0xff] }
 0xd8f   :  { %4030 = vmatprep.subr.mxu1 %v1695_v32  ;;  %4068 = vmatprep.subr.mxu0 %v1727_v5  ;;  %v1698_v56 = vld [vmem:[#allocation8 + $0x108] sm:$0xff]  ;;  %v1713_v32 = vld [vmem:[#allocation8 + $0x180] sm:$0xff] }
 0xd90   :  { %1510 = vmatmul.mubr.f32.gmra.mxu1 %v5238_v55  ;;  %1587 = vmatmul.mubr.f32.gmra.mxu0 %v5238_v55  ;;  %v1665_v5 = vld [vmem:[#allocation8] sm:$0xff] }
 0xd91   :  { %4031 = vmatpush3.msra.mxu1 %v1679_v6  ;;  %4069 = vmatpush3.msra.mxu0 %v1711_v7  ;;  %v1697_v6 = vld [vmem:[#allocation8 + $0x100] sm:$0xff] }
 0xd92   :  { %4032 = vmatprep.subr.mxu1 %v1694_v9  ;;  %4070 = vmatprep.subr.mxu0 %v1726_v10  ;;  %v1417_v7 = vld [vmem:[%s5694_s11] sm:$0xf]  ;;  %v1433_v9 = vsub.s32 3, %v4996_v13 }
 0xd93   :  { %4033 = vmatpush3.msra.mxu1 %v1678_v12  ;;  %4071 = vmatpush3.msra.mxu0 %v1710_v15  ;;  %v1422_v10 = vrot.slane %v1417_v7, %v4999_v14  ;;  %v1430_v12 = vrot.slane %v1417_v7, %v5006_v17 }
 0xd94   :  { %4034 = vmatprep.subr.mxu1 %v1693_v19  ;;  %4072 = vmatprep.subr.mxu0 %v1725_v16  ;;  %v1426_v16 = vrot.slane %v1417_v7, %v5011_v20 }
 0xd95   :  { %4035 = vmatpush3.msra.mxu1 %v1677_v18  ;;  %4073 = vmatpush3.msra.mxu0 %v1709_v21  ;;  %v1434_v18 = vrot.slane %v1417_v7, %v1433_v9 }
 0xd96   :  { %4036 = vmatprep.subr.mxu1 %v1692_v22  ;;  %4074 = vmatprep.subr.mxu0 %v1724_v23 }
 0xd97   :  { %4037 = vmatpush3.msra.mxu1 %v1676_v24  ;;  %4075 = vmatpush3.msra.mxu0 %v1708_v25 }
 0xd98   :  { %4038 = vmatprep.subr.mxu1 %v1691_v27  ;;  %4076 = vmatprep.subr.mxu0 %v1723_v28 }
 0xd99   :  { %4039 = vmatpush3.msra.mxu1 %v1675_v33  ;;  %4077 = vmatpush3.msra.mxu0 %v1707_v0 }
 0xd9a   :  { %4040 = vmatprep.subr.mxu1 %v1690_v35  ;;  %4078 = vmatprep.subr.mxu0 %v1722_v36 }
 0xd9b   :  { %4041 = vmatpush3.msra.mxu1 %v1674_v38  ;;  %4079 = vmatpush3.msra.mxu0 %v1706_v1 }
 0xd9c   :  { %4042 = vmatprep.subr.mxu1 %v1689_v34  ;;  %4080 = vmatprep.subr.mxu0 %v1721_v39 }
 0xd9d   :  { %4043 = vmatpush3.msra.mxu1 %v1673_v40  ;;  %4081 = vmatpush3.msra.mxu0 %v1705_v41 }
 0xd9e   :  { %4044 = vmatprep.subr.mxu1 %v1688_v37  ;;  %4082 = vmatprep.subr.mxu0 %v1720_v42 }
 0xd9f   :  { %4045 = vmatpush3.msra.mxu1 %v1672_v43  ;;  %4083 = vmatpush3.msra.mxu0 %v1704_v44 }
 0xda0   :  { %4046 = vmatprep.subr.mxu1 %v1687_v30  ;;  %4084 = vmatprep.subr.mxu0 %v1719_v45 }
 0xda1   :  { %4047 = vmatpush3.msra.mxu1 %v1671_v46  ;;  %4085 = vmatpush3.msra.mxu0 %v1703_v11 }
 0xda2   :  { %4048 = vmatprep.subr.mxu1 %v1686_v47  ;;  %4086 = vmatprep.subr.mxu0 %v1718_v48 }
 0xda3   :  { %4049 = vmatpush3.msra.mxu1 %v1670_v8  ;;  %4087 = vmatpush3.msra.mxu0 %v1702_v49 }
 0xda4   :  { %4050 = vmatprep.subr.mxu1 %v1685_v50  ;;  %4088 = vmatprep.subr.mxu0 %v1717_v51 }
 0xda5   :  { %4051 = vmatpush3.msra.mxu1 %v1669_v52  ;;  %4089 = vmatpush3.msra.mxu0 %v1701_v53 }
 0xda6   :  { %4052 = vmatprep.subr.mxu1 %v1684_v26  ;;  %4090 = vmatprep.subr.mxu0 %v1716_v54 }
 0xda7   :  { %4053 = vmatpush3.msra.mxu1 %v1668_v58  ;;  %4091 = vmatpush3.msra.mxu0 %v1700_v59 }
 0xda8   :  { %4054 = vmatprep.subr.mxu1 %v1683_v60  ;;  %4092 = vmatprep.subr.mxu0 %v1715_v61 }
 0xda9   :  { %4055 = vmatpush3.msra.mxu1 %v1667_v62  ;;  %4093 = vmatpush3.msra.mxu0 %v1699_v2 }
 0xdaa   :  { %4056 = vmatprep.subr.mxu1 %v1682_v3  ;;  %4094 = vmatprep.subr.mxu0 %v1714_v4 }
 0xdab   :  { %4057 = vmatpush3.msra.mxu1 %v1666_v29  ;;  %4095 = vmatpush3.msra.mxu0 %v1698_v56 }
 0xdac   :  { %4058 = vmatprep.subr.mxu1 %v1681_v31  ;;  %4096 = vmatprep.subr.mxu0 %v1713_v32 }
 0xdad   :  { %4059 = vmatpush3.msra.mxu1 %v1665_v5  ;;  %4097 = vmatpush3.msra.mxu0 %v1697_v6 }
 0xe4c   :  { %v1505_v15 = vpop.f32.mrf.mxu1  ;;  %v1582_v19 = vpop.f32.mrf.mxu0 }
 0xe4d   :  { %v5251_v21 = vadd.f32 %v1505_v15, %v1422_v10  ;;  %v5253_v22 = vadd.f32 %v1582_v19, %v1430_v12 }
 0xe4e   :  { %v1507_v23 = vpop.f32.mrf.mxu1  ;;  %v1584_v24 = vpop.f32.mrf.mxu0 }
 0xe4f   :  { %v1601_v25 = vmul.f32 0.044715, %v5251_v21  ;;  %v1603_v27 = vmul.f32 0.044715, %v5253_v22  ;;  %v1508_v28 = vadd.f32 %v1507_v23, %v1426_v16  ;;  %v5257_v33 = vadd.f32 %v1584_v24, %v1434_v18 }
 0xe50   :  { %v1511_v0 = vpop.f32.mrf.mxu1  ;;  %v1588_v35 = vpop.f32.mrf.mxu0 }
 0xe51   :  { %v1609_v36 = vmul.f32 %v1601_v25, %v5251_v21  ;;  %v1611_v38 = vmul.f32 %v1603_v27, %v5253_v22  ;;  %v5261_v1 = vadd.f32 %v1511_v0, %v1422_v10  ;;  %v5263_v34 = vadd.f32 %v1588_v35, %v1430_v12 }
 0xe52   :  { %v1602_v39 = vmul.f32 0.044715, %v1508_v28  ;;  %v1604_v40 = vmul.f32 0.044715, %v5257_v33  ;;  %v1513_v41 = vpop.f32.mrf.mxu1  ;;  %v1590_v37 = vpop.f32.mrf.mxu0  ;;  %v1594_v27 = vmul.f32 0.5, %v1508_v28 }
 0xe53   :  { %v1617_v42 = vmul.f32 %v1609_v36, %v5251_v21  ;;  %v1619_v43 = vmul.f32 %v1611_v38, %v5253_v22  ;;  %v1605_v44 = vmul.f32 0.044715, %v5261_v1  ;;  %v1607_v30 = vmul.f32 0.044715, %v5263_v34 }
 0xe54   :  { %v1610_v45 = vmul.f32 %v1602_v39, %v1508_v28  ;;  %v1612_v46 = vmul.f32 %v1604_v40, %v5257_v33  ;;  %v1514_v11 = vadd.f32 %v1513_v41, %v1426_v16  ;;  %v1591_v47 = vadd.f32 %v1590_v37, %v1434_v18 }
 0xe55   :  { %v1625_v48 = vadd.f32 %v1617_v42, %v5251_v21  ;;  %v1627_v8 = vadd.f32 %v1619_v43, %v5253_v22  ;;  %v1613_v49 = vmul.f32 %v1605_v44, %v5261_v1  ;;  %v1615_v58 = vmul.f32 %v1607_v30, %v5263_v34 }
 0xe56   :  { %v1606_v50 = vmul.f32 0.044715, %v1514_v11  ;;  %v1608_v51 = vmul.f32 0.044715, %v1591_v47  ;;  %v1618_v52 = vmul.f32 %v1610_v45, %v1508_v28  ;;  %v1620_v53 = vmul.f32 %v1612_v46, %v5257_v33 }
 0xe57   :  { %v1633_v26 = vmul.f32 0.7978846, %v1625_v48  ;;  %v1635_v54 = vmul.f32 0.7978846, %v1627_v8  ;;  %v1621_v2 = vmul.f32 %v1613_v49, %v5261_v1  ;;  %v1623_v32 = vmul.f32 %v1615_v58, %v5263_v34 }
 0xe58   :  { %v1614_v59 = vmul.f32 %v1606_v50, %v1514_v11  ;;  %v1616_v60 = vmul.f32 %v1608_v51, %v1591_v47  ;;  %v1626_v61 = vadd.f32 %v1618_v52, %v1508_v28  ;;  %v1628_v62 = vadd.f32 %v1620_v53, %v5257_v33 }
 0xe59   :  { %4637 = vtanh.f32 %v1633_v26  ;;  %v1629_v31 = vadd.f32 %v1621_v2, %v5261_v1  ;;  %v1631_v10 = vadd.f32 %v1623_v32, %v5263_v34  ;;  %v1593_v36 = vmul.f32 0.5, %v5251_v21 }
 0xe5a   :  { %4639 = vtanh.f32 %v1635_v54  ;;  %v1634_v3 = vmul.f32 0.7978846, %v1626_v61  ;;  %v1636_v4 = vmul.f32 0.7978846, %v1628_v62  ;;  %v1622_v29 = vmul.f32 %v1614_v59, %v1514_v11 }
 0xe5b   :  { %v1624_v56 = vmul.f32 %v1616_v60, %v1591_v47  ;;  %v1637_v7 = vmul.f32 0.7978846, %v1629_v31  ;;  %v1639_v19 = vmul.f32 0.7978846, %v1631_v10  ;;  %v1596_v38 = vmul.f32 0.5, %v5257_v33  ;;  %v1974_v10 = vld [vmem:[#allocation3 + $0x2e8] sm:$0xff] }
 0xe5c   :  { %4641 = vtanh.f32 %v1634_v3  ;;  %v1630_v5 = vadd.f32 %v1622_v29, %v1514_v11  ;;  %v1595_v41 = vmul.f32 0.5, %v5253_v22  ;;  %v1598_v48 = vmul.f32 0.5, %v1514_v11 }
 0xe5d   :  { %4643 = vtanh.f32 %v1636_v4  ;;  %v1632_v6 = vadd.f32 %v1624_v56, %v1591_v47  ;;  %v1600_v21 = vmul.f32 0.5, %v1591_v47  ;;  %v1597_v33 = vmul.f32 0.5, %v5261_v1  ;;  %v3902_v1 = vld [vmem:[%s5696_s13] ss:$0 sm:$0xff] }
 0xe5e   :  { %v1638_v12 = vmul.f32 0.7978846, %v1630_v5  ;;  %4645 = vtanh.f32 %v1637_v7  ;;  %v1599_v22 = vmul.f32 0.5, %v5263_v34  ;;  %v1975_v7 = vld [vmem:[#allocation3 + $0x2f0] sm:$0xff] }
 0xe5f   :  { %v1640_v15 = vmul.f32 0.7978846, %v1632_v6  ;;  %1995 = vmatprep.subr.mxu1 %v1975_v7 }
 0xe60   :  { %4647 = vtanh.f32 %v1638_v12  ;;  %v1972_v12 = vld [vmem:[#allocation3 + $0x2d8] sm:$0xff] }
 0xe61   :  { %4649 = vtanh.f32 %v1640_v15  ;;  %v1971_v15 = vld [vmem:[#allocation3 + $0x2d0] sm:$0xff] }
 0xe62   :  { %4651 = vtanh.f32 %v1639_v19  ;;  %v1976_v19 = vld [vmem:[#allocation3 + $0x2f8] sm:$0xff] }
 0xe63   :  { %4391 = vmatprep.subr.mxu0 %v1976_v19 }
 0xe66   :  { %v4638_v16 = vpop.eup %4637 }
 0xe67   :  { %v4640_v18 = vpop.eup %4639  ;;  %v1649_v24 = vadd.f32 1.0, %v4638_v16  ;;  %v1969_v16 = vld [vmem:[#allocation3 + $0x2c0] sm:$0xff] }
 0xe68   :  { %v1651_v35 = vadd.f32 1.0, %v4640_v18  ;;  %v1973_v18 = vld [vmem:[#allocation3 + $0x2e0] sm:$0xff] }
 0xe69   :  { %v4642_v23 = vpop.eup %4641  ;;  %v1657_v44 = vmul.f32 %v1649_v24, %v1593_v36  ;;  %v1965_v24 = vld [vmem:[#allocation3 + $0x2a0] sm:$0xff] }
 0xe6a   :  { %v4644_v25 = vpop.eup %4643  ;;  %v1650_v0 = vadd.f32 1.0, %v4642_v23  ;;  %v1659_v46 = vmul.f32 %v1651_v35, %v1595_v41  ;;  %v1968_v23 = vld [vmem:[#allocation3 + $0x2b8] sm:$0xff]  ;;  %v1970_v41 = vld [vmem:[#allocation3 + $0x2c8] sm:$0xff] }
 0xe6b   :  { %v1652_v39 = vadd.f32 1.0, %v4644_v25  ;;  %v4646_v40 = vpop.eup %4645 }
 0xe6c   :  { %v1658_v37 = vmul.f32 %v1650_v0, %v1594_v27  ;;  %v1653_v30 = vadd.f32 1.0, %v4646_v40  ;;  %v1963_v40 = vld [vmem:[#allocation3 + $0x290] sm:$0xff] }
 0xe6d   :  { %v4648_v42 = vpop.eup %4647  ;;  %v1660_v43 = vmul.f32 %v1652_v39, %v1596_v38 }
 0xe6e   :  { %v4650_v45 = vpop.eup %4649  ;;  %1800 = vmatprep.mubr.f32.mxu1 %v1658_v37  ;;  %v1654_v28 = vadd.f32 1.0, %v4648_v42  ;;  %v1661_v53 = vmul.f32 %v1653_v30, %v1597_v33  ;;  %v1962_v37 = vld [vmem:[#allocation3 + $0x288] sm:$0xff]  ;;  %v1960_v42 = vld [vmem:[#allocation3 + $0x278] sm:$0xff]  ;;  %v1957_v30 = vld [vmem:[#allocation3 + $0x260] sm:$0xff] }
 0xe6f   :  { %v4652_v8 = vpop.eup %4651  ;;  %1875 = vmatprep.mubr.f32.mxu0 %v1660_v43  ;;  %1801 = vmatmul.mubr.f32.vlgmr.msra.gmra.mxu1 %v1657_v44  ;;  %v1656_v49 = vadd.f32 1.0, %v4650_v45  ;;  %v1967_v43 = vld [vmem:[#allocation3 + $0x2b0] sm:$0xff]  ;;  %v1964_v45 = vld [vmem:[#allocation3 + $0x298] sm:$0xff]  ;;  %v1950_v33 = vld [vmem:[#allocation3 + $0x228] sm:$0xff] }
 0xe70   :  { %1876 = vmatmul.mubr.f32.vlgmr.msra.gmra.mxu0 %v1659_v46  ;;  %v1662_v50 = vmul.f32 %v1654_v28, %v1598_v48  ;;  %v1655_v51 = vadd.f32 1.0, %v4652_v8  ;;  %1996 = vmatpush1.msra.mxu1 %v1974_v10  ;;  %v1959_v44 = vld [vmem:[#allocation3 + $0x270] sm:$0xff]  ;;  %v1956_v46 = vld [vmem:[#allocation3 + $0x258] sm:$0xff]  ;;  %v1954_v48 = vld [vmem:[#allocation3 + $0x248] sm:$0xff] }
 0xe71   :  { %v1664_v52 = vmul.f32 %v1656_v49, %v1600_v21  ;;  %1997 = vmatprep.subr.mxu1 %v1972_v12  ;;  %4392 = vmatpush3.msra.mxu0 %v1976_v19  ;;  %v1961_v28 = vld [vmem:[#allocation3 + $0x280] sm:$0xff]  ;;  %v1951_v21 = vld [vmem:[#allocation3 + $0x230] sm:$0xff]  ;;  %v1958_v49 = vld [vmem:[#allocation3 + $0x268] sm:$0xff] }
 0xe72   :  { %1805 = vmatprep.mubr.f32.mxu1 %v1662_v50  ;;  %v1663_v26 = vmul.f32 %v1655_v51, %v1599_v22  ;;  %1998 = vmatpush1.msra.mxu1 %v1971_v15  ;;  %v1953_v8 = vld [vmem:[#allocation3 + $0x240] sm:$0xff]  ;;  %v1948_v50 = vld [vmem:[#allocation3 + $0x218] sm:$0xff]  ;;  %v1955_v22 = vld [vmem:[#allocation3 + $0x250] sm:$0xff] }
 0xe73   :  { %1880 = vmatprep.mubr.f32.mxu0 %v1664_v52  ;;  %1806 = vmatmul.mubr.f32.gmra.mxu1 %v1661_v53  ;;  %v1947_v51 = vld [vmem:[#allocation3 + $0x210] sm:$0xff]  ;;  %v1945_v52 = vld [vmem:[#allocation3 + $0x200] sm:$0xff]  ;;  %v1952_v53 = vld [vmem:[#allocation3 + $0x238] sm:$0xff] }
 0xe74   :  { %1881 = vmatmul.mubr.f32.gmra.mxu0 %v1663_v26  ;;  %2059 = vmatprep.mubr.f32.mxu1 %v4840_v57  ;;  %v1944_v26 = vld [vmem:[#allocation3 + $0x1f8] sm:$0xff] }
 0xe75   :  { %4393 = vmatprep.subr.mxu0 %v1973_v18  ;;  %1999 = vmatprep.subr.mxu1 %v1969_v16  ;;  %v3903_v16 = vld [vmem:[%s5697_s14] ss:$0 sm:$0xff] }
 0xe76   :  { %4394 = vmatpush3.msra.mxu0 %v1973_v18  ;;  %2000 = vmatpush1.msra.mxu1 %v1968_v23  ;;  %v3904_v23 = vld [vmem:[%s5698_s15] ss:$0 sm:$0xff] }
 0xe77   :  { %4395 = vmatprep.subr.mxu0 %v1970_v41 }
 0xe78   :  { %4396 = vmatpush3.msra.mxu0 %v1970_v41 }
 0xe79   :  { %4397 = vmatprep.subr.mxu0 %v1967_v43 }
 0xe7a   :  { %4398 = vmatpush3.msra.mxu0 %v1967_v43 }
 0xe7b   :  { %4399 = vmatprep.subr.mxu0 %v1964_v45 }
 0xe7c   :  { %4400 = vmatpush3.msra.mxu0 %v1964_v45 }
 0xe7d   :  { %4401 = vmatprep.subr.mxu0 %v1961_v28 }
 0xe7e   :  { %4402 = vmatpush3.msra.mxu0 %v1961_v28 }
 0xe7f   :  { %4403 = vmatprep.subr.mxu0 %v1958_v49 }
 0xe80   :  { %4404 = vmatpush3.msra.mxu0 %v1958_v49 }
 0xe81   :  { %4405 = vmatprep.subr.mxu0 %v1955_v22 }
 0xe82   :  { %4406 = vmatpush3.msra.mxu0 %v1955_v22  ;;  %v5354_v22 = vld [vmem:[%s5715_s25 + $0x8] sm:$0xff] }
 0xe83   :  { %4407 = vmatprep.subr.mxu0 %v1952_v53 }
 0xe84   :  { %4408 = vmatpush3.msra.mxu0 %v1952_v53  ;;  %v5361_v53 = vld [vmem:[%s5715_s25] sm:$0xff] }
 0xf2f   :  { %v4060_v11 = vpop.f32.mrf.mxu1 }
 0xf30   :  { %v4098_v54 = vpop.f32.mrf.mxu0 }
 0xf31   :  { %v4061_v47 = vpop.f32.mrf.mxu1 }
 0xf32   :  { %v4062_v58 = vadd.f32 %v4061_v47, %v4060_v11  ;;  %v4099_v59 = vpop.f32.mrf.mxu0  ;;  %v1942_v11 = vld [vmem:[#allocation3 + $0x1e8] sm:$0xff]  ;;  %v1939_v47 = vld [vmem:[#allocation3 + $0x1d0] sm:$0xff] }
 0xf33   :  { %v4063_v34 = vpop.f32.mrf.mxu1  ;;  %v4100_v61 = vadd.f32 %v4099_v59, %v4098_v54  ;;  %v1949_v54 = vld [vmem:[#allocation3 + $0x220] sm:$0xff]  ;;  %v1938_v59 = vld [vmem:[#allocation3 + $0x1c8] sm:$0xff] }
 0xf34   :  { %v1803_v60 = vadd.f32 %v4062_v58, %v3902_v1  ;;  %v4101_v62 = vpop.f32.mrf.mxu0  ;;  %4409 = vmatprep.subr.mxu0 %v1949_v54  ;;  %v1946_v58 = vld [vmem:[#allocation3 + $0x208] sm:$0xff] }
 0xf35   :  { %v4064_v2 = vpop.f32.mrf.mxu1  ;;  %4410 = vmatpush3.msra.mxu0 %v1949_v54 }
 0xf36   :  { %v1878_v3 = vadd.f32 %v4100_v61, %v1803_v60  ;;  %v4065_v4 = vadd.f32 %v4064_v2, %v4063_v34  ;;  %v4102_v29 = vpop.f32.mrf.mxu0  ;;  %v1936_v34 = vld [vmem:[#allocation3 + $0x1b8] sm:$0xff]  ;;  %v1943_v60 = vld [vmem:[#allocation3 + $0x1f0] sm:$0xff]  ;;  %4411 = vmatprep.subr.mxu0 %v1946_v58 }
 0xf37   :  { %v4103_v31 = vadd.f32 %v4102_v29, %v4101_v62  ;;  %v1935_v61 = vld [vmem:[#allocation3 + $0x1b0] sm:$0xff]  ;;  %4412 = vmatpush3.msra.mxu0 %v1946_v58  ;;  %v1933_v62 = vld [vmem:[#allocation3 + $0x1a0] sm:$0xff]  ;;  %v1940_v2 = vld [vmem:[#allocation3 + $0x1d8] sm:$0xff] }
 0xf38   :  { %v1808_v56 = vadd.f32 %v4065_v4, %v3902_v1  ;;  %v1886_v32 = vadd.f32 %v1878_v3, %v5231_v63  ;;  %v1966_v63 = vld [vmem:[#allocation3 + $0x2a8] sm:$0xff]  ;;  %v1941_v1 = vld [vmem:[#allocation3 + $0x1e0] sm:$0xff]  ;;  %4413 = vmatprep.subr.mxu0 %v1943_v60  ;;  %v1932_v3 = vld [vmem:[#allocation3 + $0x198] sm:$0xff] }
 0xf39   :  { %2001 = vmatprep.subr.mxu1 %v1966_v63  ;;  %4414 = vmatpush3.msra.mxu0 %v1943_v60  ;;  %v1930_v4 = vld [vmem:[#allocation3 + $0x188] sm:$0xff]  ;;  %v1937_v29 = vld [vmem:[#allocation3 + $0x1c0] sm:$0xff] }
 0xf3a   :  { %v1883_v5 = vadd.f32 %v4103_v31, %v1808_v56  ;;  %1890 = vadd.xlane.f32.xlu1 %v1886_v32  ;;  %2002 = vmatpush1.msra.mxu1 %v1965_v24  ;;  %v1929_v56 = vld [vmem:[#allocation3 + $0x180] sm:$0xff]  ;;  %v1934_v31 = vld [vmem:[#allocation3 + $0x1a8] sm:$0xff] }
 0xf3b   :  { %2003 = vmatprep.subr.mxu1 %v1963_v40  ;;  %4415 = vmatprep.subr.mxu0 %v1940_v2 }
 0xf3c   :  { %v1887_v6 = vadd.f32 %v1883_v5, %v5238_v55  ;;  %2004 = vmatpush1.msra.mxu1 %v1962_v37  ;;  %4416 = vmatpush3.msra.mxu0 %v1940_v2 }
 0xf3d   :  { %2005 = vmatprep.subr.mxu1 %v1960_v42  ;;  %4417 = vmatprep.subr.mxu0 %v1937_v29 }
 0xf3e   :  { %1892 = vadd.xlane.f32.xlu0 %v1887_v6  ;;  %2006 = vmatpush1.msra.mxu1 %v1959_v44 }
 0xf3f   :  { %2007 = vmatprep.subr.mxu1 %v1957_v30  ;;  %4418 = vmatpush3.msra.mxu0 %v1937_v29 }
 0xf40   :  { %2008 = vmatpush1.msra.mxu1 %v1956_v46  ;;  %4419 = vmatprep.subr.mxu0 %v1934_v31 }
 0xf41   :  { %2009 = vmatprep.subr.mxu1 %v1954_v48  ;;  %4420 = vmatpush3.msra.mxu0 %v1934_v31 }
 0xf42   :  { %2010 = vmatpush1.msra.mxu1 %v1953_v8 }
 0xf43   :  { %2011 = vmatprep.subr.mxu1 %v1951_v21 }
 0xf44   :  { %2012 = vmatpush1.msra.mxu1 %v1950_v33 }
 0xf45   :  { %2013 = vmatprep.subr.mxu1 %v1948_v50 }
 0xf46   :  { %2014 = vmatpush1.msra.mxu1 %v1947_v51 }
 0xf47   :  { %2015 = vmatprep.subr.mxu1 %v1945_v52 }
 0xf48   :  { %2016 = vmatpush1.msra.mxu1 %v1944_v26 }
 0xf49   :  { %2017 = vmatprep.subr.mxu1 %v1942_v11 }
 0xf4a   :  { %2018 = vmatpush1.msra.mxu1 %v1941_v1 }
 0xf4b   :  { %2019 = vmatprep.subr.mxu1 %v1939_v47 }
 0xf4c   :  { %2020 = vmatpush1.msra.mxu1 %v1938_v59 }
 0xf4d   :  { %2021 = vmatprep.subr.mxu1 %v1936_v34 }
 0xf4e   :  { %2022 = vmatpush1.msra.mxu1 %v1935_v61 }
 0xf4f   :  { %2023 = vmatprep.subr.mxu1 %v1933_v62 }
 0xf50   :  { %2024 = vmatpush1.msra.mxu1 %v1932_v3 }
 0xf51   :  { %2025 = vmatprep.subr.mxu1 %v1930_v4 }
 0xf52   :  { %2026 = vmatpush1.msra.mxu1 %v1929_v56 }
 0xfc3   :  { %v1891_v55 = vpop.xlane.xlu1 %1890 }
 0xfc4   :  { %v1894_v25 = vmul.f32 0.0078125, %v1891_v55 }
 0xfc6   :  { %v5292_v27 = vsub.f32 %v1886_v32, %v1894_v25  ;;  %v1931_v32 = vld [vmem:[#allocation3 + $0x190] sm:$0xff] }
 0xfc7   :  { %v1893_v0 = vpop.xlane.xlu0 %1892  ;;  %4421 = vmatprep.subr.mxu0 %v1931_v32 }
 0xfc8   :  { %v1895_v35 = vmul.f32 0.0078125, %v1893_v0  ;;  %v1898_v36 = vmul.f32 %v5292_v27, %v5292_v27  ;;  %4422 = vmatpush3.msra.mxu0 %v1931_v32 }
 0xfca   :  { %v5296_v38 = vsub.f32 %v1887_v6, %v1895_v35  ;;  %1900 = vadd.xlane.f32.xlu1 %v1898_v36 }
 0xfcc   :  { %v1899_v39 = vmul.f32 %v5296_v38, %v5296_v38 }
 0xfce   :  { %1902 = vadd.xlane.f32.xlu0 %v1899_v39 }
0x1053   :  { %v1901_v5 = vpop.xlane.xlu1 %1900 }
0x1054   :  { %v1904_v6 = vmul.f32 0.0078125, %v1901_v5 }
0x1056   :  { %v1906_v7 = vadd.f32 1e-05, %v1904_v6 }
0x1057   :  { %v1903_v10 = vpop.xlane.xlu0 %1902 }
0x1058   :  { %4653 = vrsqrt.f32 %v1906_v7  ;;  %v1905_v12 = vmul.f32 0.0078125, %v1903_v10 }
0x105a   :  { %v1907_v15 = vadd.f32 1e-05, %v1905_v12 }
0x105c   :  { %4655 = vrsqrt.f32 %v1907_v15 }
0x1065   :  { %v4654_v19 = vpop.eup %4653 }
0x1066   :  { %v1910_v18 = vmul.f32 %v4654_v19, %v5292_v27  ;;  %v3905_v27 = vld [vmem:[%s5688_s5 + $0x3] sm:$0x7] }
0x1067   :  { %v1983_v36 = vrot.slane %v3905_v27, %v4999_v14  ;;  %v1987_v37 = vrot.slane %v3905_v27, %v5011_v20  ;;  %v1991_v30 = vrot.slane %v3905_v27, %v5006_v17 }
0x1068   :  { %v1918_v63 = vmul.f32 %v3903_v16, %v1910_v18 }
0x1069   :  { %v4656_v24 = vpop.eup %4655 }
0x106a   :  { %v5307_v55 = vadd.f32 %v3904_v23, %v1918_v63  ;;  %v1911_v25 = vmul.f32 %v4656_v24, %v5296_v38 }
0x106c   :  { %2060 = vmatmul.mubr.f32.vlgmr.msra.gmra.mxu1 %v5307_v55  ;;  %4423 = vmatprep.mubr.f32.mxu0 %v5307_v55  ;;  %v1919_v0 = vmul.f32 %v3903_v16, %v1911_v25 }
0x106d   :  { %2065 = vmatprep.mubr.f32.mxu1 %v4840_v57 }
0x106e   :  { %v5313_v35 = vadd.f32 %v3904_v23, %v1919_v0 }
0x1070   :  { %2066 = vmatmul.mubr.f32.gmra.mxu1 %v5313_v35  ;;  %4424 = vmatmul.mubr.f32.vlgmr.msra.gmra.mxu0 %v5313_v35 }
0x112c   :  { %v2061_v38 = vpop.f32.mrf.mxu1 }
0x112d   :  { %v5321_v39 = vadd.f32 %v2061_v38, %v1983_v36 }
0x112e   :  { %v2063_v40 = vpop.f32.mrf.mxu1 }
0x112f   :  { %4430 = vmatprep.mubr.msk.f32.mxu1 %vm371_vm0, %v5321_v39  ;;  %v5328_v44 = vadd.f32 %v2063_v40, %v1987_v37 }
0x1130   :  { %v2067_v41 = vpop.f32.mrf.mxu1  ;;  %v4425_v45 = vpop.f32.mrf.mxu0 }
0x1131   :  { %v5337_v46 = vadd.f32 %v4425_v45, %v1991_v30  ;;  %v5341_v28 = vadd.f32 %v2067_v41, %v1983_v36 }
0x1132   :  { %v2069_v42 = vpop.f32.mrf.mxu1  ;;  %v2138_v48 = vpop.f32.mrf.mxu0 }
0x1133   :  { %v5326_v43 = vadd.f32 %v2069_v42, %v1987_v37  ;;  %v5344_v8 = vadd.f32 %v2138_v48, %v1991_v30 }
0x1135   :  { %4426 = vmatprep.subr.msk.mxu1 %vm371_vm0, %v5326_v43 }
0x1136   :  { %4427 = vmatpush3.xpose.msk.msra.mxu1 %vm371_vm0, %v5326_v43 }
0x1137   :  { %4428 = vmatprep.subr.msk.mxu1 %vm371_vm0, %v5328_v44 }
0x113a   :  { %4429 = vmatpush3.xpose.msk.msra.mxu1 %vm371_vm0, %v5328_v44 }
0x113b   :  { %4433 = vmatprep.subr.mxu1 %v5337_v46 }
0x113d   :  { %4431 = vmatmul.mubr.msk.f32.vlgmr.msra.gmra.mxu1 %vm371_vm0, %v5341_v28 }
0x113e   :  { %4434 = vmatpush3.msra.mxu1 %v5337_v46 }
0x113f   :  { %4435 = vmatprep.subr.mxu1 %v5344_v8 }
0x1140   :  { %4436 = vmatpush3.msra.mxu1 %v5344_v8 }
0x11fd   :  { %v4432_v21 = vpop.f32.mrf.mxu1 }
0x11fe   :  { %v2235_v49 = vmul.f32 0.17677669, %v4432_v21 }
0x11ff   :  { %v2225_v33 = vpop.f32.mrf.mxu1 }
0x1200   :  { %v2234_v50 = vmul.f32 0.17677669, %v2225_v33  ;;  %v2237_v51 = vadd.f32 %v5354_v22, %v2235_v49 }
0x1202   :  { %v2241_v52 = vsel %vm463_vm1, %v2237_v51, -inf  ;;  %v2236_v26 = vadd.f32 %v5361_v53, %v2234_v50 }
0x1203   :  { %2242 = vmax.xlane.f32.xlu0 %v2241_v52 }
0x1204   :  { %v2238_v11 = vsel %vm463_vm1, %v2236_v26, -inf }
0x1205   :  { %2239 = vmax.xlane.f32.xlu1 %v2238_v11 }
0x1216   :  { %2347 = vrot.lane.b32.xlu1 %v5326_v43, %s4841_s27 }
0x121a   :  { %2341 = vrot.lane.b32.xlu1 %v5321_v39, %s4841_s27 }
0x128c   :  { %v2243_v54 = vpop.xlane.xlu0 %2242 }
0x128d   :  { %v2245_v1 = vsub.f32 %v2237_v51, %v2243_v54 }
0x128e   :  { %v2240_v47 = vpop.xlane.xlu1 %2239 }
0x128f   :  { %v2248_v58 = vmul.f32 1.442695, %v2245_v1  ;;  %v2244_v59 = vsub.f32 %v2236_v26, %v2240_v47 }
0x1291   :  { %4657 = vpow2.f32 %v2248_v58  ;;  %v2246_v34 = vmul.f32 1.442695, %v2244_v59 }
0x1292   :  { %v2348_v60 = vpop.permute.xlu1 %2347 }
0x1293   :  { %4659 = vpow2.f32 %v2246_v34  ;;  %4440 = vmatprep.subr.msk.mxu1 %vm371_vm0, %v2348_v60 }
0x1296   :  { %v2342_v4 = vpop.permute.xlu1 %2341 }
0x129e   :  { %v4658_v61 = vpop.eup %4657 }
0x129f   :  { %v2253_v62 = vsel %vm463_vm1, %v4658_v61, 0.0 }
0x12a0   :  { %v4660_v2 = vpop.eup %4659  ;;  %2254 = vadd.xlane.f32.xlu0 %v2253_v62 }
0x12a1   :  { %v2250_v3 = vsel %vm463_vm1, %v4660_v2, 0.0 }
0x12a2   :  { %2251 = vadd.xlane.f32.xlu1 %v2250_v3 }
0x12b3   :  { %2343 = vrot.lane.b32.xlu1 %v5341_v28, %s4841_s27 }
0x12b6   :  { %2345 = vrot.lane.b32.xlu0 %v5328_v44, %s4841_s27 }
0x1329   :  { %v2255_v29 = vpop.xlane.xlu0 %2254 }
0x132a   :  { %4661 = vrcp.f32 %v2255_v29 }
0x132b   :  { %v2252_v56 = vpop.xlane.xlu1 %2251 }
0x132c   :  { %4663 = vrcp.f32 %v2252_v56 }
0x132d   :  { %v2346_v7 = vpop.permute.xlu0 %2345 }
0x132f   :  { %v2344_v10 = vpop.permute.xlu1 %2343 }
0x1337   :  { %v4662_v31 = vpop.eup %4661 }
0x1338   :  { %v2259_v6 = vmul.f32 %v4662_v31, %v4658_v61 }
0x1339   :  { %v4664_v32 = vpop.eup %4663 }
0x133a   :  { %v2258_v5 = vmul.f32 %v4664_v32, %v4660_v2 }
0x133c   :  { %4437 = vmatprep.mubr.msk.f32.mxu1 %vm463_vm1, %v2258_v5 }
0x133d   :  { %4438 = vmatmul.mubr.msk.f32.vlgmr.msra.gmra.mxu1 %vm463_vm1, %v2259_v6 }
0x133e   :  { %4441 = vmatpush3.xpose.msk.msra.mxu1 %vm371_vm0, %v2348_v60  ;;  %4444 = vmatprep.mubr.msk.f32.mxu1 %vm371_vm0, %v2342_v4 }
0x133f   :  { %4442 = vmatprep.subr.msk.mxu1 %vm371_vm0, %v2346_v7 }
0x1342   :  { %4443 = vmatpush3.xpose.msk.msra.mxu1 %vm371_vm0, %v2346_v7 }
0x1345   :  { %4445 = vmatmul.mubr.msk.f32.vlgmr.msra.gmra.mxu1 %vm371_vm0, %v2344_v10 }
0x13fd   :  { %v5383_v12 = vpop.f32.mrf.mxu1 }
0x13ff   :  { %v5385_v15 = vpop.f32.mrf.mxu1 }
0x1405   :  { %v4446_v19 = vpop.f32.mrf.mxu1 }
0x1406   :  { %v2433_v16 = vmul.f32 0.17677669, %v4446_v19 }
0x1407   :  { %v2423_v18 = vpop.f32.mrf.mxu1 }
0x1408   :  { %v2432_v23 = vmul.f32 0.17677669, %v2423_v18  ;;  %v2435_v63 = vadd.f32 %v5354_v22, %v2433_v16 }
0x140a   :  { %v2439_v24 = vsel %vm463_vm1, %v2435_v63, -inf  ;;  %v2434_v25 = vadd.f32 %v5361_v53, %v2432_v23 }
0x140b   :  { %2440 = vmax.xlane.f32.xlu0 %v2439_v24 }
0x140c   :  { %v2436_v0 = vsel %vm463_vm1, %v2434_v25, -inf }
0x140d   :  { %2437 = vmax.xlane.f32.xlu1 %v2436_v0 }
0x141e   :  { %2462 = vrot.lane.b32.xlu1 %v5337_v46, %s4841_s27 }
0x1422   :  { %2553 = vrot.lane.b32.xlu1 %v5326_v43, %s4842_s28 }
0x1426   :  { %2551 = vrot.lane.b32.xlu1 %v5328_v44, %s4842_s28 }
0x142a   :  { %2547 = vrot.lane.b32.xlu1 %v5321_v39, %s4842_s28 }
0x142e   :  { %2549 = vrot.lane.b32.xlu1 %v5341_v28, %s4842_s28 }
0x1432   :  { %2751 = vrot.lane.b32.xlu1 %v5321_v39, %s4833_s3 }
0x1494   :  { %v2441_v27 = vpop.xlane.xlu0 %2440 }
0x1495   :  { %v2443_v36 = vsub.f32 %v2435_v63, %v2441_v27 }
0x1496   :  { %v2438_v38 = vpop.xlane.xlu1 %2437 }
0x1497   :  { %v2446_v40 = vmul.f32 1.442695, %v2443_v36  ;;  %v2442_v41 = vsub.f32 %v2434_v25, %v2438_v38 }
0x1499   :  { %4665 = vpow2.f32 %v2446_v40  ;;  %v2444_v37 = vmul.f32 1.442695, %v2442_v41 }
0x149a   :  { %v2463_v42 = vpop.permute.xlu1 %2462 }
0x149b   :  { %4667 = vpow2.f32 %v2444_v37  ;;  %4447 = vmatprep.subr.mxu1 %v2463_v42 }
0x149c   :  { %4448 = vmatpush3.msra.mxu1 %v2463_v42 }
0x149e   :  { %v2554_v33 = vpop.permute.xlu1 %2553 }
0x14a2   :  { %v2552_v51 = vpop.permute.xlu1 %2551 }
0x14a6   :  { %v4666_v30 = vpop.eup %4665 }
0x14a7   :  { %v2451_v45 = vsel %vm463_vm1, %v4666_v30, 0.0 }
0x14a8   :  { %v4668_v48 = vpop.eup %4667  ;;  %2452 = vadd.xlane.f32.xlu0 %v2451_v45 }
0x14a9   :  { %v2448_v21 = vsel %vm463_vm1, %v4668_v48, 0.0 }
0x14ac   :  { %2449 = vadd.xlane.f32.xlu0 %v2448_v21 }
0x14c2   :  { %2460 = vrot.lane.b32.xlu0 %v5344_v8, %s4841_s27 }
0x14c6   :  { %2757 = vrot.lane.b32.xlu0 %v5326_v43, %s4833_s3  ;;  %v2548_v43 = vpop.permute.xlu1 %2547 }
0x14ca   :  { %2755 = vrot.lane.b32.xlu0 %v5328_v44, %s4833_s3  ;;  %v2550_v44 = vpop.permute.xlu1 %2549 }
0x14ce   :  { %2753 = vrot.lane.b32.xlu0 %v5341_v28, %s4833_s3  ;;  %v2752_v1 = vpop.permute.xlu1 %2751 }
0x1531   :  { %v2453_v39 = vpop.xlane.xlu0 %2452 }
0x1532   :  { %4669 = vrcp.f32 %v2453_v39 }
0x1535   :  { %v2450_v49 = vpop.xlane.xlu0 %2449 }
0x1536   :  { %4671 = vrcp.f32 %v2450_v49 }
0x1539   :  { %v2461_v50 = vpop.permute.xlu0 %2460 }
0x153a   :  { %4449 = vmatprep.subr.mxu1 %v2461_v50 }
0x153b   :  { %4450 = vmatpush3.msra.mxu1 %v2461_v50 }
0x153c   :  { %4454 = vmatprep.subr.msk.mxu1 %vm371_vm0, %v2554_v33 }
0x153d   :  { %v2758_v28 = vpop.permute.xlu0 %2757 }
0x153f   :  { %v4670_v52 = vpop.eup %4669 }
0x1540   :  { %v2457_v54 = vmul.f32 %v4670_v52, %v4666_v30 }
0x1541   :  { %v2756_v47 = vpop.permute.xlu0 %2755 }
0x1543   :  { %v4672_v26 = vpop.eup %4671 }
0x1544   :  { %v2456_v11 = vmul.f32 %v4672_v26, %v4668_v48 }
0x1545   :  { %v2754_v58 = vpop.permute.xlu0 %2753 }
0x1546   :  { %4451 = vmatprep.mubr.msk.f32.mxu1 %vm463_vm1, %v2456_v11 }
0x1547   :  { %4452 = vmatmul.mubr.msk.f32.vlgmr.msra.gmra.mxu1 %vm463_vm1, %v2457_v54 }
0x1548   :  { %4455 = vmatpush3.xpose.msk.msra.mxu1 %vm371_vm0, %v2554_v33  ;;  %4458 = vmatprep.mubr.msk.f32.mxu1 %vm371_vm0, %v2548_v43 }
0x1549   :  { %4456 = vmatprep.subr.msk.mxu1 %vm371_vm0, %v2552_v51 }
0x154c   :  { %4457 = vmatpush3.xpose.msk.msra.mxu1 %vm371_vm0, %v2552_v51 }
0x154d   :  { %4468 = vmatprep.subr.msk.mxu1 %vm371_vm0, %v2758_v28 }
0x154f   :  { %4459 = vmatmul.mubr.msk.f32.vlgmr.msra.gmra.mxu1 %vm371_vm0, %v2550_v44 }
0x1550   :  { %4469 = vmatpush3.xpose.msk.msra.mxu1 %vm371_vm0, %v2758_v28  ;;  %4472 = vmatprep.mubr.msk.f32.mxu1 %vm371_vm0, %v2752_v1 }
0x1551   :  { %4470 = vmatprep.subr.msk.mxu1 %vm371_vm0, %v2756_v47 }
0x1554   :  { %4471 = vmatpush3.xpose.msk.msra.mxu1 %vm371_vm0, %v2756_v47 }
0x1557   :  { %4473 = vmatmul.mubr.msk.f32.vlgmr.msra.gmra.mxu1 %vm371_vm0, %v2754_v58 }
0x1558   :  { %3281 = vmatprep.mubr.f32.mxu1 %v4840_v57 }
0x1607   :  { %v4453_v59 = vpop.f32.mrf.mxu1 }
0x1609   :  { %v2538_v34 = vpop.f32.mrf.mxu1 }
0x160a   :  { %v4582_v60 = vpack.i.bf16 %v4453_v59, %v2538_v34  ;;  %v3945_v34 = vld [vmem:[%s5689_s6 + $0xf8] sm:$0xff] }
0x160f   :  { %v4460_v61 = vpop.f32.mrf.mxu1 }
0x1610   :  { %v2639_v62 = vmul.f32 0.17677669, %v4460_v61  ;;  %v3943_v61 = vld [vmem:[%s5689_s6 + $0xe8] sm:$0xff] }
0x1611   :  { %v2629_v2 = vpop.f32.mrf.mxu1 }
0x1612   :  { %v2638_v3 = vmul.f32 0.17677669, %v2629_v2  ;;  %v2641_v4 = vadd.f32 %v5354_v22, %v2639_v62  ;;  %v3942_v62 = vld [vmem:[%s5689_s6 + $0xe0] sm:$0xff]  ;;  %v3941_v2 = vld [vmem:[%s5689_s6 + $0xd8] sm:$0xff] }
0x1614   :  { %v2645_v29 = vsel %vm463_vm1, %v2641_v4, -inf  ;;  %v2640_v56 = vadd.f32 %v5361_v53, %v2638_v3 }
0x1615   :  { %2646 = vmax.xlane.f32.xlu0 %v2645_v29 }
0x1616   :  { %v2642_v31 = vsel %vm463_vm1, %v2640_v56, -inf }
0x1617   :  { %2643 = vmax.xlane.f32.xlu1 %v2642_v31  ;;  %v4474_v32 = vpop.f32.mrf.mxu1 }
0x1618   :  { %v2843_v6 = vmul.f32 0.17677669, %v4474_v32  ;;  %v3938_v32 = vld [vmem:[%s5689_s6 + $0xc0] sm:$0xff] }
0x1619   :  { %v2833_v5 = vpop.f32.mrf.mxu1 }
0x161a   :  { %v2842_v7 = vmul.f32 0.17677669, %v2833_v5  ;;  %v2845_v16 = vadd.f32 %v5354_v22, %v2843_v6  ;;  %v3937_v5 = vld [vmem:[%s5689_s6 + $0xb8] sm:$0xff]  ;;  %v3936_v6 = vld [vmem:[%s5689_s6 + $0xb0] sm:$0xff] }
0x161c   :  { %v2844_v10 = vadd.f32 %v5361_v53, %v2842_v7  ;;  %v2849_v18 = vsel %vm463_vm1, %v2845_v16, -inf  ;;  %v3935_v7 = vld [vmem:[%s5689_s6 + $0xa8] sm:$0xff] }
0x161e   :  { %v2846_v19 = vsel %vm463_vm1, %v2844_v10, -inf }
0x161f   :  { %2847 = vmax.xlane.f32.xlu0 %v2846_v19  ;;  %v3933_v19 = vld [vmem:[%s5689_s6 + $0x98] sm:$0xff] }
0x1623   :  { %2850 = vmax.xlane.f32.xlu0 %v2849_v18  ;;  %v3931_v18 = vld [vmem:[%s5689_s6 + $0x88] sm:$0xff] }
0x1628   :  { %2666 = vrot.lane.b32.xlu1 %v5337_v46, %s4842_s28 }
0x169e   :  { %v2647_v23 = vpop.xlane.xlu0 %2646 }
0x169f   :  { %v2649_v63 = vsub.f32 %v2641_v4, %v2647_v23  ;;  %v3940_v4 = vld [vmem:[%s5689_s6 + $0xd0] sm:$0xff]  ;;  %v3930_v23 = vld [vmem:[%s5689_s6 + $0x80] sm:$0xff] }
0x16a0   :  { %v2644_v24 = vpop.xlane.xlu1 %2643 }
0x16a1   :  { %v2652_v25 = vmul.f32 1.442695, %v2649_v63  ;;  %v2648_v0 = vsub.f32 %v2640_v56, %v2644_v24  ;;  %v3939_v56 = vld [vmem:[%s5689_s6 + $0xc8] sm:$0xff] }
0x16a3   :  { %4673 = vpow2.f32 %v2652_v25  ;;  %v2650_v27 = vmul.f32 1.442695, %v2648_v0 }
0x16a4   :  { %v2667_v36 = vpop.permute.xlu1 %2666 }
0x16a5   :  { %4675 = vpow2.f32 %v2650_v27  ;;  %4461 = vmatprep.subr.mxu0 %v2667_v36 }
0x16a6   :  { %4462 = vmatpush3.msra.mxu0 %v2667_v36 }
0x16a8   :  { %v2848_v53 = vpop.xlane.xlu0 %2847 }
0x16a9   :  { %v2852_v21 = vsub.f32 %v2844_v10, %v2848_v53  ;;  %v3934_v10 = vld [vmem:[%s5689_s6 + $0xa0] sm:$0xff] }
0x16ab   :  { %v2854_v39 = vmul.f32 1.442695, %v2852_v21 }
0x16ac   :  { %v2851_v22 = vpop.xlane.xlu0 %2850 }
0x16ad   :  { %v2853_v38 = vsub.f32 %v2845_v16, %v2851_v22  ;;  %v3932_v16 = vld [vmem:[%s5689_s6 + $0x90] sm:$0xff] }
0x16af   :  { %v2856_v40 = vmul.f32 1.442695, %v2853_v38 }
0x16b0   :  { %v4674_v41 = vpop.eup %4673 }
0x16b1   :  { %4677 = vpow2.f32 %v2856_v40  ;;  %v2657_v37 = vsel %vm463_vm1, %v4674_v41, 0.0 }
0x16b2   :  { %v4676_v42 = vpop.eup %4675  ;;  %2658 = vadd.xlane.f32.xlu0 %v2657_v37  ;;  %4679 = vpow2.f32 %v2854_v39 }
0x16b3   :  { %v2654_v30 = vsel %vm463_vm1, %v4676_v42, 0.0 }
0x16b4   :  { %2655 = vadd.xlane.f32.xlu1 %v2654_v30 }
0x16be   :  { %v4678_v45 = vpop.eup %4677 }
0x16bf   :  { %v2861_v48 = vsel %vm463_vm1, %v4678_v45, 0.0  ;;  %v4680_v49 = vpop.eup %4679 }
0x16c0   :  { %2862 = vadd.xlane.f32.xlu0 %v2861_v48  ;;  %v2858_v33 = vsel %vm463_vm1, %v4680_v49, 0.0 }
0x16c5   :  { %2870 = vrot.lane.b32.xlu1 %v5337_v46, %s4833_s3 }
0x16d6   :  { %2664 = vrot.lane.b32.xlu0 %v5344_v8, %s4842_s28 }
0x16e9   :  { %2859 = vadd.xlane.f32.xlu1 %v2858_v33 }
0x16fa   :  { %2868 = vrot.lane.b32.xlu1 %v5344_v8, %s4833_s3 }
0x16fe   :  { %4583 = vrot.lane.b32.xlu1 %v4582_v60, %s4833_s3  ;;  %v3944_v60 = vld [vmem:[%s5689_s6 + $0xf0] sm:$0xff] }
0x173b   :  { %v2659_v50 = vpop.xlane.xlu0 %2658 }
0x173c   :  { %4681 = vrcp.f32 %v2659_v50 }
0x173d   :  { %v2656_v51 = vpop.xlane.xlu1 %2655 }
0x173e   :  { %4683 = vrcp.f32 %v2656_v51 }
0x1741   :  { %v2871_v44 = vpop.permute.xlu1 %2870 }
0x1749   :  { %v2863_v46 = vpop.xlane.xlu0 %2862  ;;  %v4682_v52 = vpop.eup %4681 }
0x174a   :  { %v2663_v54 = vmul.f32 %v4682_v52, %v4674_v41  ;;  %4685 = vrcp.f32 %v2863_v46  ;;  %v3191_v52 = vld [vmem:[#allocation6 + $0x3e8] sm:$0xff] }
0x174b   :  { %v4684_v26 = vpop.eup %4683  ;;  %3217 = vmatprep.subr.mxu1 %v3191_v52  ;;  %v3142_v52 = vld [vmem:[#allocation6 + $0x260] sm:$0xff] }
0x174c   :  { %v2662_v43 = vmul.f32 %v4684_v26, %v4676_v42  ;;  %v3193_v26 = vld [vmem:[#allocation6 + $0x3f8] sm:$0xff] }
0x174d   :  { %v2665_v11 = vpop.permute.xlu0 %2664 }
0x174e   :  { %4463 = vmatprep.subr.mxu0 %v2665_v11  ;;  %4465 = vmatprep.mubr.msk.f32.mxu0 %vm463_vm1, %v2662_v43  ;;  %v3190_v43 = vld [vmem:[#allocation6 + $0x3e0] sm:$0xff] }
0x174f   :  { %4464 = vmatpush3.msra.mxu0 %v2665_v11  ;;  %v3192_v11 = vld [vmem:[#allocation6 + $0x3f0] sm:$0xff]  ;;  %3218 = vmatpush1.msra.mxu1 %v3190_v43  ;;  %v3139_v43 = vld [vmem:[#allocation6 + $0x248] sm:$0xff] }
0x1750   :  { %4466 = vmatmul.mubr.msk.f32.vlgmr.msra.gmra.mxu0 %vm463_vm1, %v2663_v54  ;;  %4475 = vmatprep.subr.mxu0 %v2871_v44  ;;  %v3187_v54 = vld [vmem:[#allocation6 + $0x3c8] sm:$0xff] }
0x1751   :  { %4476 = vmatpush3.msra.mxu0 %v2871_v44  ;;  %v3189_v44 = vld [vmem:[#allocation6 + $0x3d8] sm:$0xff]  ;;  %3219 = vmatprep.subr.mxu1 %v3187_v54  ;;  %v3138_v54 = vld [vmem:[#allocation6 + $0x240] sm:$0xff] }
0x1757   :  { %v4686_v1 = vpop.eup %4685 }
0x1758   :  { %v2867_v59 = vmul.f32 %v4686_v1, %v4678_v45  ;;  %v3183_v1 = vld [vmem:[#allocation6 + $0x3a8] sm:$0xff] }
0x1772   :  { %v2860_v8 = vpop.xlane.xlu1 %2859 }
0x1773   :  { %4687 = vrcp.f32 %v2860_v8  ;;  %v3186_v8 = vld [vmem:[#allocation6 + $0x3c0] sm:$0xff] }
0x1774   :  { %3220 = vmatpush1.msra.mxu1 %v3186_v8  ;;  %v3135_v8 = vld [vmem:[#allocation6 + $0x228] sm:$0xff] }
0x1775   :  { %3221 = vmatprep.subr.mxu1 %v3183_v1  ;;  %v3134_v1 = vld [vmem:[#allocation6 + $0x220] sm:$0xff] }
0x1776   :  { %v2869_v28 = vpop.permute.xlu1 %2868 }
0x1777   :  { %4477 = vmatprep.subr.mxu0 %v2869_v28 }
0x1778   :  { %4478 = vmatpush3.msra.mxu0 %v2869_v28  ;;  %v3188_v28 = vld [vmem:[#allocation6 + $0x3d0] sm:$0xff] }
0x1779   :  { %4482 = vmatprep.subr.mxu0 %v3945_v34 }
0x177a   :  { %v4584_v0 = vpop.permute.xlu1 %4583 }
0x177b   :  { %v4586_v36 = vunpack.i.h.bf16 %v4584_v0  ;;  %v4585_v53 = vunpack.i.l.bf16 %v4584_v0  ;;  %v3163_v0 = vld [vmem:[#allocation6 + $0x308] sm:$0xff] }
0x177d   :  { %v2980_v41 = vsel %vm371_vm0, %v5383_v12, %v4586_v36  ;;  %v2979_v30 = vsel %vm371_vm0, %v5385_v15, %v4585_v53  ;;  %v3947_v12 = vld [vmem:[%s5690_s7 + $0x1] ss:$0 sm:$0xff]  ;;  %v3164_v53 = vld [vmem:[#allocation6 + $0x310] sm:$0xff] }
0x177e   :  { %v3162_v36 = vld [vmem:[#allocation6 + $0x300] sm:$0xff] }
0x1780   :  { %v4688_v47 = vpop.eup %4687 }
0x1781   :  { %v2866_v58 = vmul.f32 %v4688_v47, %v4680_v49  ;;  %v3182_v47 = vld [vmem:[#allocation6 + $0x3a0] sm:$0xff] }
0x1782   :  { %3222 = vmatpush1.msra.mxu1 %v3182_v47  ;;  %v3131_v47 = vld [vmem:[#allocation6 + $0x208] sm:$0xff] }
0x1783   :  { %4479 = vmatprep.mubr.msk.f32.mxu0 %vm463_vm1, %v2866_v58  ;;  %v3184_v58 = vld [vmem:[#allocation6 + $0x3b0] sm:$0xff] }
0x1784   :  { %4480 = vmatmul.mubr.msk.f32.vlgmr.msra.gmra.mxu0 %vm463_vm1, %v2867_v59  ;;  %v3181_v59 = vld [vmem:[#allocation6 + $0x398] sm:$0xff] }
0x1785   :  { %4483 = vmatpush3.msra.mxu0 %v3945_v34  ;;  %v3178_v34 = vld [vmem:[#allocation6 + $0x380] sm:$0xff] }
0x1786   :  { %4484 = vmatprep.subr.mxu0 %v3944_v60 }
0x1787   :  { %4485 = vmatpush3.msra.mxu0 %v3944_v60  ;;  %v3180_v60 = vld [vmem:[#allocation6 + $0x390] sm:$0xff] }
0x1788   :  { %4486 = vmatprep.subr.mxu0 %v3943_v61 }
0x1789   :  { %4487 = vmatpush3.msra.mxu0 %v3943_v61 }
0x178a   :  { %4488 = vmatprep.subr.mxu0 %v3942_v62 }
0x178b   :  { %4489 = vmatpush3.msra.mxu0 %v3942_v62 }
0x178c   :  { %4490 = vmatprep.subr.mxu0 %v3941_v2 }
0x178d   :  { %4491 = vmatpush3.msra.mxu0 %v3941_v2 }
0x178e   :  { %4492 = vmatprep.subr.mxu0 %v3940_v4 }
0x178f   :  { %4493 = vmatpush3.msra.mxu0 %v3940_v4 }
0x1790   :  { %4494 = vmatprep.subr.mxu0 %v3939_v56 }
0x1791   :  { %4495 = vmatpush3.msra.mxu0 %v3939_v56 }
0x1792   :  { %4496 = vmatprep.subr.mxu0 %v3938_v32 }
0x1793   :  { %4497 = vmatpush3.msra.mxu0 %v3938_v32  ;;  %v3175_v32 = vld [vmem:[#allocation6 + $0x368] sm:$0xff] }
0x1794   :  { %4498 = vmatprep.subr.mxu0 %v3937_v5 }
0x1795   :  { %4499 = vmatpush3.msra.mxu0 %v3937_v5  ;;  %v3177_v5 = vld [vmem:[#allocation6 + $0x378] sm:$0xff] }
0x1796   :  { %4500 = vmatprep.subr.mxu0 %v3936_v6 }
0x1797   :  { %4501 = vmatpush3.msra.mxu0 %v3936_v6  ;;  %v3174_v6 = vld [vmem:[#allocation6 + $0x360] sm:$0xff] }
0x1798   :  { %4502 = vmatprep.subr.mxu0 %v3935_v7 }
0x1799   :  { %4503 = vmatpush3.msra.mxu0 %v3935_v7  ;;  %v3176_v7 = vld [vmem:[#allocation6 + $0x370] sm:$0xff] }
0x179a   :  { %4504 = vmatprep.subr.mxu0 %v3934_v10 }
0x179b   :  { %4505 = vmatpush3.msra.mxu0 %v3934_v10  ;;  %v3171_v10 = vld [vmem:[#allocation6 + $0x348] sm:$0xff] }
0x179c   :  { %4506 = vmatprep.subr.mxu0 %v3933_v19 }
0x179d   :  { %4507 = vmatpush3.msra.mxu0 %v3933_v19  ;;  %v3173_v19 = vld [vmem:[#allocation6 + $0x358] sm:$0xff] }
0x179e   :  { %4508 = vmatprep.subr.mxu0 %v3932_v16 }
0x179f   :  { %4509 = vmatpush3.msra.mxu0 %v3932_v16  ;;  %v3170_v16 = vld [vmem:[#allocation6 + $0x340] sm:$0xff] }
0x17a0   :  { %4510 = vmatprep.subr.mxu0 %v3931_v18 }
0x17a1   :  { %4511 = vmatpush3.msra.mxu0 %v3931_v18  ;;  %v3172_v18 = vld [vmem:[#allocation6 + $0x350] sm:$0xff] }
0x17a2   :  { %4512 = vmatprep.subr.mxu0 %v3930_v23 }
0x17a3   :  { %4513 = vmatpush3.msra.mxu0 %v3930_v23  ;;  %v3167_v23 = vld [vmem:[#allocation6 + $0x328] sm:$0xff] }
0x17a4   :  { %3294 = vmatprep.subr.mxu0 %v3193_v26  ;;  %v3144_v26 = vld [vmem:[#allocation6 + $0x270] sm:$0xff] }
0x1810   :  { %v4467_v3 = vpop.f32.mrf.mxu0 }
0x1812   :  { %v2742_v29 = vpop.f32.mrf.mxu0 }
0x1813   :  { %v4587_v31 = vpack.i.bf16 %v4467_v3, %v2742_v29 }
0x1815   :  { %4588 = vrot.lane.b32.xlu0 %v4587_v31, %s4842_s28 }
0x1844   :  { %v4481_v63 = vpop.f32.mrf.mxu0 }
0x1846   :  { %v2946_v24 = vpop.f32.mrf.mxu0 }
0x1847   :  { %v4592_v25 = vpack.i.bf16 %v4481_v63, %v2946_v24  ;;  %v3169_v63 = vld [vmem:[#allocation6 + $0x338] sm:$0xff]  ;;  %v3166_v24 = vld [vmem:[#allocation6 + $0x320] sm:$0xff] }
0x1849   :  { %4593 = vrot.lane.b32.xlu1 %v4592_v25, %s4841_s27  ;;  %v3168_v25 = vld [vmem:[#allocation6 + $0x330] sm:$0xff] }
0x1887   :  { %v4589_v27 = vpop.permute.xlu0 %4588 }
0x1888   :  { %v4591_v22 = vunpack.i.h.bf16 %v4589_v27  ;;  %v4590_v38 = vunpack.i.l.bf16 %v4589_v27  ;;  %v3165_v27 = vld [vmem:[#allocation6 + $0x318] sm:$0xff] }
0x188a   :  { %v2981_v45 = vsel %vm1207_vm2, %v2979_v30, %v4590_v38  ;;  %v2982_v48 = vsel %vm1207_vm2, %v2980_v41, %v4591_v22  ;;  %v3159_v22 = vld [vmem:[#allocation6 + $0x2e8] sm:$0xff]  ;;  %v3161_v38 = vld [vmem:[#allocation6 + $0x2f8] sm:$0xff]  ;;  %v3160_v41 = vld [vmem:[#allocation6 + $0x2f0] sm:$0xff] }
0x188b   :  { %v3154_v30 = vld [vmem:[#allocation6 + $0x2c0] sm:$0xff] }
0x18bb   :  { %v4594_v40 = vpop.permute.xlu1 %4593 }
0x18bc   :  { %v4596_v37 = vunpack.i.h.bf16 %v4594_v40  ;;  %v4595_v42 = vunpack.i.l.bf16 %v4594_v40  ;;  %v3158_v40 = vld [vmem:[#allocation6 + $0x2e0] sm:$0xff] }
0x18be   :  { %v2983_v21 = vsel %vm1210_vm3, %v2981_v45, %v4595_v42  ;;  %v2984_v39 = vsel %vm1210_vm3, %v2982_v48, %v4596_v37  ;;  %v3155_v37 = vld [vmem:[#allocation6 + $0x2c8] sm:$0xff]  ;;  %v3157_v42 = vld [vmem:[#allocation6 + $0x2d8] sm:$0xff]  ;;  %v3156_v45 = vld [vmem:[#allocation6 + $0x2d0] sm:$0xff] }
0x18bf   :  { %4514 = vmatprep.mubr.f32.mxu0 %v2983_v21  ;;  %v3151_v48 = vld [vmem:[#allocation6 + $0x2a8] sm:$0xff]  ;;  %v3153_v21 = vld [vmem:[#allocation6 + $0x2b8] sm:$0xff] }
0x18c0   :  { %4515 = vmatmul.mubr.f32.vlgmr.msra.gmra.mxu0 %v2984_v39  ;;  %v3150_v39 = vld [vmem:[#allocation6 + $0x2a0] sm:$0xff] }
0x18c1   :  { %3358 = vmatprep.mubr.f32.mxu0 %v4840_v57  ;;  %3295 = vmatpush1.msra.mxu0 %v3192_v11  ;;  %v3141_v11 = vld [vmem:[#allocation6 + $0x258] sm:$0xff] }
0x18c2   :  { %3296 = vmatprep.subr.mxu0 %v3189_v44  ;;  %v3140_v44 = vld [vmem:[#allocation6 + $0x250] sm:$0xff] }
0x18c3   :  { %3297 = vmatpush1.msra.mxu0 %v3188_v28  ;;  %v3137_v28 = vld [vmem:[#allocation6 + $0x238] sm:$0xff] }
0x1980   :  { %v4516_v49 = vpop.f32.mrf.mxu0 }
0x1981   :  { %v3082_v33 = vadd.f32 %v4516_v49, %v3947_v12  ;;  %v3147_v49 = vld [vmem:[#allocation6 + $0x288] sm:$0xff] }
0x1982   :  { %v3076_v50 = vpop.f32.mrf.mxu0 }
0x1983   :  { %v3077_v15 = vadd.f32 %v3947_v12, %v3076_v50  ;;  %v3086_v51 = vadd.f32 %v3082_v33, %v5313_v35  ;;  %v3185_v35 = vld [vmem:[#allocation6 + $0x3b8] sm:$0xff]  ;;  %v3152_v12 = vld [vmem:[#allocation6 + $0x2b0] sm:$0xff]  ;;  %v3146_v50 = vld [vmem:[#allocation6 + $0x280] sm:$0xff] }
0x1984   :  { %3298 = vmatprep.subr.mxu0 %v3185_v35  ;;  %v3149_v33 = vld [vmem:[#allocation6 + $0x298] sm:$0xff]  ;;  %v3136_v35 = vld [vmem:[#allocation6 + $0x230] sm:$0xff] }
0x1985   :  { %3093 = vadd.xlane.f32.xlu1 %v3086_v51  ;;  %v3085_v46 = vadd.f32 %v3077_v15, %v5307_v55  ;;  %v3179_v55 = vld [vmem:[#allocation6 + $0x388] sm:$0xff]  ;;  %3299 = vmatpush1.msra.mxu0 %v3184_v58  ;;  %v3148_v15 = vld [vmem:[#allocation6 + $0x290] sm:$0xff]  ;;  %v3133_v58 = vld [vmem:[#allocation6 + $0x218] sm:$0xff] }
0x1986   :  { %3223 = vmatprep.subr.mxu1 %v3179_v55  ;;  %3300 = vmatprep.subr.mxu0 %v3181_v59  ;;  %v3130_v55 = vld [vmem:[#allocation6 + $0x200] sm:$0xff]  ;;  %v3132_v59 = vld [vmem:[#allocation6 + $0x210] sm:$0xff] }
0x1987   :  { %3091 = vadd.xlane.f32.xlu0 %v3085_v46  ;;  %3224 = vmatpush1.msra.mxu1 %v3178_v34 }
0x1988   :  { %3301 = vmatpush1.msra.mxu0 %v3180_v60  ;;  %3225 = vmatprep.subr.mxu1 %v3175_v32 }
0x1989   :  { %3302 = vmatprep.subr.mxu0 %v3177_v5  ;;  %3226 = vmatpush1.msra.mxu1 %v3174_v6  ;;  %v3951_v5 = vld [vmem:[%s5692_s9 + $0x1] ss:$0 sm:$0xff] }
0x198a   :  { %3303 = vmatpush1.msra.mxu0 %v3176_v7  ;;  %3227 = vmatprep.subr.mxu1 %v3171_v10 }
0x198b   :  { %3304 = vmatprep.subr.mxu0 %v3173_v19  ;;  %3228 = vmatpush1.msra.mxu1 %v3170_v16 }
0x198c   :  { %3305 = vmatpush1.msra.mxu0 %v3172_v18  ;;  %3229 = vmatprep.subr.mxu1 %v3167_v23  ;;  %v3475_v18 = vld [vmem:[#allocation8 + $0x2f8] sm:$0xff] }
0x198d   :  { %3306 = vmatprep.subr.mxu0 %v3169_v63  ;;  %3230 = vmatpush1.msra.mxu1 %v3166_v24  ;;  %v3507_v23 = vld [vmem:[#allocation8 + $0x3f8] sm:$0xff]  ;;  %v3474_v24 = vld [vmem:[#allocation8 + $0x2f0] sm:$0xff] }
0x198e   :  { %3307 = vmatpush1.msra.mxu0 %v3168_v25  ;;  %3231 = vmatprep.subr.mxu1 %v3163_v0  ;;  %v3491_v63 = vld [vmem:[#allocation8 + $0x378] sm:$0xff]  ;;  %v3506_v25 = vld [vmem:[#allocation8 + $0x3f0] sm:$0xff] }
0x198f   :  { %3308 = vmatprep.subr.mxu0 %v3165_v27  ;;  %3232 = vmatpush1.msra.mxu1 %v3162_v36  ;;  %v3458_v0 = vld [vmem:[#allocation8 + $0x270] sm:$0xff]  ;;  %v3473_v36 = vld [vmem:[#allocation8 + $0x2e8] sm:$0xff] }
0x1990   :  { %3309 = vmatpush1.msra.mxu0 %v3164_v53  ;;  %3233 = vmatprep.subr.mxu1 %v3159_v22  ;;  %v3490_v27 = vld [vmem:[#allocation8 + $0x370] sm:$0xff]  ;;  %v3505_v53 = vld [vmem:[#allocation8 + $0x3e8] sm:$0xff] }
0x1991   :  { %3310 = vmatprep.subr.mxu0 %v3161_v38  ;;  %3234 = vmatpush1.msra.mxu1 %v3158_v40  ;;  %v3457_v22 = vld [vmem:[#allocation8 + $0x268] sm:$0xff]  ;;  %v3472_v40 = vld [vmem:[#allocation8 + $0x2e0] sm:$0xff] }
0x1992   :  { %3311 = vmatpush1.msra.mxu0 %v3160_v41  ;;  %3235 = vmatprep.subr.mxu1 %v3155_v37  ;;  %v3489_v38 = vld [vmem:[#allocation8 + $0x368] sm:$0xff]  ;;  %v3504_v41 = vld [vmem:[#allocation8 + $0x3e0] sm:$0xff] }
0x1993   :  { %3312 = vmatprep.subr.mxu0 %v3157_v42  ;;  %3236 = vmatpush1.msra.mxu1 %v3154_v30  ;;  %v3456_v37 = vld [vmem:[#allocation8 + $0x260] sm:$0xff]  ;;  %v3471_v30 = vld [vmem:[#allocation8 + $0x2d8] sm:$0xff] }
0x1994   :  { %3313 = vmatpush1.msra.mxu0 %v3156_v45  ;;  %3237 = vmatprep.subr.mxu1 %v3151_v48  ;;  %v3488_v42 = vld [vmem:[#allocation8 + $0x360] sm:$0xff]  ;;  %v3503_v45 = vld [vmem:[#allocation8 + $0x3d8] sm:$0xff] }
0x1995   :  { %3314 = vmatprep.subr.mxu0 %v3153_v21  ;;  %3238 = vmatpush1.msra.mxu1 %v3150_v39  ;;  %v3455_v48 = vld [vmem:[#allocation8 + $0x258] sm:$0xff]  ;;  %v3470_v39 = vld [vmem:[#allocation8 + $0x2d0] sm:$0xff] }
0x1996   :  { %3315 = vmatpush1.msra.mxu0 %v3152_v12  ;;  %3239 = vmatprep.subr.mxu1 %v3147_v49  ;;  %v3487_v21 = vld [vmem:[#allocation8 + $0x358] sm:$0xff]  ;;  %v3502_v12 = vld [vmem:[#allocation8 + $0x3d0] sm:$0xff] }
0x1997   :  { %3316 = vmatprep.subr.mxu0 %v3149_v33  ;;  %3240 = vmatpush1.msra.mxu1 %v3146_v50  ;;  %v3454_v49 = vld [vmem:[#allocation8 + $0x250] sm:$0xff]  ;;  %v3469_v50 = vld [vmem:[#allocation8 + $0x2c8] sm:$0xff] }
0x1998   :  { %3317 = vmatpush1.msra.mxu0 %v3148_v15  ;;  %v3486_v33 = vld [vmem:[#allocation8 + $0x350] sm:$0xff]  ;;  %v3501_v15 = vld [vmem:[#allocation8 + $0x3c8] sm:$0xff] }
0x1a0e   :  { %v3094_v61 = vpop.xlane.xlu1 %3093 }
0x1a0f   :  { %v3096_v2 = vmul.f32 0.0078125, %v3094_v61 }
0x1a10   :  { %v3092_v62 = vpop.xlane.xlu0 %3091 }
0x1a11   :  { %v3095_v3 = vmul.f32 0.0078125, %v3092_v62  ;;  %v5519_v29 = vsub.f32 %v3086_v51, %v3096_v2  ;;  %v3143_v51 = vld [vmem:[#allocation6 + $0x268] sm:$0xff] }
0x1a12   :  { %3241 = vmatprep.subr.mxu1 %v3143_v51  ;;  %v3453_v51 = vld [vmem:[#allocation8 + $0x248] sm:$0xff] }
0x1a13   :  { %v5517_v4 = vsub.f32 %v3085_v46, %v3095_v3  ;;  %v3100_v31 = vmul.f32 %v5519_v29, %v5519_v29  ;;  %v3145_v46 = vld [vmem:[#allocation6 + $0x278] sm:$0xff]  ;;  %3242 = vmatpush1.msra.mxu1 %v3142_v52  ;;  %v3468_v52 = vld [vmem:[#allocation8 + $0x2c0] sm:$0xff] }
0x1a14   :  { %3318 = vmatprep.subr.mxu0 %v3145_v46  ;;  %3243 = vmatprep.subr.mxu1 %v3139_v43  ;;  %v3485_v46 = vld [vmem:[#allocation8 + $0x348] sm:$0xff]  ;;  %v3452_v43 = vld [vmem:[#allocation8 + $0x240] sm:$0xff] }
0x1a15   :  { %v3099_v56 = vmul.f32 %v5517_v4, %v5517_v4  ;;  %3319 = vmatpush1.msra.mxu0 %v3144_v26  ;;  %3244 = vmatpush1.msra.mxu1 %v3138_v54  ;;  %v3500_v26 = vld [vmem:[#allocation8 + $0x3c0] sm:$0xff]  ;;  %v3467_v54 = vld [vmem:[#allocation8 + $0x2b8] sm:$0xff] }
0x1a16   :  { %3320 = vmatprep.subr.mxu0 %v3141_v11  ;;  %3245 = vmatprep.subr.mxu1 %v3135_v8  ;;  %v3484_v11 = vld [vmem:[#allocation8 + $0x340] sm:$0xff]  ;;  %v3451_v8 = vld [vmem:[#allocation8 + $0x238] sm:$0xff] }
0x1a17   :  { %3101 = vadd.xlane.f32.xlu0 %v3099_v56  ;;  %3321 = vmatpush1.msra.mxu0 %v3140_v44  ;;  %v3499_v44 = vld [vmem:[#allocation8 + $0x3b8] sm:$0xff] }
0x1a18   :  { %3322 = vmatprep.subr.mxu0 %v3137_v28  ;;  %3246 = vmatpush1.msra.mxu1 %v3134_v1  ;;  %v3483_v28 = vld [vmem:[#allocation8 + $0x338] sm:$0xff]  ;;  %v3466_v1 = vld [vmem:[#allocation8 + $0x2b0] sm:$0xff] }
0x1a19   :  { %3323 = vmatpush1.msra.mxu0 %v3136_v35  ;;  %3247 = vmatprep.subr.mxu1 %v3131_v47  ;;  %v3498_v35 = vld [vmem:[#allocation8 + $0x3b0] sm:$0xff] }
0x1a1a   :  { %3324 = vmatprep.subr.mxu0 %v3133_v58  ;;  %3248 = vmatpush1.msra.mxu1 %v3130_v55  ;;  %v3450_v47 = vld [vmem:[#allocation8 + $0x230] sm:$0xff]  ;;  %v3465_v55 = vld [vmem:[#allocation8 + $0x2a8] sm:$0xff] }
0x1a1b   :  { %3103 = vadd.xlane.f32.xlu0 %v3100_v31  ;;  %3325 = vmatpush1.msra.mxu0 %v3132_v59  ;;  %v3950_v31 = vld [vmem:[%s5691_s8 + $0x1] ss:$0 sm:$0xff]  ;;  %v3482_v58 = vld [vmem:[#allocation8 + $0x330] sm:$0xff]  ;;  %v3497_v59 = vld [vmem:[#allocation8 + $0x3a8] sm:$0xff] }
0x1a1c   :  { %4172 = vmatprep.subr.mxu1 %v3475_v18  ;;  %4210 = vmatprep.subr.mxu0 %v3507_v23  ;;  %v3461_v18 = vld [vmem:[#allocation8 + $0x288] sm:$0xff] }
0x1a1d   :  { %v3493_v23 = vld [vmem:[#allocation8 + $0x388] sm:$0xff] }
0x1aa0   :  { %v3102_v34 = vpop.xlane.xlu0 %3101 }
0x1aa1   :  { %v3105_v60 = vmul.f32 0.0078125, %v3102_v34  ;;  %v3449_v34 = vld [vmem:[#allocation8 + $0x228] sm:$0xff] }
0x1aa3   :  { %v3107_v61 = vadd.f32 1e-05, %v3105_v60  ;;  %v3481_v60 = vld [vmem:[#allocation8 + $0x328] sm:$0xff] }
0x1aa4   :  { %v3104_v62 = vpop.xlane.xlu0 %3103 }
0x1aa5   :  { %4689 = vrsqrt.f32 %v3107_v61  ;;  %v3106_v2 = vmul.f32 0.0078125, %v3104_v62  ;;  %v3464_v61 = vld [vmem:[#allocation8 + $0x2a0] sm:$0xff] }
0x1aa6   :  { %v3496_v62 = vld [vmem:[#allocation8 + $0x3a0] sm:$0xff] }
0x1aa7   :  { %v3108_v3 = vadd.f32 1e-05, %v3106_v2  ;;  %v3448_v2 = vld [vmem:[#allocation8 + $0x220] sm:$0xff] }
0x1aa9   :  { %4691 = vrsqrt.f32 %v3108_v3  ;;  %v3480_v3 = vld [vmem:[#allocation8 + $0x320] sm:$0xff] }
0x1ab2   :  { %v4690_v56 = vpop.eup %4689 }
0x1ab3   :  { %v3111_v32 = vmul.f32 %v4690_v56, %v5517_v4  ;;  %v3463_v56 = vld [vmem:[#allocation8 + $0x298] sm:$0xff] }
0x1ab5   :  { %v3119_v6 = vmul.f32 %v3950_v31, %v3111_v32  ;;  %v3447_v32 = vld [vmem:[#allocation8 + $0x218] sm:$0xff] }
0x1ab6   :  { %v4692_v7 = vpop.eup %4691 }
0x1ab7   :  { %v5532_v10 = vadd.f32 %v3951_v5, %v3119_v6  ;;  %v3112_v19 = vmul.f32 %v4692_v7, %v5519_v29  ;;  %v3459_v29 = vld [vmem:[#allocation8 + $0x278] sm:$0xff]  ;;  %v3462_v6 = vld [vmem:[#allocation8 + $0x290] sm:$0xff] }
0x1ab8   :  { %v3494_v7 = vld [vmem:[#allocation8 + $0x390] sm:$0xff] }
0x1ab9   :  { %3282 = vmatmul.mubr.f32.vlgmr.msra.gmra.mxu1 %v5532_v10  ;;  %3359 = vmatmul.mubr.f32.vlgmr.msra.gmra.mxu0 %v5532_v10  ;;  %v3120_v16 = vmul.f32 %v3950_v31, %v3112_v19  ;;  %v3495_v31 = vld [vmem:[#allocation8 + $0x398] sm:$0xff]  ;;  %v3446_v19 = vld [vmem:[#allocation8 + $0x210] sm:$0xff] }
0x1aba   :  { %3287 = vmatprep.mubr.f32.mxu1 %v4840_v57  ;;  %3364 = vmatprep.mubr.f32.mxu0 %v4840_v57 }
0x1abb   :  { %v5539_v4 = vadd.f32 %v3951_v5, %v3120_v16  ;;  %4173 = vmatpush3.msra.mxu1 %v3459_v29  ;;  %4211 = vmatpush3.msra.mxu0 %v3491_v63  ;;  %v3479_v5 = vld [vmem:[#allocation8 + $0x318] sm:$0xff]  ;;  %v3478_v16 = vld [vmem:[#allocation8 + $0x310] sm:$0xff]  ;;  %v3445_v29 = vld [vmem:[#allocation8 + $0x208] sm:$0xff] }
0x1abc   :  { %4174 = vmatprep.subr.mxu1 %v3474_v24  ;;  %4212 = vmatprep.subr.mxu0 %v3506_v25  ;;  %v3477_v63 = vld [vmem:[#allocation8 + $0x308] sm:$0xff]  ;;  %v3460_v24 = vld [vmem:[#allocation8 + $0x280] sm:$0xff] }
0x1abd   :  { %3288 = vmatmul.mubr.f32.gmra.mxu1 %v5539_v4  ;;  %3365 = vmatmul.mubr.f32.gmra.mxu0 %v5539_v4  ;;  %v3492_v25 = vld [vmem:[#allocation8 + $0x380] sm:$0xff] }
0x1abe   :  { %4175 = vmatpush3.msra.mxu1 %v3458_v0  ;;  %4213 = vmatpush3.msra.mxu0 %v3490_v27  ;;  %v3444_v0 = vld [vmem:[#allocation8 + $0x200] sm:$0xff] }
0x1abf   :  { %4176 = vmatprep.subr.mxu1 %v3473_v36  ;;  %4214 = vmatprep.subr.mxu0 %v3505_v53  ;;  %v3476_v27 = vld [vmem:[#allocation8 + $0x300] sm:$0xff] }
0x1ac0   :  { %4177 = vmatpush3.msra.mxu1 %v3457_v22  ;;  %4215 = vmatpush3.msra.mxu0 %v3489_v38  ;;  %v3952_v36 = vld [vmem:[%s5694_s11 + $0x4] sm:$0xf] }
0x1ac1   :  { %4178 = vmatprep.subr.mxu1 %v3472_v40  ;;  %4216 = vmatprep.subr.mxu0 %v3504_v41  ;;  %v3200_v53 = vrot.slane %v3952_v36, %v4999_v14  ;;  %v3208_v22 = vrot.slane %v3952_v36, %v5006_v17  ;;  %v3204_v41 = vrot.slane %v3952_v36, %v5011_v20 }
0x1ac2   :  { %4179 = vmatpush3.msra.mxu1 %v3456_v37  ;;  %4217 = vmatpush3.msra.mxu0 %v3488_v42  ;;  %v3212_v37 = vrot.slane %v3952_v36, %v1433_v9 }
0x1ac3   :  { %4180 = vmatprep.subr.mxu1 %v3471_v30  ;;  %4218 = vmatprep.subr.mxu0 %v3503_v45 }
0x1ac4   :  { %4181 = vmatpush3.msra.mxu1 %v3455_v48  ;;  %4219 = vmatpush3.msra.mxu0 %v3487_v21 }
0x1ac5   :  { %4182 = vmatprep.subr.mxu1 %v3470_v39  ;;  %4220 = vmatprep.subr.mxu0 %v3502_v12 }
0x1ac6   :  { %4183 = vmatpush3.msra.mxu1 %v3454_v49  ;;  %4221 = vmatpush3.msra.mxu0 %v3486_v33 }
0x1ac7   :  { %4184 = vmatprep.subr.mxu1 %v3469_v50  ;;  %4222 = vmatprep.subr.mxu0 %v3501_v15 }
0x1ac8   :  { %4185 = vmatpush3.msra.mxu1 %v3453_v51  ;;  %4223 = vmatpush3.msra.mxu0 %v3485_v46 }
0x1ac9   :  { %4186 = vmatprep.subr.mxu1 %v3468_v52  ;;  %4224 = vmatprep.subr.mxu0 %v3500_v26 }
0x1aca   :  { %4187 = vmatpush3.msra.mxu1 %v3452_v43  ;;  %4225 = vmatpush3.msra.mxu0 %v3484_v11 }
0x1acb   :  { %4188 = vmatprep.subr.mxu1 %v3467_v54  ;;  %4226 = vmatprep.subr.mxu0 %v3499_v44 }
0x1acc   :  { %4189 = vmatpush3.msra.mxu1 %v3451_v8  ;;  %4227 = vmatpush3.msra.mxu0 %v3483_v28 }
0x1acd   :  { %4190 = vmatprep.subr.mxu1 %v3466_v1  ;;  %4228 = vmatprep.subr.mxu0 %v3498_v35 }
0x1ace   :  { %4191 = vmatpush3.msra.mxu1 %v3450_v47  ;;  %4229 = vmatpush3.msra.mxu0 %v3482_v58 }
0x1acf   :  { %4192 = vmatprep.subr.mxu1 %v3465_v55  ;;  %4230 = vmatprep.subr.mxu0 %v3497_v59 }
0x1ad0   :  { %4193 = vmatpush3.msra.mxu1 %v3449_v34  ;;  %4231 = vmatpush3.msra.mxu0 %v3481_v60 }
0x1ad1   :  { %4194 = vmatprep.subr.mxu1 %v3464_v61  ;;  %4232 = vmatprep.subr.mxu0 %v3496_v62 }
0x1ad2   :  { %4195 = vmatpush3.msra.mxu1 %v3448_v2  ;;  %4233 = vmatpush3.msra.mxu0 %v3480_v3 }
0x1ad3   :  { %4196 = vmatprep.subr.mxu1 %v3463_v56  ;;  %4234 = vmatprep.subr.mxu0 %v3495_v31 }
0x1ad4   :  { %4197 = vmatpush3.msra.mxu1 %v3447_v32  ;;  %4235 = vmatpush3.msra.mxu0 %v3479_v5 }
0x1ad5   :  { %4198 = vmatprep.subr.mxu1 %v3462_v6  ;;  %4236 = vmatprep.subr.mxu0 %v3494_v7 }
0x1ad6   :  { %4199 = vmatpush3.msra.mxu1 %v3446_v19  ;;  %4237 = vmatpush3.msra.mxu0 %v3478_v16 }
0x1ad7   :  { %4200 = vmatprep.subr.mxu1 %v3461_v18  ;;  %4238 = vmatprep.subr.mxu0 %v3493_v23 }
0x1ad8   :  { %4201 = vmatpush3.msra.mxu1 %v3445_v29  ;;  %4239 = vmatpush3.msra.mxu0 %v3477_v63 }
0x1ad9   :  { %4202 = vmatprep.subr.mxu1 %v3460_v24  ;;  %4240 = vmatprep.subr.mxu0 %v3492_v25 }
0x1ada   :  { %4203 = vmatpush3.msra.mxu1 %v3444_v0  ;;  %4241 = vmatpush3.msra.mxu0 %v3476_v27 }
0x1adb   :  { %4517 = vmatprep.subr.mxu1 %v4840_v57 }
0x1b79   :  { %v3283_v38 = vpop.f32.mrf.mxu1  ;;  %v3360_v40 = vpop.f32.mrf.mxu0 }
0x1b7a   :  { %v5552_v42 = vadd.f32 %v3283_v38, %v3200_v53  ;;  %v5554_v30 = vadd.f32 %v3360_v40, %v3208_v22 }
0x1b7b   :  { %v3285_v45 = vpop.f32.mrf.mxu1  ;;  %v3362_v48 = vpop.f32.mrf.mxu0 }
0x1b7c   :  { %v3379_v21 = vmul.f32 0.044715, %v5552_v42  ;;  %v3381_v39 = vmul.f32 0.044715, %v5554_v30  ;;  %v3286_v14 = vadd.f32 %v3285_v45, %v3204_v41  ;;  %v5558_v12 = vadd.f32 %v3362_v48, %v3212_v37 }
0x1b7d   :  { %v3289_v17 = vpop.f32.mrf.mxu1  ;;  %v3366_v49 = vpop.f32.mrf.mxu0  ;;  %v3371_v48 = vmul.f32 0.5, %v5552_v42 }
0x1b7e   :  { %v3387_v20 = vmul.f32 %v3379_v21, %v5552_v42  ;;  %v3389_v13 = vmul.f32 %v3381_v39, %v5554_v30  ;;  %v5562_v9 = vadd.f32 %v3289_v17, %v3200_v53  ;;  %v5564_v33 = vadd.f32 %v3366_v49, %v3208_v22 }
0x1b7f   :  { %v3380_v50 = vmul.f32 0.044715, %v3286_v14  ;;  %v3382_v15 = vmul.f32 0.044715, %v5558_v12  ;;  %v3291_v51 = vpop.f32.mrf.mxu1  ;;  %v3368_v46 = vpop.f32.mrf.mxu0  ;;  %v3374_v21 = vmul.f32 0.5, %v5558_v12  ;;  %v3373_v49 = vmul.f32 0.5, %v5554_v30 }
0x1b80   :  { %v3395_v52 = vmul.f32 %v3387_v20, %v5552_v42  ;;  %v3397_v26 = vmul.f32 %v3389_v13, %v5554_v30  ;;  %v3383_v43 = vmul.f32 0.044715, %v5562_v9  ;;  %v3385_v11 = vmul.f32 0.044715, %v5564_v33 }
0x1b81   :  { %v3388_v54 = vmul.f32 %v3380_v50, %v3286_v14  ;;  %v3390_v44 = vmul.f32 %v3382_v15, %v5558_v12  ;;  %v3292_v8 = vadd.f32 %v3291_v51, %v3204_v41  ;;  %v3369_v28 = vadd.f32 %v3368_v46, %v3212_v37 }
0x1b82   :  { %v3403_v1 = vadd.f32 %v3395_v52, %v5552_v42  ;;  %v3405_v35 = vadd.f32 %v3397_v26, %v5554_v30  ;;  %v3391_v47 = vmul.f32 %v3383_v43, %v5562_v9  ;;  %v3393_v62 = vmul.f32 %v3385_v11, %v5564_v33 }
0x1b83   :  { %v3384_v58 = vmul.f32 0.044715, %v3292_v8  ;;  %v3386_v55 = vmul.f32 0.044715, %v3369_v28  ;;  %v3396_v59 = vmul.f32 %v3388_v54, %v3286_v14  ;;  %v3398_v34 = vmul.f32 %v3390_v44, %v5558_v12 }
0x1b84   :  { %v3411_v60 = vmul.f32 0.7978846, %v3403_v1  ;;  %v3413_v61 = vmul.f32 0.7978846, %v3405_v35  ;;  %v3399_v32 = vmul.f32 %v3391_v47, %v5562_v9  ;;  %v3401_v18 = vmul.f32 %v3393_v62, %v5564_v33 }
0x1b85   :  { %v3392_v2 = vmul.f32 %v3384_v58, %v3292_v8  ;;  %v3394_v3 = vmul.f32 %v3386_v55, %v3369_v28  ;;  %v3404_v56 = vadd.f32 %v3396_v59, %v3286_v14  ;;  %v3406_v31 = vadd.f32 %v3398_v34, %v5558_v12 }
0x1b86   :  { %4693 = vtanh.f32 %v3411_v60  ;;  %v3407_v16 = vadd.f32 %v3399_v32, %v5562_v9  ;;  %v3409_v24 = vadd.f32 %v3401_v18, %v5564_v33  ;;  %v3372_v41 = vmul.f32 0.5, %v3286_v14 }
0x1b87   :  { %4695 = vtanh.f32 %v3413_v61  ;;  %v3412_v5 = vmul.f32 0.7978846, %v3404_v56  ;;  %v3414_v6 = vmul.f32 0.7978846, %v3406_v31  ;;  %v3400_v7 = vmul.f32 %v3392_v2, %v3292_v8 }
0x1b88   :  { %v3402_v19 = vmul.f32 %v3394_v3, %v3369_v28  ;;  %v3415_v63 = vmul.f32 0.7978846, %v3407_v16  ;;  %v3417_v27 = vmul.f32 0.7978846, %v3409_v24  ;;  %v3376_v26 = vmul.f32 0.5, %v3292_v8 }
0x1b89   :  { %4697 = vtanh.f32 %v3412_v5  ;;  %v3408_v23 = vadd.f32 %v3400_v7, %v3292_v8  ;;  %v3378_v42 = vmul.f32 0.5, %v3369_v28  ;;  %v3375_v12 = vmul.f32 0.5, %v5562_v9 }
0x1b8a   :  { %4699 = vtanh.f32 %v3414_v6  ;;  %v3410_v29 = vadd.f32 %v3402_v19, %v3369_v28  ;;  %v3377_v30 = vmul.f32 0.5, %v5564_v33  ;;  %v3954_v28 = vld [vmem:[%s5696_s13 + $0x1] ss:$0 sm:$0xff] }
0x1b8b   :  { %v3416_v25 = vmul.f32 0.7978846, %v3408_v23  ;;  %4701 = vtanh.f32 %v3415_v63 }
0x1b8c   :  { %v3418_v0 = vmul.f32 0.7978846, %v3410_v29 }
0x1b8d   :  { %4703 = vtanh.f32 %v3416_v25  ;;  %v3732_v25 = vld [vmem:[%s5699_s16 + $0x70] sm:$0xff] }
0x1b8e   :  { %4705 = vtanh.f32 %v3418_v0  ;;  %v3731_v0 = vld [vmem:[%s5699_s16 + $0x68] sm:$0xff] }
0x1b8f   :  { %4707 = vtanh.f32 %v3417_v27  ;;  %v3730_v27 = vld [vmem:[%s5699_s16 + $0x60] sm:$0xff] }
0x1b93   :  { %v4694_v36 = vpop.eup %4693 }
0x1b94   :  { %v4696_v53 = vpop.eup %4695  ;;  %v3427_v38 = vadd.f32 1.0, %v4694_v36  ;;  %v3729_v36 = vld [vmem:[%s5699_s16 + $0x58] sm:$0xff] }
0x1b95   :  { %v3429_v45 = vadd.f32 1.0, %v4696_v53  ;;  %v3728_v53 = vld [vmem:[%s5699_s16 + $0x50] sm:$0xff] }
0x1b96   :  { %v4698_v22 = vpop.eup %4697  ;;  %v3435_v15 = vmul.f32 %v3427_v38, %v3371_v48  ;;  %v3726_v38 = vld [vmem:[%s5699_s16 + $0x40] sm:$0xff]  ;;  %v3721_v48 = vld [vmem:[%s5699_s16 + $0x18] sm:$0xff] }
0x1b97   :  { %v4700_v40 = vpop.eup %4699  ;;  %v3428_v37 = vadd.f32 1.0, %v4698_v22  ;;  %v3437_v52 = vmul.f32 %v3429_v45, %v3373_v49  ;;  %v3727_v22 = vld [vmem:[%s5699_s16 + $0x48] sm:$0xff]  ;;  %v3722_v45 = vld [vmem:[%s5699_s16 + $0x20] sm:$0xff] }
0x1b98   :  { %v3430_v39 = vadd.f32 1.0, %v4700_v40  ;;  %v4702_v17 = vpop.eup %4701  ;;  %v3725_v40 = vld [vmem:[%s5699_s16 + $0x38] sm:$0xff] }
0x1b99   :  { %v3436_v20 = vmul.f32 %v3428_v37, %v3372_v41  ;;  %v3431_v51 = vadd.f32 1.0, %v4702_v17  ;;  %v3724_v41 = vld [vmem:[%s5699_s16 + $0x30] sm:$0xff]  ;;  %v3723_v37 = vld [vmem:[%s5699_s16 + $0x28] sm:$0xff]  ;;  %v3718_v17 = vld [vmem:[%s5699_s16] sm:$0xff] }
0x1b9a   :  { %v4704_v13 = vpop.eup %4703  ;;  %v3438_v50 = vmul.f32 %v3430_v39, %v3374_v21  ;;  %v3720_v21 = vld [vmem:[%s5699_s16 + $0x10] sm:$0xff]  ;;  %v3719_v39 = vld [vmem:[%s5699_s16 + $0x8] sm:$0xff] }
0x1b9b   :  { %v4706_v46 = vpop.eup %4705  ;;  %3580 = vmatprep.mubr.f32.mxu1 %v3436_v20  ;;  %v3432_v14 = vadd.f32 1.0, %v4704_v13  ;;  %v3439_v35 = vmul.f32 %v3431_v51, %v3375_v12 }
0x1b9c   :  { %v4708_v43 = vpop.eup %4707  ;;  %3655 = vmatprep.mubr.f32.mxu0 %v3438_v50  ;;  %3581 = vmatmul.mubr.f32.vlgmr.msra.gmra.mxu1 %v3435_v15  ;;  %v3434_v11 = vadd.f32 1.0, %v4706_v46 }
0x1b9d   :  { %3656 = vmatmul.mubr.f32.vlgmr.msra.gmra.mxu0 %v3437_v52  ;;  %v3440_v54 = vmul.f32 %v3432_v14, %v3376_v26  ;;  %v3433_v44 = vadd.f32 1.0, %v4708_v43  ;;  %v3957_v52 = vld [vmem:[%s5697_s14 + $0x1] ss:$0 sm:$0xff]  ;;  %s4844_s14 = smov [#allocation9]  }
0x1b9e   :  { %v3442_v1 = vmul.f32 %v3434_v11, %v3378_v42 }
0x1b9f   :  { %3585 = vmatprep.mubr.f32.mxu1 %v3440_v54  ;;  %v3441_v47 = vmul.f32 %v3433_v44, %v3377_v30 }
0x1ba0   :  { %3660 = vmatprep.mubr.f32.mxu0 %v3442_v1  ;;  %3586 = vmatmul.mubr.f32.gmra.mxu1 %v3439_v35  ;;  %v3959_v35 = vld [vmem:[#allocation2] ss:$0 sm:$0xff] }
0x1ba1   :  { %3661 = vmatmul.mubr.f32.gmra.mxu0 %v3441_v47  ;;  %4549 = vmatprep.mubr.msk.f32.mxu1 %vm4843_vm4, %v4840_v57 }
0x1c5c   :  { %v4204_v8 = vpop.f32.mrf.mxu1 }
0x1c5d   :  { %v4242_v58 = vpop.f32.mrf.mxu0 }
0x1c5e   :  { %v4205_v55 = vpop.f32.mrf.mxu1 }
0x1c5f   :  { %v4206_v9 = vadd.f32 %v4205_v55, %v4204_v8  ;;  %v4243_v59 = vpop.f32.mrf.mxu0 }
0x1c60   :  { %v4207_v34 = vpop.f32.mrf.mxu1  ;;  %v4244_v33 = vadd.f32 %v4243_v59, %v4242_v58 }
0x1c61   :  { %v3583_v60 = vadd.f32 %v4206_v9, %v3954_v28  ;;  %v4245_v61 = vpop.f32.mrf.mxu0 }
0x1c62   :  { %v4208_v62 = vpop.f32.mrf.mxu1 }
0x1c63   :  { %v3658_v2 = vadd.f32 %v4244_v33, %v3583_v60  ;;  %v4209_v3 = vadd.f32 %v4208_v62, %v4207_v34  ;;  %v4246_v56 = vpop.f32.mrf.mxu0 }
0x1c64   :  { %v4247_v32 = vadd.f32 %v4246_v56, %v4245_v61 }
0x1c65   :  { %v3588_v31 = vadd.f32 %v4209_v3, %v3954_v28  ;;  %v3666_v5 = vadd.f32 %v3658_v2, %v5532_v10 }
0x1c67   :  { %v3663_v6 = vadd.f32 %v4247_v32, %v3588_v31  ;;  %3672 = vadd.xlane.f32.xlu0 %v3666_v5 }
0x1c69   :  { %v3667_v7 = vadd.f32 %v3663_v6, %v5539_v4  ;;  %v3733_v4 = vld [vmem:[%s5699_s16 + $0x78] sm:$0xff] }
0x1c6a   :  { %4518 = vmatpush3.msra.mxu1 %v3733_v4 }
0x1c6b   :  { %3674 = vadd.xlane.f32.xlu1 %v3667_v7  ;;  %4519 = vmatprep.subr.mxu1 %v4840_v57 }
0x1c6c   :  { %4520 = vmatpush3.msra.mxu1 %v3732_v25 }
0x1c6d   :  { %4521 = vmatprep.subr.mxu1 %v4840_v57 }
0x1c6e   :  { %4522 = vmatpush3.msra.mxu1 %v3731_v0 }
0x1c6f   :  { %4523 = vmatprep.subr.mxu1 %v4840_v57 }
0x1c70   :  { %4524 = vmatpush3.msra.mxu1 %v3730_v27 }
0x1c71   :  { %4525 = vmatprep.subr.mxu1 %v4840_v57 }
0x1c72   :  { %4526 = vmatpush3.msra.mxu1 %v3729_v36 }
0x1c73   :  { %4527 = vmatprep.subr.mxu1 %v4840_v57 }
0x1c74   :  { %4528 = vmatpush3.msra.mxu1 %v3728_v53 }
0x1c75   :  { %4529 = vmatprep.subr.mxu1 %v4840_v57 }
0x1c76   :  { %4530 = vmatpush3.msra.mxu1 %v3727_v22 }
0x1c77   :  { %4531 = vmatprep.subr.mxu1 %v4840_v57 }
0x1c78   :  { %4532 = vmatpush3.msra.mxu1 %v3726_v38 }
0x1c79   :  { %4533 = vmatprep.subr.mxu1 %v4840_v57 }
0x1c7a   :  { %4534 = vmatpush3.msra.mxu1 %v3725_v40 }
0x1c7b   :  { %4535 = vmatprep.subr.mxu1 %v4840_v57 }
0x1c7c   :  { %4536 = vmatpush3.msra.mxu1 %v3724_v41 }
0x1c7d   :  { %4537 = vmatprep.subr.mxu1 %v4840_v57 }
0x1c7e   :  { %4538 = vmatpush3.msra.mxu1 %v3723_v37 }
0x1c7f   :  { %4539 = vmatprep.subr.mxu1 %v4840_v57 }
0x1c80   :  { %4540 = vmatpush3.msra.mxu1 %v3722_v45 }
0x1c81   :  { %4541 = vmatprep.subr.mxu1 %v4840_v57 }
0x1c82   :  { %4542 = vmatpush3.msra.mxu1 %v3721_v48 }
0x1c83   :  { %4543 = vmatprep.subr.mxu1 %v4840_v57 }
0x1c84   :  { %4544 = vmatpush3.msra.mxu1 %v3720_v21 }
0x1c85   :  { %4545 = vmatprep.subr.mxu1 %v4840_v57 }
0x1c86   :  { %4546 = vmatpush3.msra.mxu1 %v3719_v39 }
0x1c87   :  { %4547 = vmatprep.subr.mxu1 %v4840_v57  ;;  %v3958_v57 = vld [vmem:[%s5698_s15 + $0x1] ss:$0 sm:$0xff]  ;;  %s3849_s15 = sshll.u32 %s4844_s14, 4  ;;  %s3850_s15 = int_to_ptr.vmem [resolvable:$true] %s3849_s15 }
0x1c88   :  { %4548 = vmatpush3.msra.mxu1 %v3718_v17  ;;  %s4783_s12 = scalar_lea.vmem %s3850_s15, 32  ;;  %p4788_p2 = scmp.lt.s32.totalorder %s3850_s15, %s3850_s15 }
0x1c89   :  { %p4784_p1 = scmp.ne.s32.totalorder %s3850_s15, %s4783_s12  ;;  %p4789_p3 = scmp.lt.s32.totalorder %s4783_s12, %s4783_s12 }
0x1c8b   :  { %p4790_p4 = por %p4789_p3, %p4788_p2 }
0x1c8d   :  { %p4791_p5 = pnand %p4790_p4, %p4784_p1 }
0x1cf0   :  { %v3673_v19 = vpop.xlane.xlu0 %3672 }
0x1cf1   :  { %v3676_v16 = vmul.f32 0.0078125, %v3673_v19 }
0x1cf3   :  { %v5592_v18 = vsub.f32 %v3666_v5, %v3676_v16 }
0x1cf4   :  { %v3675_v23 = vpop.xlane.xlu1 %3674 }
0x1cf5   :  { %v3677_v29 = vmul.f32 0.0078125, %v3675_v23  ;;  %v3680_v63 = vmul.f32 %v5592_v18, %v5592_v18 }
0x1cf7   :  { %v5596_v24 = vsub.f32 %v3667_v7, %v3677_v29  ;;  %3682 = vadd.xlane.f32.xlu0 %v3680_v63 }
0x1cf9   :  { %v3681_v10 = vmul.f32 %v5596_v24, %v5596_v24 }
0x1cfb   :  { %3684 = vadd.xlane.f32.xlu1 %v3681_v10 }
0x1d80   :  { %v3683_v49 = vpop.xlane.xlu0 %3682 }
0x1d81   :  { %v3686_v20 = vmul.f32 0.0078125, %v3683_v49 }
0x1d83   :  { %v3688_v13 = vadd.f32 1e-05, %v3686_v20 }
0x1d84   :  { %v3685_v50 = vpop.xlane.xlu1 %3684 }
0x1d85   :  { %4709 = vrsqrt.f32 %v3688_v13  ;;  %v3687_v15 = vmul.f32 0.0078125, %v3685_v50 }
0x1d87   :  { %v3689_v51 = vadd.f32 1e-05, %v3687_v15 }
0x1d89   :  { %4711 = vrsqrt.f32 %v3689_v51 }
0x1d92   :  { %v4710_v46 = vpop.eup %4709 }
0x1d93   :  { %v3692_v26 = vmul.f32 %v4710_v46, %v5592_v18 }
0x1d95   :  { %v3700_v14 = vmul.f32 %v3957_v52, %v3692_v26 }
0x1d96   :  { %v4712_v43 = vpop.eup %4711 }
0x1d97   :  { %v3693_v42 = vmul.f32 %v4712_v43, %v5596_v24  ;;  %v3708_v12 = vadd.f32 %v3958_v57, %v3700_v14 }
0x1d99   :  { %v3701_v11 = vmul.f32 %v3957_v52, %v3693_v42  ;;  %v3711_v30 = vrot.slane %v3708_v12, 7 }
0x1d9b   :  { %v3709_v54 = vadd.f32 %v3958_v57, %v3701_v11 }
0x1d9d   :  { %v3714_v44 = vrot.slane %v3709_v54, 6 }
0x1d9f   :  { %v3717_v1 = vsel %vm3716_vm5, %v3711_v30, %v3714_v44 }
0x1da0   :  { %4550 = vmatmul.mubr.f32.vlgmr.msra.gmra.mxu1 %v3717_v1 }
0x1e60   :  { %v3807_v47 = vpop.f32.mrf.mxu1 }
0x1e61   :  { %v3808_v8 = vadd.f32 %v3959_v35, %v3807_v47 }
0x1e62   :  { %v4551_v58 = vpop.f32.mrf.mxu1 }
0x1e63   :  { %v3811_v28 = vsub.f32 0.0, %v3808_v8 }
0x1e65   :  { %v3812_v55 = vmul.f32 1.442695, %v3811_v28 }
0x1e67   :  { %4713 = vpow2.f32 %v3812_v55 }
0x1e74   :  { %v4714_v9 = vpop.eup %4713 }
0x1e75   :  { %v3814_v59 = vadd.f32 1.0, %v4714_v9 }
0x1e77   :  { %4715 = vrcp.f32 %v3814_v59 }
0x1e84   :  { %v4716_v34 = vpop.eup %4715 }
0x1e85   :  { %3818 = vst.msk [vmem:[#allocation9] sm:$0x3] %vm3817_vm6, %v4716_v34  ;;  %v3819_v60 = vmax.f32 %v4716_v34, 1e-07 }
0x1e86   :  { %4794 = shalt.err (!%p4791_p5)
}
0x1e87   :  { %3852 = dma.vmem_to_hbm [thread:$0]  %s3850_s15, 32, %s5702_s19, [#allocation5]   ;;  %v3820_v33 = vmin.f32 %v3819_v60, 0.9999999  ;;  %v3821_v62 = vld [vmem:[%s5701_s18] sm:$0x3] }
0x1e88   :  { %v3825_v56 = vsub.f32 1.0, %v3821_v62  ;;  %s4845_s19 = smov [#allocation10]   ;;  %vm3841_vm7 = vcmask 0  }
0x1e89   :  { %4717 = vlog2.f32 %v3820_v33  ;;  %v3826_v61 = vsub.f32 1.0, %v3820_v33  ;;  %s3859_s6 = sshll.u32 %s4845_s19, 4  ;;  %s3860_s6 = int_to_ptr.vmem [resolvable:$true] %s3859_s6 }
0x1e8a   :  { %s4803_s18 = scalar_lea.vmem %s3860_s6, 16  ;;  %s4807_s27 = scalar_lea.vmem %s3860_s6, 32 }
0x1e8b   :  { %4719 = vlog2.f32 %v3826_v61  ;;  %p4804_p6 = scmp.ne.s32.totalorder %s3860_s6, %s4803_s18  ;;  %p4808_p7 = scmp.lt.s32.totalorder %s3860_s6, %s3860_s6 }
0x1e8c   :  { %p4809_p8 = scmp.lt.s32.totalorder %s4807_s27, %s4803_s18 }
0x1e8e   :  { %p4810_p9 = por %p4809_p8, %p4808_p7 }
0x1e90   :  { %p4811_p10 = pnand %p4810_p9, %p4804_p6 }
0x1e96   :  { %v4718_v2 = vpop.eup %4717 }
0x1e97   :  { %v3823_v3 = vmul.f32 0.6931472, %v4718_v2 }
0x1e98   :  { %v4720_v31 = vpop.eup %4719 }
0x1e99   :  { %v3828_v32 = vmul.f32 0.6931472, %v4720_v31  ;;  %v3824_v5 = vmul.f32 %v3823_v3, %v3821_v62 }
0x1e9b   :  { %v3829_v6 = vmul.f32 %v3828_v32, %v3825_v56 }
0x1e9d   :  { %v3830_v7 = vadd.f32 %v3829_v6, %v3824_v5 }
0x1e9f   :  { %v3831_v19 = vsub.f32 0.0, %v3830_v7 }
0x1ea1   :  { %v3832_v16 = vsel %vm3817_vm6, %v3831_v19, 0.0 }
0x1ea2   :  { %v3833_v18 = vrot.slane %v3832_v16, 4 }
0x1ea4   :  { %v3834_v23 = vadd.f32 %v3833_v18, %v3832_v16 }
0x1ea6   :  { %v3835_v29 = vrot.slane %v3834_v23, 2 }
0x1ea8   :  { %v3836_v63 = vadd.f32 %v3835_v29, %v3834_v23 }
0x1eaa   :  { %v3837_v24 = vrot.slane %v3836_v63, 1 }
0x1eac   :  { %v3838_v10 = vadd.f32 %v3837_v24, %v3836_v63 }
0x1eae   :  { %v3840_v4 = vmul.f32 0.5, %v3838_v10 }
0x1eb0   :  { %3842 = vst.msk [vmem:[#allocation10] sm:$0x1] %vm3841_vm7, %v3840_v4 }
0x1eb1   :  { %4814 = shalt.err (!%p4811_p10)
}
0x1eb2   :  { %3862 = dma.vmem_to_hbm [thread:$0]  %s3860_s6, 16, %s5703_s20, [#allocation11]  }
0x1eb3   :  { %4827 = dma.done.wait [#allocation5], 32  }
0x1eb4   :  { %4828 = vsyncadd [#allocation5], 4294967264 }
0x1eb5   :  { %4829 = dma.done.wait [#allocation11], 16  }
0x1eb6   :  { %4830 = vsyncadd [#allocation11], 4294967280 }
0x1eb7   :  { %3869 = vsyncpa [#allocation4], 1 }
0x1eb8   :  { %3870 = vsyncpa [#allocation7], 1 }
0x1eb9   :  { %3871 = vsyncpa [#allocation5], 1 }
0x1eba   :  { %3872 = vsyncpa [#allocation11], 1 }

</bundles_post_ra>
